<compile_context>
chip_gen: v7x
topology: tpu7x:2x2x1
jax: 0.10.0
libtpu: 0.0.40
codegen_flags: <defaults>
</compile_context>

<pallas_src>
import numpy as np
import jax
import jax.numpy as jnp
from jax.experimental import pallas as pl
from jax.experimental.pallas import tpu as pltpu


# ------------------------------ Pallas kernel ------------------------------

def ptrnet_kernel(x_ref,
                  ewi_ref, egib_ref, ebhn_ref,
                  ewhr_ref, ewhz_ref, ewhn_ref,
                  dgir_ref, dgiz_ref, dgin_ref, dbhn_ref,
                  dwhr_ref, dwhz_ref, dwhn_ref,
                  w1_ref, w2_ref, vt_ref, wl_ref,
                  probs_ref, predl_ref):
    B, L, E = x_ref.shape
    H = ewhr_ref.shape[0]
    Wsz = w1_ref.shape[1]
    T = probs_ref.shape[1]
    f32 = jnp.float32

    # ---- Encoder input gates for ALL steps in one MXU op (off the serial
    #      chain).  The r/z parts of b_hh and all of b_ih are pre-folded into
    #      egib by the wrapper.
    x_flat = x_ref[...].reshape(B * L, E)
    gi_all = (jnp.dot(x_flat, ewi_ref[...], preferred_element_type=f32)
              + egib_ref[...]).reshape(B, L, 3 * H)
    # One-time lane slicing, off the recurrence chain.
    gi_r_all = gi_all[:, :, :H]
    gi_z_all = gi_all[:, :, H:2 * H]
    gi_n_all = gi_all[:, :, 2 * H:]

    ewh_r = ewhr_ref[...]; ewh_z = ewhz_ref[...]; ewh_n = ewhn_ref[...]
    ebh_n = ebhn_ref[...]
    dwh_r = dwhr_ref[...]; dwh_z = dwhz_ref[...]; dwh_n = dwhn_ref[...]
    dbh_n = dbhn_ref[...]
    dgi_r = dgir_ref[...]; dgi_z = dgiz_ref[...]; dgi_n = dgin_ref[...]

    # Step selectors built from a traced iota (NOT captured constants).
    pos_L = jax.lax.broadcasted_iota(jnp.int32, (L, 1), 0)      # (L, 1)
    pos_T = jax.lax.broadcasted_iota(jnp.int32, (T, 1), 0)      # (T, 1)

    def enc_step(t, h):
        # Per-gate (H, H) slabs keep every recurrent dot result lane-0
        # aligned: no XLU rotate on the per-step critical path.
        ghr = jnp.dot(h, ewh_r, preferred_element_type=f32)
        ghz = jnp.dot(h, ewh_z, preferred_element_type=f32)
        ghn = jnp.dot(h, ewh_n, preferred_element_type=f32) + ebh_n
        r = jax.nn.sigmoid(gi_r_all[:, t, :] + ghr)
        z = jax.nn.sigmoid(gi_z_all[:, t, :] + ghz)
        n = jnp.tanh(gi_n_all[:, t, :] + r * ghn)
        return (1.0 - z) * n + z * h

    def dec_step(hidden):
        # Decoder input is identically zero -> only the constant biases.
        ghr = jnp.dot(hidden, dwh_r, preferred_element_type=f32)
        ghz = jnp.dot(hidden, dwh_z, preferred_element_type=f32)
        ghn = jnp.dot(hidden, dwh_n, preferred_element_type=f32) + dbh_n
        r = jax.nn.sigmoid(dgi_r + ghr)
        z = jax.nn.sigmoid(dgi_z + ghz)
        n = jnp.tanh(dgi_n + r * ghn)
        return (1.0 - z) * n + z * hidden

    h = jnp.zeros((B, H), f32)
    hidden = jnp.zeros((B, H), f32)
    enc = jnp.zeros((B, L, H), f32)
    hid = jnp.zeros((B, T, H), f32)

    # Merged encoder/decoder recurrence: the two chains are independent, so
    # their matmul+EUP dependency chains pipeline against each other.
    # Statically unrolled (fine for L, T <= ~16-32).
    n_merge = min(L, T)
    for t in range(n_merge):
        h = enc_step(t, h)
        hidden = dec_step(hidden)
        enc = enc + h[:, None, :] * (pos_L == t).astype(f32)[None]
        hid = hid + hidden[:, None, :] * (pos_T == t).astype(f32)[None]
    for t in range(n_merge, L):        # encoder tail if L > T
        h = enc_step(t, h)
        enc = enc + h[:, None, :] * (pos_L == t).astype(f32)[None]
    for t in range(n_merge, T):        # decoder tail if T > L
        hidden = dec_step(hidden)
        hid = hid + hidden[:, None, :] * (pos_T == t).astype(f32)[None]

    # pred_L = WL(h_n).  Tiny dedicated dot; fold into w1 once B*T*L grows.
    predl_ref[...] = jnp.dot(h, wl_ref[...], preferred_element_type=f32)  # (B, 1)

    # ---- Attention + log-softmax for all T decode steps at once (the decoder
    #      hidden never depends on the attention output), as flat 2-D MXU
    #      matmuls followed by one contiguous probs store.
    blend1 = jnp.dot(enc.reshape(B * L, H), w1_ref[...],
                     preferred_element_type=f32).reshape(B, L, Wsz)   # (B, L, W)
    blend2 = jnp.dot(hid.reshape(B * T, H), w2_ref[...],
                     preferred_element_type=f32).reshape(B, T, Wsz)   # (B, T, W)

    # TODO(synk): at production sizes tile this over T blocks (v7x 64 MiB VMEM)
    # and contract against vt with an MXU dot instead of a VPU reduce.
    s = jnp.tanh(blend1[:, None, :, :] + blend2[:, :, None, :])       # (B, T, L, W)
    scores = jnp.sum(s * vt_ref[...], axis=-1)                        # (B, T, L)

    m = jnp.max(scores, axis=-1, keepdims=True)
    lse = jnp.log(jnp.sum(jnp.exp(scores - m), axis=-1, keepdims=True))
    probs_ref[...] = scores - m - lse                                 # one contiguous store


# ------------------------------ JAX wrapper --------------------------------

def pointer_network_forward(tokens, params, decode_steps):
    # Embedding lookup is glue (gather) done in plain JAX.
    x_emb = jnp.take(params['emb'], tokens, axis=0).astype(jnp.float32)  # (B, L, E)
    B, L, _ = x_emb.shape
    H = params['enc_w_hh_T'].shape[0]

    ewh = params['enc_w_hh_T']
    dwh = params['dec_w_hh_T']
    ebi, ebh = params['enc_b_ih'], params['enc_b_hh']
    dbi, dbh = params['dec_b_ih'], params['dec_b_hh']

    # Fold the purely-additive r/z parts of b_hh into the input-gate bias; the
    # n part of b_hh must stay on the recurrent dot: r * (W_hn h + b_hn).
    enc_gib = jnp.concatenate([ebi[:, :H] + ebh[:, :H],
                               ebi[:, H:2 * H] + ebh[:, H:2 * H],
                               ebi[:, 2 * H:]], axis=1)               # (1, 3H)
    dgi_r = dbi[:, :H] + dbh[:, :H]                                   # (1, H)
    dgi_z = dbi[:, H:2 * H] + dbh[:, H:2 * H]
    dgi_n = dbi[:, 2 * H:]

    args = (x_emb,
            params['enc_w_ih_T'], enc_gib, ebh[:, 2 * H:],
            ewh[:, :H], ewh[:, H:2 * H], ewh[:, 2 * H:],
            dgi_r, dgi_z, dgi_n, dbh[:, 2 * H:],
            dwh[:, :H], dwh[:, H:2 * H], dwh[:, 2 * H:],
            params['w1_T'], params['w2_T'], params['vt'], params['wl'])

    vmem = pl.BlockSpec(memory_space=pltpu.MemorySpace.VMEM)
    probs, predl = pl.pallas_call(
        ptrnet_kernel,
        out_shape=(jax.ShapeDtypeStruct((B, decode_steps, L), jnp.float32),
                   jax.ShapeDtypeStruct((B, 1), jnp.float32)),
        in_specs=[vmem] * len(args),
        out_specs=(vmem, vmem),
        # TODO(synk): for real batches add a grid over B blocks with
        # dimension_semantics=("parallel",) (2 TCs on v7x) and an explicit
        # vmem_limit_bytes budget.
    )(*args)
    return probs, predl[:, 0]


# -------------------- deterministic parameter construction -----------------

def init_params(key, input_size, emb_size, hidden_size, weight_size):
    ks = jax.random.split(key, 13)
    s = 0.1
    f = jnp.float32
    return {
        'emb':        s * jax.random.normal(ks[0], (input_size, emb_size), f),
        # nn.GRU weights (3H, E)/(3H, H) stored pre-transposed for x @ W^T.
        'enc_w_ih_T': s * jax.random.normal(ks[1], (emb_size, 3 * hidden_size), f),
        'enc_w_hh_T': s * jax.random.normal(ks[2], (hidden_size, 3 * hidden_size), f),
        'enc_b_ih':   s * jax.random.normal(ks[3], (1, 3 * hidden_size), f),
        'enc_b_hh':   s * jax.random.normal(ks[4], (1, 3 * hidden_size), f),
        # nn.GRUCell (dec_w_ih_T only multiplies the always-zero decoder input;
        # kept for reference fidelity, not passed to the kernel).
        'dec_w_ih_T': s * jax.random.normal(ks[5], (emb_size, 3 * hidden_size), f),
        'dec_w_hh_T': s * jax.random.normal(ks[6], (hidden_size, 3 * hidden_size), f),
        'dec_b_ih':   s * jax.random.normal(ks[7], (1, 3 * hidden_size), f),
        'dec_b_hh':   s * jax.random.normal(ks[8], (1, 3 * hidden_size), f),
        # W1, W2: Linear(hidden, weight, bias=False), pre-transposed.
        'w1_T':       s * jax.random.normal(ks[9], (hidden_size, weight_size), f),
        'w2_T':       s * jax.random.normal(ks[10], (hidden_size, weight_size), f),
        # vt: Linear(weight, 1, bias=False) kept as a (1, W) row.
        'vt':         s * jax.random.normal(ks[11], (1, weight_size), f),
        # WL: Linear(hidden, 1, bias=False) kept as (H, 1).
        'wl':         s * jax.random.normal(ks[12], (hidden_size, 1), f),
    }


# ------------------------ pure-JAX reference (check) ------------------------

def reference_forward(tokens, params, decode_steps):
    x = jnp.take(params['emb'], tokens, axis=0)
    B, L, E = x.shape
    H = params['enc_w_hh_T'].shape[0]

    def gru(xt, h, wi, wh, bi, bh):
        gi = xt @ wi + bi
        gh = h @ wh + bh
        r = jax.nn.sigmoid(gi[:, :H] + gh[:, :H])
        z = jax.nn.sigmoid(gi[:, H:2 * H] + gh[:, H:2 * H])
        n = jnp.tanh(gi[:, 2 * H:] + r * gh[:, 2 * H:])
        return (1.0 - z) * n + z * h

    h = jnp.zeros((B, H), jnp.float32)
    encs = []
    for t in range(L):
        h = gru(x[:, t, :], h, params['enc_w_ih_T'], params['enc_w_hh_T'],
                params['enc_b_ih'], params['enc_b_hh'])
        encs.append(h)
    enc = jnp.stack(encs, axis=1)                      # (B, L, H)
    pred_L = (h @ params['wl'])[:, 0]
    blend1 = enc @ params['w1_T']                      # (B, L, W)

    hidden = jnp.zeros((B, H), jnp.float32)
    dec_x = jnp.zeros((B, E), jnp.float32)
    outs = []
    for _ in range(decode_steps):
        hidden = gru(dec_x, hidden, params['dec_w_ih_T'], params['dec_w_hh_T'],
                     params['dec_b_ih'], params['dec_b_hh'])
        blend2 = hidden @ params['w2_T']
        s = jnp.tanh(blend1 + blend2[:, None, :])
        scores = jnp.sum(s * params['vt'][0][None, None, :], axis=-1)
        outs.append(jax.nn.log_softmax(scores, axis=-1))
    return jnp.stack(outs, axis=1), pred_L


# --------------------------------- main -------------------------------------

if __name__ == "__main__":
    key = jax.random.PRNGKey(0)
    input_size, emb_size, weight_size, hidden_size = 16, 32, 32, 32
    B, L, T = 2, 8, 8                 # batch, source seq len, decode steps

    pkey, tkey = jax.random.split(key)
    params = init_params(pkey, input_size, emb_size, hidden_size, weight_size)
    tokens = jax.random.randint(tkey, (B, L), 0, input_size, dtype=jnp.int32)

    probs, pred_L = pointer_network_forward(tokens, params, T)
    jax.block_until_ready((probs, pred_L))

    ref_probs, ref_pred = reference_forward(tokens, params, T)
    np.testing.assert_allclose(np.asarray(probs), np.asarray(ref_probs),
                               atol=1e-4, rtol=1e-4)
    np.testing.assert_allclose(np.asarray(pred_L), np.asarray(ref_pred),
                               atol=1e-4, rtol=1e-4)
    print("KERNEL_OK")
</pallas_src>

<mosaic_0001>
module attributes {stable_mosaic.version = 11 : i64} {
  func.func @ptrnet_kernel(%arg0: memref<2x8x32xf32, #tpu.memory_space<vmem>>, %arg1: memref<32x96xf32, #tpu.memory_space<vmem>>, %arg2: memref<1x96xf32, #tpu.memory_space<vmem>>, %arg3: memref<1x32xf32, #tpu.memory_space<vmem>>, %arg4: memref<32x32xf32, #tpu.memory_space<vmem>>, %arg5: memref<32x32xf32, #tpu.memory_space<vmem>>, %arg6: memref<32x32xf32, #tpu.memory_space<vmem>>, %arg7: memref<1x32xf32, #tpu.memory_space<vmem>>, %arg8: memref<1x32xf32, #tpu.memory_space<vmem>>, %arg9: memref<1x32xf32, #tpu.memory_space<vmem>>, %arg10: memref<1x32xf32, #tpu.memory_space<vmem>>, %arg11: memref<32x32xf32, #tpu.memory_space<vmem>>, %arg12: memref<32x32xf32, #tpu.memory_space<vmem>>, %arg13: memref<32x32xf32, #tpu.memory_space<vmem>>, %arg14: memref<32x32xf32, #tpu.memory_space<vmem>>, %arg15: memref<32x32xf32, #tpu.memory_space<vmem>>, %arg16: memref<1x32xf32, #tpu.memory_space<vmem>>, %arg17: memref<32x1xf32, #tpu.memory_space<vmem>>, %arg18: memref<2x8x8xf32, #tpu.memory_space<vmem>>, %arg19: memref<2x1xf32, #tpu.memory_space<vmem>>) attributes {dimension_semantics = [], scalar_prefetch = 0 : i64, scratch_operands = 0 : i64, tpu.core_type = #tpu.core_type<tc>} {
    %c0 = arith.constant 0 : index
    %c0_0 = arith.constant 0 : index
    %c0_1 = arith.constant 0 : index
    %0 = vector.load %arg0[%c0, %c0_0, %c0_1] : memref<2x8x32xf32, #tpu.memory_space<vmem>>, vector<2x8x32xf32>
    %1 = vector.shape_cast %0 : vector<2x8x32xf32> to vector<16x32xf32>
    %c0_2 = arith.constant 0 : index
    %c0_3 = arith.constant 0 : index
    %2 = vector.load %arg1[%c0_2, %c0_3] : memref<32x96xf32, #tpu.memory_space<vmem>>, vector<32x96xf32>
    %cst = arith.constant dense<0.000000e+00> : vector<16x96xf32>
    %3 = tpu.matmul %1, %2, %cst {dimension_numbers = #tpu.dot_dimension_numbers<[1], [0], [0], [1], [0, 0, 1, 1], [], []>} : vector<16x32xf32>, vector<32x96xf32>, vector<16x96xf32> -> vector<16x96xf32>
    %c0_4 = arith.constant 0 : index
    %c0_5 = arith.constant 0 : index
    %4 = vector.load %arg2[%c0_4, %c0_5] : memref<1x96xf32, #tpu.memory_space<vmem>>, vector<1x96xf32>
    %5 = vector.broadcast %4 : vector<1x96xf32> to vector<16x96xf32>
    %6 = arith.addf %3, %5 : vector<16x96xf32>
    %7 = vector.shape_cast %6 : vector<16x96xf32> to vector<2x8x96xf32>
    %8 = vector.extract_strided_slice %7 {offsets = [0, 0, 0], sizes = [2, 8, 32], strides = [1, 1, 1]} : vector<2x8x96xf32> to vector<2x8x32xf32>
    %9 = vector.extract_strided_slice %7 {offsets = [0, 0, 32], sizes = [2, 8, 32], strides = [1, 1, 1]} : vector<2x8x96xf32> to vector<2x8x32xf32>
    %10 = vector.extract_strided_slice %7 {offsets = [0, 0, 64], sizes = [2, 8, 32], strides = [1, 1, 1]} : vector<2x8x96xf32> to vector<2x8x32xf32>
    %c0_6 = arith.constant 0 : index
    %c0_7 = arith.constant 0 : index
    %11 = vector.load %arg4[%c0_6, %c0_7] : memref<32x32xf32, #tpu.memory_space<vmem>>, vector<32x32xf32>
    %c0_8 = arith.constant 0 : index
    %c0_9 = arith.constant 0 : index
    %12 = vector.load %arg5[%c0_8, %c0_9] : memref<32x32xf32, #tpu.memory_space<vmem>>, vector<32x32xf32>
    %c0_10 = arith.constant 0 : index
    %c0_11 = arith.constant 0 : index
    %13 = vector.load %arg6[%c0_10, %c0_11] : memref<32x32xf32, #tpu.memory_space<vmem>>, vector<32x32xf32>
    %c0_12 = arith.constant 0 : index
    %c0_13 = arith.constant 0 : index
    %14 = vector.load %arg3[%c0_12, %c0_13] : memref<1x32xf32, #tpu.memory_space<vmem>>, vector<1x32xf32>
    %c0_14 = arith.constant 0 : index
    %c0_15 = arith.constant 0 : index
    %15 = vector.load %arg11[%c0_14, %c0_15] : memref<32x32xf32, #tpu.memory_space<vmem>>, vector<32x32xf32>
    %c0_16 = arith.constant 0 : index
    %c0_17 = arith.constant 0 : index
    %16 = vector.load %arg12[%c0_16, %c0_17] : memref<32x32xf32, #tpu.memory_space<vmem>>, vector<32x32xf32>
    %c0_18 = arith.constant 0 : index
    %c0_19 = arith.constant 0 : index
    %17 = vector.load %arg13[%c0_18, %c0_19] : memref<32x32xf32, #tpu.memory_space<vmem>>, vector<32x32xf32>
    %c0_20 = arith.constant 0 : index
    %c0_21 = arith.constant 0 : index
    %18 = vector.load %arg10[%c0_20, %c0_21] : memref<1x32xf32, #tpu.memory_space<vmem>>, vector<1x32xf32>
    %c0_22 = arith.constant 0 : index
    %c0_23 = arith.constant 0 : index
    %19 = vector.load %arg7[%c0_22, %c0_23] : memref<1x32xf32, #tpu.memory_space<vmem>>, vector<1x32xf32>
    %c0_24 = arith.constant 0 : index
    %c0_25 = arith.constant 0 : index
    %20 = vector.load %arg8[%c0_24, %c0_25] : memref<1x32xf32, #tpu.memory_space<vmem>>, vector<1x32xf32>
    %c0_26 = arith.constant 0 : index
    %c0_27 = arith.constant 0 : index
    %21 = vector.load %arg9[%c0_26, %c0_27] : memref<1x32xf32, #tpu.memory_space<vmem>>, vector<1x32xf32>
    %22 = tpu.iota {dimensions = array<i32: 0>} : vector<8x1xi32>
    %23 = tpu.iota {dimensions = array<i32: 0>} : vector<8x1xi32>
    %cst_28 = arith.constant 0.000000e+00 : f32
    %24 = vector.broadcast %cst_28 : f32 to vector<2x32xf32>
    %cst_29 = arith.constant 0.000000e+00 : f32
    %25 = vector.broadcast %cst_29 : f32 to vector<2x32xf32>
    %cst_30 = arith.constant 0.000000e+00 : f32
    %26 = vector.broadcast %cst_30 : f32 to vector<2x8x32xf32>
    %cst_31 = arith.constant 0.000000e+00 : f32
    %27 = vector.broadcast %cst_31 : f32 to vector<2x8x32xf32>
    %cst_32 = arith.constant dense<0.000000e+00> : vector<2x32xf32>
    %28 = tpu.matmul %24, %11, %cst_32 {dimension_numbers = #tpu.dot_dimension_numbers<[1], [0], [0], [1], [0, 0, 1, 1], [], []>} : vector<2x32xf32>, vector<32x32xf32>, vector<2x32xf32> -> vector<2x32xf32>
    %cst_33 = arith.constant dense<0.000000e+00> : vector<2x32xf32>
    %29 = tpu.matmul %24, %12, %cst_33 {dimension_numbers = #tpu.dot_dimension_numbers<[1], [0], [0], [1], [0, 0, 1, 1], [], []>} : vector<2x32xf32>, vector<32x32xf32>, vector<2x32xf32> -> vector<2x32xf32>
    %cst_34 = arith.constant dense<0.000000e+00> : vector<2x32xf32>
    %30 = tpu.matmul %24, %13, %cst_34 {dimension_numbers = #tpu.dot_dimension_numbers<[1], [0], [0], [1], [0, 0, 1, 1], [], []>} : vector<2x32xf32>, vector<32x32xf32>, vector<2x32xf32> -> vector<2x32xf32>
    %31 = vector.broadcast %14 : vector<1x32xf32> to vector<2x32xf32>
    %32 = arith.addf %30, %31 : vector<2x32xf32>
    %33 = vector.extract_strided_slice %8 {offsets = [0, 0, 0], sizes = [2, 1, 32], strides = [1, 1, 1]} : vector<2x8x32xf32> to vector<2x1x32xf32>
    %34 = vector.shape_cast %33 : vector<2x1x32xf32> to vector<2x32xf32>
    %35 = arith.addf %34, %28 : vector<2x32xf32>
    %36 = arith.negf %35 : vector<2x32xf32>
    %37 = math.exp %36 : vector<2x32xf32>
    %cst_35 = arith.constant 1.000000e+00 : f32
    %38 = vector.broadcast %cst_35 : f32 to vector<2x32xf32>
    %39 = arith.addf %38, %37 : vector<2x32xf32>
    %40 = arith.divf %38, %39 : vector<2x32xf32>
    %41 = vector.extract_strided_slice %9 {offsets = [0, 0, 0], sizes = [2, 1, 32], strides = [1, 1, 1]} : vector<2x8x32xf32> to vector<2x1x32xf32>
    %42 = vector.shape_cast %41 : vector<2x1x32xf32> to vector<2x32xf32>
    %43 = arith.addf %42, %29 : vector<2x32xf32>
    %44 = arith.negf %43 : vector<2x32xf32>
    %45 = math.exp %44 : vector<2x32xf32>
    %cst_36 = arith.constant 1.000000e+00 : f32
    %46 = vector.broadcast %cst_36 : f32 to vector<2x32xf32>
    %47 = arith.addf %46, %45 : vector<2x32xf32>
    %48 = arith.divf %46, %47 : vector<2x32xf32>
    %49 = vector.extract_strided_slice %10 {offsets = [0, 0, 0], sizes = [2, 1, 32], strides = [1, 1, 1]} : vector<2x8x32xf32> to vector<2x1x32xf32>
    %50 = vector.shape_cast %49 : vector<2x1x32xf32> to vector<2x32xf32>
    %51 = arith.mulf %40, %32 : vector<2x32xf32>
    %52 = arith.addf %50, %51 : vector<2x32xf32>
    %53 = math.tanh %52 : vector<2x32xf32>
    %cst_37 = arith.constant 1.000000e+00 : f32
    %54 = vector.broadcast %cst_37 : f32 to vector<2x32xf32>
    %55 = arith.subf %54, %48 : vector<2x32xf32>
    %56 = arith.mulf %55, %53 : vector<2x32xf32>
    %57 = arith.mulf %48, %24 : vector<2x32xf32>
    %58 = arith.addf %56, %57 : vector<2x32xf32>
    %cst_38 = arith.constant dense<0.000000e+00> : vector<2x32xf32>
    %59 = tpu.matmul %25, %15, %cst_38 {dimension_numbers = #tpu.dot_dimension_numbers<[1], [0], [0], [1], [0, 0, 1, 1], [], []>} : vector<2x32xf32>, vector<32x32xf32>, vector<2x32xf32> -> vector<2x32xf32>
    %cst_39 = arith.constant dense<0.000000e+00> : vector<2x32xf32>
    %60 = tpu.matmul %25, %16, %cst_39 {dimension_numbers = #tpu.dot_dimension_numbers<[1], [0], [0], [1], [0, 0, 1, 1], [], []>} : vector<2x32xf32>, vector<32x32xf32>, vector<2x32xf32> -> vector<2x32xf32>
    %cst_40 = arith.constant dense<0.000000e+00> : vector<2x32xf32>
    %61 = tpu.matmul %25, %17, %cst_40 {dimension_numbers = #tpu.dot_dimension_numbers<[1], [0], [0], [1], [0, 0, 1, 1], [], []>} : vector<2x32xf32>, vector<32x32xf32>, vector<2x32xf32> -> vector<2x32xf32>
    %62 = vector.broadcast %18 : vector<1x32xf32> to vector<2x32xf32>
    %63 = arith.addf %61, %62 : vector<2x32xf32>
    %64 = vector.broadcast %19 : vector<1x32xf32> to vector<2x32xf32>
    %65 = arith.addf %64, %59 : vector<2x32xf32>
    %66 = arith.negf %65 : vector<2x32xf32>
    %67 = math.exp %66 : vector<2x32xf32>
    %cst_41 = arith.constant 1.000000e+00 : f32
    %68 = vector.broadcast %cst_41 : f32 to vector<2x32xf32>
    %69 = arith.addf %68, %67 : vector<2x32xf32>
    %70 = arith.divf %68, %69 : vector<2x32xf32>
    %71 = vector.broadcast %20 : vector<1x32xf32> to vector<2x32xf32>
    %72 = arith.addf %71, %60 : vector<2x32xf32>
    %73 = arith.negf %72 : vector<2x32xf32>
    %74 = math.exp %73 : vector<2x32xf32>
    %cst_42 = arith.constant 1.000000e+00 : f32
    %75 = vector.broadcast %cst_42 : f32 to vector<2x32xf32>
    %76 = arith.addf %75, %74 : vector<2x32xf32>
    %77 = arith.divf %75, %76 : vector<2x32xf32>
    %78 = arith.mulf %70, %63 : vector<2x32xf32>
    %79 = vector.broadcast %21 : vector<1x32xf32> to vector<2x32xf32>
    %80 = arith.addf %79, %78 : vector<2x32xf32>
    %81 = math.tanh %80 : vector<2x32xf32>
    %cst_43 = arith.constant 1.000000e+00 : f32
    %82 = vector.broadcast %cst_43 : f32 to vector<2x32xf32>
    %83 = arith.subf %82, %77 : vector<2x32xf32>
    %84 = arith.mulf %83, %81 : vector<2x32xf32>
    %85 = arith.mulf %77, %25 : vector<2x32xf32>
    %86 = arith.addf %84, %85 : vector<2x32xf32>
    %87 = vector.shape_cast %58 : vector<2x32xf32> to vector<2x1x32xf32>
    %c0_i32 = arith.constant 0 : i32
    %88 = vector.broadcast %c0_i32 : i32 to vector<8x1xi32>
    %89 = arith.cmpi eq, %22, %88 : vector<8x1xi32>
    %90 = arith.extui %89 : vector<8x1xi1> to vector<8x1xi32>
    %91 = arith.sitofp %90 : vector<8x1xi32> to vector<8x1xf32>
    %92 = vector.shape_cast %91 : vector<8x1xf32> to vector<1x8x1xf32>
    %93 = vector.broadcast %87 : vector<2x1x32xf32> to vector<2x8x32xf32>
    %94 = vector.broadcast %92 : vector<1x8x1xf32> to vector<2x8x32xf32>
    %95 = arith.mulf %93, %94 : vector<2x8x32xf32>
    %96 = arith.addf %26, %95 : vector<2x8x32xf32>
    %97 = vector.shape_cast %86 : vector<2x32xf32> to vector<2x1x32xf32>
    %c0_i32_44 = arith.constant 0 : i32
    %98 = vector.broadcast %c0_i32_44 : i32 to vector<8x1xi32>
    %99 = arith.cmpi eq, %23, %98 : vector<8x1xi32>
    %100 = arith.extui %99 : vector<8x1xi1> to vector<8x1xi32>
    %101 = arith.sitofp %100 : vector<8x1xi32> to vector<8x1xf32>
    %102 = vector.shape_cast %101 : vector<8x1xf32> to vector<1x8x1xf32>
    %103 = vector.broadcast %97 : vector<2x1x32xf32> to vector<2x8x32xf32>
    %104 = vector.broadcast %102 : vector<1x8x1xf32> to vector<2x8x32xf32>
    %105 = arith.mulf %103, %104 : vector<2x8x32xf32>
    %106 = arith.addf %27, %105 : vector<2x8x32xf32>
    %cst_45 = arith.constant dense<0.000000e+00> : vector<2x32xf32>
    %107 = tpu.matmul %58, %11, %cst_45 {dimension_numbers = #tpu.dot_dimension_numbers<[1], [0], [0], [1], [0, 0, 1, 1], [], []>} : vector<2x32xf32>, vector<32x32xf32>, vector<2x32xf32> -> vector<2x32xf32>
    %cst_46 = arith.constant dense<0.000000e+00> : vector<2x32xf32>
    %108 = tpu.matmul %58, %12, %cst_46 {dimension_numbers = #tpu.dot_dimension_numbers<[1], [0], [0], [1], [0, 0, 1, 1], [], []>} : vector<2x32xf32>, vector<32x32xf32>, vector<2x32xf32> -> vector<2x32xf32>
    %cst_47 = arith.constant dense<0.000000e+00> : vector<2x32xf32>
    %109 = tpu.matmul %58, %13, %cst_47 {dimension_numbers = #tpu.dot_dimension_numbers<[1], [0], [0], [1], [0, 0, 1, 1], [], []>} : vector<2x32xf32>, vector<32x32xf32>, vector<2x32xf32> -> vector<2x32xf32>
    %110 = vector.broadcast %14 : vector<1x32xf32> to vector<2x32xf32>
    %111 = arith.addf %109, %110 : vector<2x32xf32>
    %112 = vector.extract_strided_slice %8 {offsets = [0, 1, 0], sizes = [2, 1, 32], strides = [1, 1, 1]} : vector<2x8x32xf32> to vector<2x1x32xf32>
    %113 = vector.shape_cast %112 : vector<2x1x32xf32> to vector<2x32xf32>
    %114 = arith.addf %113, %107 : vector<2x32xf32>
    %115 = arith.negf %114 : vector<2x32xf32>
    %116 = math.exp %115 : vector<2x32xf32>
    %cst_48 = arith.constant 1.000000e+00 : f32
    %117 = vector.broadcast %cst_48 : f32 to vector<2x32xf32>
    %118 = arith.addf %117, %116 : vector<2x32xf32>
    %119 = arith.divf %117, %118 : vector<2x32xf32>
    %120 = vector.extract_strided_slice %9 {offsets = [0, 1, 0], sizes = [2, 1, 32], strides = [1, 1, 1]} : vector<2x8x32xf32> to vector<2x1x32xf32>
    %121 = vector.shape_cast %120 : vector<2x1x32xf32> to vector<2x32xf32>
    %122 = arith.addf %121, %108 : vector<2x32xf32>
    %123 = arith.negf %122 : vector<2x32xf32>
    %124 = math.exp %123 : vector<2x32xf32>
    %cst_49 = arith.constant 1.000000e+00 : f32
    %125 = vector.broadcast %cst_49 : f32 to vector<2x32xf32>
    %126 = arith.addf %125, %124 : vector<2x32xf32>
    %127 = arith.divf %125, %126 : vector<2x32xf32>
    %128 = vector.extract_strided_slice %10 {offsets = [0, 1, 0], sizes = [2, 1, 32], strides = [1, 1, 1]} : vector<2x8x32xf32> to vector<2x1x32xf32>
    %129 = vector.shape_cast %128 : vector<2x1x32xf32> to vector<2x32xf32>
    %130 = arith.mulf %119, %111 : vector<2x32xf32>
    %131 = arith.addf %129, %130 : vector<2x32xf32>
    %132 = math.tanh %131 : vector<2x32xf32>
    %cst_50 = arith.constant 1.000000e+00 : f32
    %133 = vector.broadcast %cst_50 : f32 to vector<2x32xf32>
    %134 = arith.subf %133, %127 : vector<2x32xf32>
    %135 = arith.mulf %134, %132 : vector<2x32xf32>
    %136 = arith.mulf %127, %58 : vector<2x32xf32>
    %137 = arith.addf %135, %136 : vector<2x32xf32>
    %cst_51 = arith.constant dense<0.000000e+00> : vector<2x32xf32>
    %138 = tpu.matmul %86, %15, %cst_51 {dimension_numbers = #tpu.dot_dimension_numbers<[1], [0], [0], [1], [0, 0, 1, 1], [], []>} : vector<2x32xf32>, vector<32x32xf32>, vector<2x32xf32> -> vector<2x32xf32>
    %cst_52 = arith.constant dense<0.000000e+00> : vector<2x32xf32>
    %139 = tpu.matmul %86, %16, %cst_52 {dimension_numbers = #tpu.dot_dimension_numbers<[1], [0], [0], [1], [0, 0, 1, 1], [], []>} : vector<2x32xf32>, vector<32x32xf32>, vector<2x32xf32> -> vector<2x32xf32>
    %cst_53 = arith.constant dense<0.000000e+00> : vector<2x32xf32>
    %140 = tpu.matmul %86, %17, %cst_53 {dimension_numbers = #tpu.dot_dimension_numbers<[1], [0], [0], [1], [0, 0, 1, 1], [], []>} : vector<2x32xf32>, vector<32x32xf32>, vector<2x32xf32> -> vector<2x32xf32>
    %141 = vector.broadcast %18 : vector<1x32xf32> to vector<2x32xf32>
    %142 = arith.addf %140, %141 : vector<2x32xf32>
    %143 = vector.broadcast %19 : vector<1x32xf32> to vector<2x32xf32>
    %144 = arith.addf %143, %138 : vector<2x32xf32>
    %145 = arith.negf %144 : vector<2x32xf32>
    %146 = math.exp %145 : vector<2x32xf32>
    %cst_54 = arith.constant 1.000000e+00 : f32
    %147 = vector.broadcast %cst_54 : f32 to vector<2x32xf32>
    %148 = arith.addf %147, %146 : vector<2x32xf32>
    %149 = arith.divf %147, %148 : vector<2x32xf32>
    %150 = vector.broadcast %20 : vector<1x32xf32> to vector<2x32xf32>
    %151 = arith.addf %150, %139 : vector<2x32xf32>
    %152 = arith.negf %151 : vector<2x32xf32>
    %153 = math.exp %152 : vector<2x32xf32>
    %cst_55 = arith.constant 1.000000e+00 : f32
    %154 = vector.broadcast %cst_55 : f32 to vector<2x32xf32>
    %155 = arith.addf %154, %153 : vector<2x32xf32>
    %156 = arith.divf %154, %155 : vector<2x32xf32>
    %157 = arith.mulf %149, %142 : vector<2x32xf32>
    %158 = vector.broadcast %21 : vector<1x32xf32> to vector<2x32xf32>
    %159 = arith.addf %158, %157 : vector<2x32xf32>
    %160 = math.tanh %159 : vector<2x32xf32>
    %cst_56 = arith.constant 1.000000e+00 : f32
    %161 = vector.broadcast %cst_56 : f32 to vector<2x32xf32>
    %162 = arith.subf %161, %156 : vector<2x32xf32>
    %163 = arith.mulf %162, %160 : vector<2x32xf32>
    %164 = arith.mulf %156, %86 : vector<2x32xf32>
    %165 = arith.addf %163, %164 : vector<2x32xf32>
    %166 = vector.shape_cast %137 : vector<2x32xf32> to vector<2x1x32xf32>
    %c1_i32 = arith.constant 1 : i32
    %167 = vector.broadcast %c1_i32 : i32 to vector<8x1xi32>
    %168 = arith.cmpi eq, %22, %167 : vector<8x1xi32>
    %169 = arith.extui %168 : vector<8x1xi1> to vector<8x1xi32>
    %170 = arith.sitofp %169 : vector<8x1xi32> to vector<8x1xf32>
    %171 = vector.shape_cast %170 : vector<8x1xf32> to vector<1x8x1xf32>
    %172 = vector.broadcast %166 : vector<2x1x32xf32> to vector<2x8x32xf32>
    %173 = vector.broadcast %171 : vector<1x8x1xf32> to vector<2x8x32xf32>
    %174 = arith.mulf %172, %173 : vector<2x8x32xf32>
    %175 = arith.addf %96, %174 : vector<2x8x32xf32>
    %176 = vector.shape_cast %165 : vector<2x32xf32> to vector<2x1x32xf32>
    %c1_i32_57 = arith.constant 1 : i32
    %177 = vector.broadcast %c1_i32_57 : i32 to vector<8x1xi32>
    %178 = arith.cmpi eq, %23, %177 : vector<8x1xi32>
    %179 = arith.extui %178 : vector<8x1xi1> to vector<8x1xi32>
    %180 = arith.sitofp %179 : vector<8x1xi32> to vector<8x1xf32>
    %181 = vector.shape_cast %180 : vector<8x1xf32> to vector<1x8x1xf32>
    %182 = vector.broadcast %176 : vector<2x1x32xf32> to vector<2x8x32xf32>
    %183 = vector.broadcast %181 : vector<1x8x1xf32> to vector<2x8x32xf32>
    %184 = arith.mulf %182, %183 : vector<2x8x32xf32>
    %185 = arith.addf %106, %184 : vector<2x8x32xf32>
    %cst_58 = arith.constant dense<0.000000e+00> : vector<2x32xf32>
    %186 = tpu.matmul %137, %11, %cst_58 {dimension_numbers = #tpu.dot_dimension_numbers<[1], [0], [0], [1], [0, 0, 1, 1], [], []>} : vector<2x32xf32>, vector<32x32xf32>, vector<2x32xf32> -> vector<2x32xf32>
    %cst_59 = arith.constant dense<0.000000e+00> : vector<2x32xf32>
    %187 = tpu.matmul %137, %12, %cst_59 {dimension_numbers = #tpu.dot_dimension_numbers<[1], [0], [0], [1], [0, 0, 1, 1], [], []>} : vector<2x32xf32>, vector<32x32xf32>, vector<2x32xf32> -> vector<2x32xf32>
    %cst_60 = arith.constant dense<0.000000e+00> : vector<2x32xf32>
    %188 = tpu.matmul %137, %13, %cst_60 {dimension_numbers = #tpu.dot_dimension_numbers<[1], [0], [0], [1], [0, 0, 1, 1], [], []>} : vector<2x32xf32>, vector<32x32xf32>, vector<2x32xf32> -> vector<2x32xf32>
    %189 = vector.broadcast %14 : vector<1x32xf32> to vector<2x32xf32>
    %190 = arith.addf %188, %189 : vector<2x32xf32>
    %191 = vector.extract_strided_slice %8 {offsets = [0, 2, 0], sizes = [2, 1, 32], strides = [1, 1, 1]} : vector<2x8x32xf32> to vector<2x1x32xf32>
    %192 = vector.shape_cast %191 : vector<2x1x32xf32> to vector<2x32xf32>
    %193 = arith.addf %192, %186 : vector<2x32xf32>
    %194 = arith.negf %193 : vector<2x32xf32>
    %195 = math.exp %194 : vector<2x32xf32>
    %cst_61 = arith.constant 1.000000e+00 : f32
    %196 = vector.broadcast %cst_61 : f32 to vector<2x32xf32>
    %197 = arith.addf %196, %195 : vector<2x32xf32>
    %198 = arith.divf %196, %197 : vector<2x32xf32>
    %199 = vector.extract_strided_slice %9 {offsets = [0, 2, 0], sizes = [2, 1, 32], strides = [1, 1, 1]} : vector<2x8x32xf32> to vector<2x1x32xf32>
    %200 = vector.shape_cast %199 : vector<2x1x32xf32> to vector<2x32xf32>
    %201 = arith.addf %200, %187 : vector<2x32xf32>
    %202 = arith.negf %201 : vector<2x32xf32>
    %203 = math.exp %202 : vector<2x32xf32>
    %cst_62 = arith.constant 1.000000e+00 : f32
    %204 = vector.broadcast %cst_62 : f32 to vector<2x32xf32>
    %205 = arith.addf %204, %203 : vector<2x32xf32>
    %206 = arith.divf %204, %205 : vector<2x32xf32>
    %207 = vector.extract_strided_slice %10 {offsets = [0, 2, 0], sizes = [2, 1, 32], strides = [1, 1, 1]} : vector<2x8x32xf32> to vector<2x1x32xf32>
    %208 = vector.shape_cast %207 : vector<2x1x32xf32> to vector<2x32xf32>
    %209 = arith.mulf %198, %190 : vector<2x32xf32>
    %210 = arith.addf %208, %209 : vector<2x32xf32>
    %211 = math.tanh %210 : vector<2x32xf32>
    %cst_63 = arith.constant 1.000000e+00 : f32
    %212 = vector.broadcast %cst_63 : f32 to vector<2x32xf32>
    %213 = arith.subf %212, %206 : vector<2x32xf32>
    %214 = arith.mulf %213, %211 : vector<2x32xf32>
    %215 = arith.mulf %206, %137 : vector<2x32xf32>
    %216 = arith.addf %214, %215 : vector<2x32xf32>
    %cst_64 = arith.constant dense<0.000000e+00> : vector<2x32xf32>
    %217 = tpu.matmul %165, %15, %cst_64 {dimension_numbers = #tpu.dot_dimension_numbers<[1], [0], [0], [1], [0, 0, 1, 1], [], []>} : vector<2x32xf32>, vector<32x32xf32>, vector<2x32xf32> -> vector<2x32xf32>
    %cst_65 = arith.constant dense<0.000000e+00> : vector<2x32xf32>
    %218 = tpu.matmul %165, %16, %cst_65 {dimension_numbers = #tpu.dot_dimension_numbers<[1], [0], [0], [1], [0, 0, 1, 1], [], []>} : vector<2x32xf32>, vector<32x32xf32>, vector<2x32xf32> -> vector<2x32xf32>
    %cst_66 = arith.constant dense<0.000000e+00> : vector<2x32xf32>
    %219 = tpu.matmul %165, %17, %cst_66 {dimension_numbers = #tpu.dot_dimension_numbers<[1], [0], [0], [1], [0, 0, 1, 1], [], []>} : vector<2x32xf32>, vector<32x32xf32>, vector<2x32xf32> -> vector<2x32xf32>
    %220 = vector.broadcast %18 : vector<1x32xf32> to vector<2x32xf32>
    %221 = arith.addf %219, %220 : vector<2x32xf32>
    %222 = vector.broadcast %19 : vector<1x32xf32> to vector<2x32xf32>
    %223 = arith.addf %222, %217 : vector<2x32xf32>
    %224 = arith.negf %223 : vector<2x32xf32>
    %225 = math.exp %224 : vector<2x32xf32>
    %cst_67 = arith.constant 1.000000e+00 : f32
    %226 = vector.broadcast %cst_67 : f32 to vector<2x32xf32>
    %227 = arith.addf %226, %225 : vector<2x32xf32>
    %228 = arith.divf %226, %227 : vector<2x32xf32>
    %229 = vector.broadcast %20 : vector<1x32xf32> to vector<2x32xf32>
    %230 = arith.addf %229, %218 : vector<2x32xf32>
    %231 = arith.negf %230 : vector<2x32xf32>
    %232 = math.exp %231 : vector<2x32xf32>
    %cst_68 = arith.constant 1.000000e+00 : f32
    %233 = vector.broadcast %cst_68 : f32 to vector<2x32xf32>
    %234 = arith.addf %233, %232 : vector<2x32xf32>
    %235 = arith.divf %233, %234 : vector<2x32xf32>
    %236 = arith.mulf %228, %221 : vector<2x32xf32>
    %237 = vector.broadcast %21 : vector<1x32xf32> to vector<2x32xf32>
    %238 = arith.addf %237, %236 : vector<2x32xf32>
    %239 = math.tanh %238 : vector<2x32xf32>
    %cst_69 = arith.constant 1.000000e+00 : f32
    %240 = vector.broadcast %cst_69 : f32 to vector<2x32xf32>
    %241 = arith.subf %240, %235 : vector<2x32xf32>
    %242 = arith.mulf %241, %239 : vector<2x32xf32>
    %243 = arith.mulf %235, %165 : vector<2x32xf32>
    %244 = arith.addf %242, %243 : vector<2x32xf32>
    %245 = vector.shape_cast %216 : vector<2x32xf32> to vector<2x1x32xf32>
    %c2_i32 = arith.constant 2 : i32
    %246 = vector.broadcast %c2_i32 : i32 to vector<8x1xi32>
    %247 = arith.cmpi eq, %22, %246 : vector<8x1xi32>
    %248 = arith.extui %247 : vector<8x1xi1> to vector<8x1xi32>
    %249 = arith.sitofp %248 : vector<8x1xi32> to vector<8x1xf32>
    %250 = vector.shape_cast %249 : vector<8x1xf32> to vector<1x8x1xf32>
    %251 = vector.broadcast %245 : vector<2x1x32xf32> to vector<2x8x32xf32>
    %252 = vector.broadcast %250 : vector<1x8x1xf32> to vector<2x8x32xf32>
    %253 = arith.mulf %251, %252 : vector<2x8x32xf32>
    %254 = arith.addf %175, %253 : vector<2x8x32xf32>
    %255 = vector.shape_cast %244 : vector<2x32xf32> to vector<2x1x32xf32>
    %c2_i32_70 = arith.constant 2 : i32
    %256 = vector.broadcast %c2_i32_70 : i32 to vector<8x1xi32>
    %257 = arith.cmpi eq, %23, %256 : vector<8x1xi32>
    %258 = arith.extui %257 : vector<8x1xi1> to vector<8x1xi32>
    %259 = arith.sitofp %258 : vector<8x1xi32> to vector<8x1xf32>
    %260 = vector.shape_cast %259 : vector<8x1xf32> to vector<1x8x1xf32>
    %261 = vector.broadcast %255 : vector<2x1x32xf32> to vector<2x8x32xf32>
    %262 = vector.broadcast %260 : vector<1x8x1xf32> to vector<2x8x32xf32>
    %263 = arith.mulf %261, %262 : vector<2x8x32xf32>
    %264 = arith.addf %185, %263 : vector<2x8x32xf32>
    %cst_71 = arith.constant dense<0.000000e+00> : vector<2x32xf32>
    %265 = tpu.matmul %216, %11, %cst_71 {dimension_numbers = #tpu.dot_dimension_numbers<[1], [0], [0], [1], [0, 0, 1, 1], [], []>} : vector<2x32xf32>, vector<32x32xf32>, vector<2x32xf32> -> vector<2x32xf32>
    %cst_72 = arith.constant dense<0.000000e+00> : vector<2x32xf32>
    %266 = tpu.matmul %216, %12, %cst_72 {dimension_numbers = #tpu.dot_dimension_numbers<[1], [0], [0], [1], [0, 0, 1, 1], [], []>} : vector<2x32xf32>, vector<32x32xf32>, vector<2x32xf32> -> vector<2x32xf32>
    %cst_73 = arith.constant dense<0.000000e+00> : vector<2x32xf32>
    %267 = tpu.matmul %216, %13, %cst_73 {dimension_numbers = #tpu.dot_dimension_numbers<[1], [0], [0], [1], [0, 0, 1, 1], [], []>} : vector<2x32xf32>, vector<32x32xf32>, vector<2x32xf32> -> vector<2x32xf32>
    %268 = vector.broadcast %14 : vector<1x32xf32> to vector<2x32xf32>
    %269 = arith.addf %267, %268 : vector<2x32xf32>
    %270 = vector.extract_strided_slice %8 {offsets = [0, 3, 0], sizes = [2, 1, 32], strides = [1, 1, 1]} : vector<2x8x32xf32> to vector<2x1x32xf32>
    %271 = vector.shape_cast %270 : vector<2x1x32xf32> to vector<2x32xf32>
    %272 = arith.addf %271, %265 : vector<2x32xf32>
    %273 = arith.negf %272 : vector<2x32xf32>
    %274 = math.exp %273 : vector<2x32xf32>
    %cst_74 = arith.constant 1.000000e+00 : f32
    %275 = vector.broadcast %cst_74 : f32 to vector<2x32xf32>
    %276 = arith.addf %275, %274 : vector<2x32xf32>
    %277 = arith.divf %275, %276 : vector<2x32xf32>
    %278 = vector.extract_strided_slice %9 {offsets = [0, 3, 0], sizes = [2, 1, 32], strides = [1, 1, 1]} : vector<2x8x32xf32> to vector<2x1x32xf32>
    %279 = vector.shape_cast %278 : vector<2x1x32xf32> to vector<2x32xf32>
    %280 = arith.addf %279, %266 : vector<2x32xf32>
    %281 = arith.negf %280 : vector<2x32xf32>
    %282 = math.exp %281 : vector<2x32xf32>
    %cst_75 = arith.constant 1.000000e+00 : f32
    %283 = vector.broadcast %cst_75 : f32 to vector<2x32xf32>
    %284 = arith.addf %283, %282 : vector<2x32xf32>
    %285 = arith.divf %283, %284 : vector<2x32xf32>
    %286 = vector.extract_strided_slice %10 {offsets = [0, 3, 0], sizes = [2, 1, 32], strides = [1, 1, 1]} : vector<2x8x32xf32> to vector<2x1x32xf32>
    %287 = vector.shape_cast %286 : vector<2x1x32xf32> to vector<2x32xf32>
    %288 = arith.mulf %277, %269 : vector<2x32xf32>
    %289 = arith.addf %287, %288 : vector<2x32xf32>
    %290 = math.tanh %289 : vector<2x32xf32>
    %cst_76 = arith.constant 1.000000e+00 : f32
    %291 = vector.broadcast %cst_76 : f32 to vector<2x32xf32>
    %292 = arith.subf %291, %285 : vector<2x32xf32>
    %293 = arith.mulf %292, %290 : vector<2x32xf32>
    %294 = arith.mulf %285, %216 : vector<2x32xf32>
    %295 = arith.addf %293, %294 : vector<2x32xf32>
    %cst_77 = arith.constant dense<0.000000e+00> : vector<2x32xf32>
    %296 = tpu.matmul %244, %15, %cst_77 {dimension_numbers = #tpu.dot_dimension_numbers<[1], [0], [0], [1], [0, 0, 1, 1], [], []>} : vector<2x32xf32>, vector<32x32xf32>, vector<2x32xf32> -> vector<2x32xf32>
    %cst_78 = arith.constant dense<0.000000e+00> : vector<2x32xf32>
    %297 = tpu.matmul %244, %16, %cst_78 {dimension_numbers = #tpu.dot_dimension_numbers<[1], [0], [0], [1], [0, 0, 1, 1], [], []>} : vector<2x32xf32>, vector<32x32xf32>, vector<2x32xf32> -> vector<2x32xf32>
    %cst_79 = arith.constant dense<0.000000e+00> : vector<2x32xf32>
    %298 = tpu.matmul %244, %17, %cst_79 {dimension_numbers = #tpu.dot_dimension_numbers<[1], [0], [0], [1], [0, 0, 1, 1], [], []>} : vector<2x32xf32>, vector<32x32xf32>, vector<2x32xf32> -> vector<2x32xf32>
    %299 = vector.broadcast %18 : vector<1x32xf32> to vector<2x32xf32>
    %300 = arith.addf %298, %299 : vector<2x32xf32>
    %301 = vector.broadcast %19 : vector<1x32xf32> to vector<2x32xf32>
    %302 = arith.addf %301, %296 : vector<2x32xf32>
    %303 = arith.negf %302 : vector<2x32xf32>
    %304 = math.exp %303 : vector<2x32xf32>
    %cst_80 = arith.constant 1.000000e+00 : f32
    %305 = vector.broadcast %cst_80 : f32 to vector<2x32xf32>
    %306 = arith.addf %305, %304 : vector<2x32xf32>
    %307 = arith.divf %305, %306 : vector<2x32xf32>
    %308 = vector.broadcast %20 : vector<1x32xf32> to vector<2x32xf32>
    %309 = arith.addf %308, %297 : vector<2x32xf32>
    %310 = arith.negf %309 : vector<2x32xf32>
    %311 = math.exp %310 : vector<2x32xf32>
    %cst_81 = arith.constant 1.000000e+00 : f32
    %312 = vector.broadcast %cst_81 : f32 to vector<2x32xf32>
    %313 = arith.addf %312, %311 : vector<2x32xf32>
    %314 = arith.divf %312, %313 : vector<2x32xf32>
    %315 = arith.mulf %307, %300 : vector<2x32xf32>
    %316 = vector.broadcast %21 : vector<1x32xf32> to vector<2x32xf32>
    %317 = arith.addf %316, %315 : vector<2x32xf32>
    %318 = math.tanh %317 : vector<2x32xf32>
    %cst_82 = arith.constant 1.000000e+00 : f32
    %319 = vector.broadcast %cst_82 : f32 to vector<2x32xf32>
    %320 = arith.subf %319, %314 : vector<2x32xf32>
    %321 = arith.mulf %320, %318 : vector<2x32xf32>
    %322 = arith.mulf %314, %244 : vector<2x32xf32>
    %323 = arith.addf %321, %322 : vector<2x32xf32>
    %324 = vector.shape_cast %295 : vector<2x32xf32> to vector<2x1x32xf32>
    %c3_i32 = arith.constant 3 : i32
    %325 = vector.broadcast %c3_i32 : i32 to vector<8x1xi32>
    %326 = arith.cmpi eq, %22, %325 : vector<8x1xi32>
    %327 = arith.extui %326 : vector<8x1xi1> to vector<8x1xi32>
    %328 = arith.sitofp %327 : vector<8x1xi32> to vector<8x1xf32>
    %329 = vector.shape_cast %328 : vector<8x1xf32> to vector<1x8x1xf32>
    %330 = vector.broadcast %324 : vector<2x1x32xf32> to vector<2x8x32xf32>
    %331 = vector.broadcast %329 : vector<1x8x1xf32> to vector<2x8x32xf32>
    %332 = arith.mulf %330, %331 : vector<2x8x32xf32>
    %333 = arith.addf %254, %332 : vector<2x8x32xf32>
    %334 = vector.shape_cast %323 : vector<2x32xf32> to vector<2x1x32xf32>
    %c3_i32_83 = arith.constant 3 : i32
    %335 = vector.broadcast %c3_i32_83 : i32 to vector<8x1xi32>
    %336 = arith.cmpi eq, %23, %335 : vector<8x1xi32>
    %337 = arith.extui %336 : vector<8x1xi1> to vector<8x1xi32>
    %338 = arith.sitofp %337 : vector<8x1xi32> to vector<8x1xf32>
    %339 = vector.shape_cast %338 : vector<8x1xf32> to vector<1x8x1xf32>
    %340 = vector.broadcast %334 : vector<2x1x32xf32> to vector<2x8x32xf32>
    %341 = vector.broadcast %339 : vector<1x8x1xf32> to vector<2x8x32xf32>
    %342 = arith.mulf %340, %341 : vector<2x8x32xf32>
    %343 = arith.addf %264, %342 : vector<2x8x32xf32>
    %cst_84 = arith.constant dense<0.000000e+00> : vector<2x32xf32>
    %344 = tpu.matmul %295, %11, %cst_84 {dimension_numbers = #tpu.dot_dimension_numbers<[1], [0], [0], [1], [0, 0, 1, 1], [], []>} : vector<2x32xf32>, vector<32x32xf32>, vector<2x32xf32> -> vector<2x32xf32>
    %cst_85 = arith.constant dense<0.000000e+00> : vector<2x32xf32>
    %345 = tpu.matmul %295, %12, %cst_85 {dimension_numbers = #tpu.dot_dimension_numbers<[1], [0], [0], [1], [0, 0, 1, 1], [], []>} : vector<2x32xf32>, vector<32x32xf32>, vector<2x32xf32> -> vector<2x32xf32>
    %cst_86 = arith.constant dense<0.000000e+00> : vector<2x32xf32>
    %346 = tpu.matmul %295, %13, %cst_86 {dimension_numbers = #tpu.dot_dimension_numbers<[1], [0], [0], [1], [0, 0, 1, 1], [], []>} : vector<2x32xf32>, vector<32x32xf32>, vector<2x32xf32> -> vector<2x32xf32>
    %347 = vector.broadcast %14 : vector<1x32xf32> to vector<2x32xf32>
    %348 = arith.addf %346, %347 : vector<2x32xf32>
    %349 = vector.extract_strided_slice %8 {offsets = [0, 4, 0], sizes = [2, 1, 32], strides = [1, 1, 1]} : vector<2x8x32xf32> to vector<2x1x32xf32>
    %350 = vector.shape_cast %349 : vector<2x1x32xf32> to vector<2x32xf32>
    %351 = arith.addf %350, %344 : vector<2x32xf32>
    %352 = arith.negf %351 : vector<2x32xf32>
    %353 = math.exp %352 : vector<2x32xf32>
    %cst_87 = arith.constant 1.000000e+00 : f32
    %354 = vector.broadcast %cst_87 : f32 to vector<2x32xf32>
    %355 = arith.addf %354, %353 : vector<2x32xf32>
    %356 = arith.divf %354, %355 : vector<2x32xf32>
    %357 = vector.extract_strided_slice %9 {offsets = [0, 4, 0], sizes = [2, 1, 32], strides = [1, 1, 1]} : vector<2x8x32xf32> to vector<2x1x32xf32>
    %358 = vector.shape_cast %357 : vector<2x1x32xf32> to vector<2x32xf32>
    %359 = arith.addf %358, %345 : vector<2x32xf32>
    %360 = arith.negf %359 : vector<2x32xf32>
    %361 = math.exp %360 : vector<2x32xf32>
    %cst_88 = arith.constant 1.000000e+00 : f32
    %362 = vector.broadcast %cst_88 : f32 to vector<2x32xf32>
    %363 = arith.addf %362, %361 : vector<2x32xf32>
    %364 = arith.divf %362, %363 : vector<2x32xf32>
    %365 = vector.extract_strided_slice %10 {offsets = [0, 4, 0], sizes = [2, 1, 32], strides = [1, 1, 1]} : vector<2x8x32xf32> to vector<2x1x32xf32>
    %366 = vector.shape_cast %365 : vector<2x1x32xf32> to vector<2x32xf32>
    %367 = arith.mulf %356, %348 : vector<2x32xf32>
    %368 = arith.addf %366, %367 : vector<2x32xf32>
    %369 = math.tanh %368 : vector<2x32xf32>
    %cst_89 = arith.constant 1.000000e+00 : f32
    %370 = vector.broadcast %cst_89 : f32 to vector<2x32xf32>
    %371 = arith.subf %370, %364 : vector<2x32xf32>
    %372 = arith.mulf %371, %369 : vector<2x32xf32>
    %373 = arith.mulf %364, %295 : vector<2x32xf32>
    %374 = arith.addf %372, %373 : vector<2x32xf32>
    %cst_90 = arith.constant dense<0.000000e+00> : vector<2x32xf32>
    %375 = tpu.matmul %323, %15, %cst_90 {dimension_numbers = #tpu.dot_dimension_numbers<[1], [0], [0], [1], [0, 0, 1, 1], [], []>} : vector<2x32xf32>, vector<32x32xf32>, vector<2x32xf32> -> vector<2x32xf32>
    %cst_91 = arith.constant dense<0.000000e+00> : vector<2x32xf32>
    %376 = tpu.matmul %323, %16, %cst_91 {dimension_numbers = #tpu.dot_dimension_numbers<[1], [0], [0], [1], [0, 0, 1, 1], [], []>} : vector<2x32xf32>, vector<32x32xf32>, vector<2x32xf32> -> vector<2x32xf32>
    %cst_92 = arith.constant dense<0.000000e+00> : vector<2x32xf32>
    %377 = tpu.matmul %323, %17, %cst_92 {dimension_numbers = #tpu.dot_dimension_numbers<[1], [0], [0], [1], [0, 0, 1, 1], [], []>} : vector<2x32xf32>, vector<32x32xf32>, vector<2x32xf32> -> vector<2x32xf32>
    %378 = vector.broadcast %18 : vector<1x32xf32> to vector<2x32xf32>
    %379 = arith.addf %377, %378 : vector<2x32xf32>
    %380 = vector.broadcast %19 : vector<1x32xf32> to vector<2x32xf32>
    %381 = arith.addf %380, %375 : vector<2x32xf32>
    %382 = arith.negf %381 : vector<2x32xf32>
    %383 = math.exp %382 : vector<2x32xf32>
    %cst_93 = arith.constant 1.000000e+00 : f32
    %384 = vector.broadcast %cst_93 : f32 to vector<2x32xf32>
    %385 = arith.addf %384, %383 : vector<2x32xf32>
    %386 = arith.divf %384, %385 : vector<2x32xf32>
    %387 = vector.broadcast %20 : vector<1x32xf32> to vector<2x32xf32>
    %388 = arith.addf %387, %376 : vector<2x32xf32>
    %389 = arith.negf %388 : vector<2x32xf32>
    %390 = math.exp %389 : vector<2x32xf32>
    %cst_94 = arith.constant 1.000000e+00 : f32
    %391 = vector.broadcast %cst_94 : f32 to vector<2x32xf32>
    %392 = arith.addf %391, %390 : vector<2x32xf32>
    %393 = arith.divf %391, %392 : vector<2x32xf32>
    %394 = arith.mulf %386, %379 : vector<2x32xf32>
    %395 = vector.broadcast %21 : vector<1x32xf32> to vector<2x32xf32>
    %396 = arith.addf %395, %394 : vector<2x32xf32>
    %397 = math.tanh %396 : vector<2x32xf32>
    %cst_95 = arith.constant 1.000000e+00 : f32
    %398 = vector.broadcast %cst_95 : f32 to vector<2x32xf32>
    %399 = arith.subf %398, %393 : vector<2x32xf32>
    %400 = arith.mulf %399, %397 : vector<2x32xf32>
    %401 = arith.mulf %393, %323 : vector<2x32xf32>
    %402 = arith.addf %400, %401 : vector<2x32xf32>
    %403 = vector.shape_cast %374 : vector<2x32xf32> to vector<2x1x32xf32>
    %c4_i32 = arith.constant 4 : i32
    %404 = vector.broadcast %c4_i32 : i32 to vector<8x1xi32>
    %405 = arith.cmpi eq, %22, %404 : vector<8x1xi32>
    %406 = arith.extui %405 : vector<8x1xi1> to vector<8x1xi32>
    %407 = arith.sitofp %406 : vector<8x1xi32> to vector<8x1xf32>
    %408 = vector.shape_cast %407 : vector<8x1xf32> to vector<1x8x1xf32>
    %409 = vector.broadcast %403 : vector<2x1x32xf32> to vector<2x8x32xf32>
    %410 = vector.broadcast %408 : vector<1x8x1xf32> to vector<2x8x32xf32>
    %411 = arith.mulf %409, %410 : vector<2x8x32xf32>
    %412 = arith.addf %333, %411 : vector<2x8x32xf32>
    %413 = vector.shape_cast %402 : vector<2x32xf32> to vector<2x1x32xf32>
    %c4_i32_96 = arith.constant 4 : i32
    %414 = vector.broadcast %c4_i32_96 : i32 to vector<8x1xi32>
    %415 = arith.cmpi eq, %23, %414 : vector<8x1xi32>
    %416 = arith.extui %415 : vector<8x1xi1> to vector<8x1xi32>
    %417 = arith.sitofp %416 : vector<8x1xi32> to vector<8x1xf32>
    %418 = vector.shape_cast %417 : vector<8x1xf32> to vector<1x8x1xf32>
    %419 = vector.broadcast %413 : vector<2x1x32xf32> to vector<2x8x32xf32>
    %420 = vector.broadcast %418 : vector<1x8x1xf32> to vector<2x8x32xf32>
    %421 = arith.mulf %419, %420 : vector<2x8x32xf32>
    %422 = arith.addf %343, %421 : vector<2x8x32xf32>
    %cst_97 = arith.constant dense<0.000000e+00> : vector<2x32xf32>
    %423 = tpu.matmul %374, %11, %cst_97 {dimension_numbers = #tpu.dot_dimension_numbers<[1], [0], [0], [1], [0, 0, 1, 1], [], []>} : vector<2x32xf32>, vector<32x32xf32>, vector<2x32xf32> -> vector<2x32xf32>
    %cst_98 = arith.constant dense<0.000000e+00> : vector<2x32xf32>
    %424 = tpu.matmul %374, %12, %cst_98 {dimension_numbers = #tpu.dot_dimension_numbers<[1], [0], [0], [1], [0, 0, 1, 1], [], []>} : vector<2x32xf32>, vector<32x32xf32>, vector<2x32xf32> -> vector<2x32xf32>
    %cst_99 = arith.constant dense<0.000000e+00> : vector<2x32xf32>
    %425 = tpu.matmul %374, %13, %cst_99 {dimension_numbers = #tpu.dot_dimension_numbers<[1], [0], [0], [1], [0, 0, 1, 1], [], []>} : vector<2x32xf32>, vector<32x32xf32>, vector<2x32xf32> -> vector<2x32xf32>
    %426 = vector.broadcast %14 : vector<1x32xf32> to vector<2x32xf32>
    %427 = arith.addf %425, %426 : vector<2x32xf32>
    %428 = vector.extract_strided_slice %8 {offsets = [0, 5, 0], sizes = [2, 1, 32], strides = [1, 1, 1]} : vector<2x8x32xf32> to vector<2x1x32xf32>
    %429 = vector.shape_cast %428 : vector<2x1x32xf32> to vector<2x32xf32>
    %430 = arith.addf %429, %423 : vector<2x32xf32>
    %431 = arith.negf %430 : vector<2x32xf32>
    %432 = math.exp %431 : vector<2x32xf32>
    %cst_100 = arith.constant 1.000000e+00 : f32
    %433 = vector.broadcast %cst_100 : f32 to vector<2x32xf32>
    %434 = arith.addf %433, %432 : vector<2x32xf32>
    %435 = arith.divf %433, %434 : vector<2x32xf32>
    %436 = vector.extract_strided_slice %9 {offsets = [0, 5, 0], sizes = [2, 1, 32], strides = [1, 1, 1]} : vector<2x8x32xf32> to vector<2x1x32xf32>
    %437 = vector.shape_cast %436 : vector<2x1x32xf32> to vector<2x32xf32>
    %438 = arith.addf %437, %424 : vector<2x32xf32>
    %439 = arith.negf %438 : vector<2x32xf32>
    %440 = math.exp %439 : vector<2x32xf32>
    %cst_101 = arith.constant 1.000000e+00 : f32
    %441 = vector.broadcast %cst_101 : f32 to vector<2x32xf32>
    %442 = arith.addf %441, %440 : vector<2x32xf32>
    %443 = arith.divf %441, %442 : vector<2x32xf32>
    %444 = vector.extract_strided_slice %10 {offsets = [0, 5, 0], sizes = [2, 1, 32], strides = [1, 1, 1]} : vector<2x8x32xf32> to vector<2x1x32xf32>
    %445 = vector.shape_cast %444 : vector<2x1x32xf32> to vector<2x32xf32>
    %446 = arith.mulf %435, %427 : vector<2x32xf32>
    %447 = arith.addf %445, %446 : vector<2x32xf32>
    %448 = math.tanh %447 : vector<2x32xf32>
    %cst_102 = arith.constant 1.000000e+00 : f32
    %449 = vector.broadcast %cst_102 : f32 to vector<2x32xf32>
    %450 = arith.subf %449, %443 : vector<2x32xf32>
    %451 = arith.mulf %450, %448 : vector<2x32xf32>
    %452 = arith.mulf %443, %374 : vector<2x32xf32>
    %453 = arith.addf %451, %452 : vector<2x32xf32>
    %cst_103 = arith.constant dense<0.000000e+00> : vector<2x32xf32>
    %454 = tpu.matmul %402, %15, %cst_103 {dimension_numbers = #tpu.dot_dimension_numbers<[1], [0], [0], [1], [0, 0, 1, 1], [], []>} : vector<2x32xf32>, vector<32x32xf32>, vector<2x32xf32> -> vector<2x32xf32>
    %cst_104 = arith.constant dense<0.000000e+00> : vector<2x32xf32>
    %455 = tpu.matmul %402, %16, %cst_104 {dimension_numbers = #tpu.dot_dimension_numbers<[1], [0], [0], [1], [0, 0, 1, 1], [], []>} : vector<2x32xf32>, vector<32x32xf32>, vector<2x32xf32> -> vector<2x32xf32>
    %cst_105 = arith.constant dense<0.000000e+00> : vector<2x32xf32>
    %456 = tpu.matmul %402, %17, %cst_105 {dimension_numbers = #tpu.dot_dimension_numbers<[1], [0], [0], [1], [0, 0, 1, 1], [], []>} : vector<2x32xf32>, vector<32x32xf32>, vector<2x32xf32> -> vector<2x32xf32>
    %457 = vector.broadcast %18 : vector<1x32xf32> to vector<2x32xf32>
    %458 = arith.addf %456, %457 : vector<2x32xf32>
    %459 = vector.broadcast %19 : vector<1x32xf32> to vector<2x32xf32>
    %460 = arith.addf %459, %454 : vector<2x32xf32>
    %461 = arith.negf %460 : vector<2x32xf32>
    %462 = math.exp %461 : vector<2x32xf32>
    %cst_106 = arith.constant 1.000000e+00 : f32
    %463 = vector.broadcast %cst_106 : f32 to vector<2x32xf32>
    %464 = arith.addf %463, %462 : vector<2x32xf32>
    %465 = arith.divf %463, %464 : vector<2x32xf32>
    %466 = vector.broadcast %20 : vector<1x32xf32> to vector<2x32xf32>
    %467 = arith.addf %466, %455 : vector<2x32xf32>
    %468 = arith.negf %467 : vector<2x32xf32>
    %469 = math.exp %468 : vector<2x32xf32>
    %cst_107 = arith.constant 1.000000e+00 : f32
    %470 = vector.broadcast %cst_107 : f32 to vector<2x32xf32>
    %471 = arith.addf %470, %469 : vector<2x32xf32>
    %472 = arith.divf %470, %471 : vector<2x32xf32>
    %473 = arith.mulf %465, %458 : vector<2x32xf32>
    %474 = vector.broadcast %21 : vector<1x32xf32> to vector<2x32xf32>
    %475 = arith.addf %474, %473 : vector<2x32xf32>
    %476 = math.tanh %475 : vector<2x32xf32>
    %cst_108 = arith.constant 1.000000e+00 : f32
    %477 = vector.broadcast %cst_108 : f32 to vector<2x32xf32>
    %478 = arith.subf %477, %472 : vector<2x32xf32>
    %479 = arith.mulf %478, %476 : vector<2x32xf32>
    %480 = arith.mulf %472, %402 : vector<2x32xf32>
    %481 = arith.addf %479, %480 : vector<2x32xf32>
    %482 = vector.shape_cast %453 : vector<2x32xf32> to vector<2x1x32xf32>
    %c5_i32 = arith.constant 5 : i32
    %483 = vector.broadcast %c5_i32 : i32 to vector<8x1xi32>
    %484 = arith.cmpi eq, %22, %483 : vector<8x1xi32>
    %485 = arith.extui %484 : vector<8x1xi1> to vector<8x1xi32>
    %486 = arith.sitofp %485 : vector<8x1xi32> to vector<8x1xf32>
    %487 = vector.shape_cast %486 : vector<8x1xf32> to vector<1x8x1xf32>
    %488 = vector.broadcast %482 : vector<2x1x32xf32> to vector<2x8x32xf32>
    %489 = vector.broadcast %487 : vector<1x8x1xf32> to vector<2x8x32xf32>
    %490 = arith.mulf %488, %489 : vector<2x8x32xf32>
    %491 = arith.addf %412, %490 : vector<2x8x32xf32>
    %492 = vector.shape_cast %481 : vector<2x32xf32> to vector<2x1x32xf32>
    %c5_i32_109 = arith.constant 5 : i32
    %493 = vector.broadcast %c5_i32_109 : i32 to vector<8x1xi32>
    %494 = arith.cmpi eq, %23, %493 : vector<8x1xi32>
    %495 = arith.extui %494 : vector<8x1xi1> to vector<8x1xi32>
    %496 = arith.sitofp %495 : vector<8x1xi32> to vector<8x1xf32>
    %497 = vector.shape_cast %496 : vector<8x1xf32> to vector<1x8x1xf32>
    %498 = vector.broadcast %492 : vector<2x1x32xf32> to vector<2x8x32xf32>
    %499 = vector.broadcast %497 : vector<1x8x1xf32> to vector<2x8x32xf32>
    %500 = arith.mulf %498, %499 : vector<2x8x32xf32>
    %501 = arith.addf %422, %500 : vector<2x8x32xf32>
    %cst_110 = arith.constant dense<0.000000e+00> : vector<2x32xf32>
    %502 = tpu.matmul %453, %11, %cst_110 {dimension_numbers = #tpu.dot_dimension_numbers<[1], [0], [0], [1], [0, 0, 1, 1], [], []>} : vector<2x32xf32>, vector<32x32xf32>, vector<2x32xf32> -> vector<2x32xf32>
    %cst_111 = arith.constant dense<0.000000e+00> : vector<2x32xf32>
    %503 = tpu.matmul %453, %12, %cst_111 {dimension_numbers = #tpu.dot_dimension_numbers<[1], [0], [0], [1], [0, 0, 1, 1], [], []>} : vector<2x32xf32>, vector<32x32xf32>, vector<2x32xf32> -> vector<2x32xf32>
    %cst_112 = arith.constant dense<0.000000e+00> : vector<2x32xf32>
    %504 = tpu.matmul %453, %13, %cst_112 {dimension_numbers = #tpu.dot_dimension_numbers<[1], [0], [0], [1], [0, 0, 1, 1], [], []>} : vector<2x32xf32>, vector<32x32xf32>, vector<2x32xf32> -> vector<2x32xf32>
    %505 = vector.broadcast %14 : vector<1x32xf32> to vector<2x32xf32>
    %506 = arith.addf %504, %505 : vector<2x32xf32>
    %507 = vector.extract_strided_slice %8 {offsets = [0, 6, 0], sizes = [2, 1, 32], strides = [1, 1, 1]} : vector<2x8x32xf32> to vector<2x1x32xf32>
    %508 = vector.shape_cast %507 : vector<2x1x32xf32> to vector<2x32xf32>
    %509 = arith.addf %508, %502 : vector<2x32xf32>
    %510 = arith.negf %509 : vector<2x32xf32>
    %511 = math.exp %510 : vector<2x32xf32>
    %cst_113 = arith.constant 1.000000e+00 : f32
    %512 = vector.broadcast %cst_113 : f32 to vector<2x32xf32>
    %513 = arith.addf %512, %511 : vector<2x32xf32>
    %514 = arith.divf %512, %513 : vector<2x32xf32>
    %515 = vector.extract_strided_slice %9 {offsets = [0, 6, 0], sizes = [2, 1, 32], strides = [1, 1, 1]} : vector<2x8x32xf32> to vector<2x1x32xf32>
    %516 = vector.shape_cast %515 : vector<2x1x32xf32> to vector<2x32xf32>
    %517 = arith.addf %516, %503 : vector<2x32xf32>
    %518 = arith.negf %517 : vector<2x32xf32>
    %519 = math.exp %518 : vector<2x32xf32>
    %cst_114 = arith.constant 1.000000e+00 : f32
    %520 = vector.broadcast %cst_114 : f32 to vector<2x32xf32>
    %521 = arith.addf %520, %519 : vector<2x32xf32>
    %522 = arith.divf %520, %521 : vector<2x32xf32>
    %523 = vector.extract_strided_slice %10 {offsets = [0, 6, 0], sizes = [2, 1, 32], strides = [1, 1, 1]} : vector<2x8x32xf32> to vector<2x1x32xf32>
    %524 = vector.shape_cast %523 : vector<2x1x32xf32> to vector<2x32xf32>
    %525 = arith.mulf %514, %506 : vector<2x32xf32>
    %526 = arith.addf %524, %525 : vector<2x32xf32>
    %527 = math.tanh %526 : vector<2x32xf32>
    %cst_115 = arith.constant 1.000000e+00 : f32
    %528 = vector.broadcast %cst_115 : f32 to vector<2x32xf32>
    %529 = arith.subf %528, %522 : vector<2x32xf32>
    %530 = arith.mulf %529, %527 : vector<2x32xf32>
    %531 = arith.mulf %522, %453 : vector<2x32xf32>
    %532 = arith.addf %530, %531 : vector<2x32xf32>
    %cst_116 = arith.constant dense<0.000000e+00> : vector<2x32xf32>
    %533 = tpu.matmul %481, %15, %cst_116 {dimension_numbers = #tpu.dot_dimension_numbers<[1], [0], [0], [1], [0, 0, 1, 1], [], []>} : vector<2x32xf32>, vector<32x32xf32>, vector<2x32xf32> -> vector<2x32xf32>
    %cst_117 = arith.constant dense<0.000000e+00> : vector<2x32xf32>
    %534 = tpu.matmul %481, %16, %cst_117 {dimension_numbers = #tpu.dot_dimension_numbers<[1], [0], [0], [1], [0, 0, 1, 1], [], []>} : vector<2x32xf32>, vector<32x32xf32>, vector<2x32xf32> -> vector<2x32xf32>
    %cst_118 = arith.constant dense<0.000000e+00> : vector<2x32xf32>
    %535 = tpu.matmul %481, %17, %cst_118 {dimension_numbers = #tpu.dot_dimension_numbers<[1], [0], [0], [1], [0, 0, 1, 1], [], []>} : vector<2x32xf32>, vector<32x32xf32>, vector<2x32xf32> -> vector<2x32xf32>
    %536 = vector.broadcast %18 : vector<1x32xf32> to vector<2x32xf32>
    %537 = arith.addf %535, %536 : vector<2x32xf32>
    %538 = vector.broadcast %19 : vector<1x32xf32> to vector<2x32xf32>
    %539 = arith.addf %538, %533 : vector<2x32xf32>
    %540 = arith.negf %539 : vector<2x32xf32>
    %541 = math.exp %540 : vector<2x32xf32>
    %cst_119 = arith.constant 1.000000e+00 : f32
    %542 = vector.broadcast %cst_119 : f32 to vector<2x32xf32>
    %543 = arith.addf %542, %541 : vector<2x32xf32>
    %544 = arith.divf %542, %543 : vector<2x32xf32>
    %545 = vector.broadcast %20 : vector<1x32xf32> to vector<2x32xf32>
    %546 = arith.addf %545, %534 : vector<2x32xf32>
    %547 = arith.negf %546 : vector<2x32xf32>
    %548 = math.exp %547 : vector<2x32xf32>
    %cst_120 = arith.constant 1.000000e+00 : f32
    %549 = vector.broadcast %cst_120 : f32 to vector<2x32xf32>
    %550 = arith.addf %549, %548 : vector<2x32xf32>
    %551 = arith.divf %549, %550 : vector<2x32xf32>
    %552 = arith.mulf %544, %537 : vector<2x32xf32>
    %553 = vector.broadcast %21 : vector<1x32xf32> to vector<2x32xf32>
    %554 = arith.addf %553, %552 : vector<2x32xf32>
    %555 = math.tanh %554 : vector<2x32xf32>
    %cst_121 = arith.constant 1.000000e+00 : f32
    %556 = vector.broadcast %cst_121 : f32 to vector<2x32xf32>
    %557 = arith.subf %556, %551 : vector<2x32xf32>
    %558 = arith.mulf %557, %555 : vector<2x32xf32>
    %559 = arith.mulf %551, %481 : vector<2x32xf32>
    %560 = arith.addf %558, %559 : vector<2x32xf32>
    %561 = vector.shape_cast %532 : vector<2x32xf32> to vector<2x1x32xf32>
    %c6_i32 = arith.constant 6 : i32
    %562 = vector.broadcast %c6_i32 : i32 to vector<8x1xi32>
    %563 = arith.cmpi eq, %22, %562 : vector<8x1xi32>
    %564 = arith.extui %563 : vector<8x1xi1> to vector<8x1xi32>
    %565 = arith.sitofp %564 : vector<8x1xi32> to vector<8x1xf32>
    %566 = vector.shape_cast %565 : vector<8x1xf32> to vector<1x8x1xf32>
    %567 = vector.broadcast %561 : vector<2x1x32xf32> to vector<2x8x32xf32>
    %568 = vector.broadcast %566 : vector<1x8x1xf32> to vector<2x8x32xf32>
    %569 = arith.mulf %567, %568 : vector<2x8x32xf32>
    %570 = arith.addf %491, %569 : vector<2x8x32xf32>
    %571 = vector.shape_cast %560 : vector<2x32xf32> to vector<2x1x32xf32>
    %c6_i32_122 = arith.constant 6 : i32
    %572 = vector.broadcast %c6_i32_122 : i32 to vector<8x1xi32>
    %573 = arith.cmpi eq, %23, %572 : vector<8x1xi32>
    %574 = arith.extui %573 : vector<8x1xi1> to vector<8x1xi32>
    %575 = arith.sitofp %574 : vector<8x1xi32> to vector<8x1xf32>
    %576 = vector.shape_cast %575 : vector<8x1xf32> to vector<1x8x1xf32>
    %577 = vector.broadcast %571 : vector<2x1x32xf32> to vector<2x8x32xf32>
    %578 = vector.broadcast %576 : vector<1x8x1xf32> to vector<2x8x32xf32>
    %579 = arith.mulf %577, %578 : vector<2x8x32xf32>
    %580 = arith.addf %501, %579 : vector<2x8x32xf32>
    %cst_123 = arith.constant dense<0.000000e+00> : vector<2x32xf32>
    %581 = tpu.matmul %532, %11, %cst_123 {dimension_numbers = #tpu.dot_dimension_numbers<[1], [0], [0], [1], [0, 0, 1, 1], [], []>} : vector<2x32xf32>, vector<32x32xf32>, vector<2x32xf32> -> vector<2x32xf32>
    %cst_124 = arith.constant dense<0.000000e+00> : vector<2x32xf32>
    %582 = tpu.matmul %532, %12, %cst_124 {dimension_numbers = #tpu.dot_dimension_numbers<[1], [0], [0], [1], [0, 0, 1, 1], [], []>} : vector<2x32xf32>, vector<32x32xf32>, vector<2x32xf32> -> vector<2x32xf32>
    %cst_125 = arith.constant dense<0.000000e+00> : vector<2x32xf32>
    %583 = tpu.matmul %532, %13, %cst_125 {dimension_numbers = #tpu.dot_dimension_numbers<[1], [0], [0], [1], [0, 0, 1, 1], [], []>} : vector<2x32xf32>, vector<32x32xf32>, vector<2x32xf32> -> vector<2x32xf32>
    %584 = vector.broadcast %14 : vector<1x32xf32> to vector<2x32xf32>
    %585 = arith.addf %583, %584 : vector<2x32xf32>
    %586 = vector.extract_strided_slice %8 {offsets = [0, 7, 0], sizes = [2, 1, 32], strides = [1, 1, 1]} : vector<2x8x32xf32> to vector<2x1x32xf32>
    %587 = vector.shape_cast %586 : vector<2x1x32xf32> to vector<2x32xf32>
    %588 = arith.addf %587, %581 : vector<2x32xf32>
    %589 = arith.negf %588 : vector<2x32xf32>
    %590 = math.exp %589 : vector<2x32xf32>
    %cst_126 = arith.constant 1.000000e+00 : f32
    %591 = vector.broadcast %cst_126 : f32 to vector<2x32xf32>
    %592 = arith.addf %591, %590 : vector<2x32xf32>
    %593 = arith.divf %591, %592 : vector<2x32xf32>
    %594 = vector.extract_strided_slice %9 {offsets = [0, 7, 0], sizes = [2, 1, 32], strides = [1, 1, 1]} : vector<2x8x32xf32> to vector<2x1x32xf32>
    %595 = vector.shape_cast %594 : vector<2x1x32xf32> to vector<2x32xf32>
    %596 = arith.addf %595, %582 : vector<2x32xf32>
    %597 = arith.negf %596 : vector<2x32xf32>
    %598 = math.exp %597 : vector<2x32xf32>
    %cst_127 = arith.constant 1.000000e+00 : f32
    %599 = vector.broadcast %cst_127 : f32 to vector<2x32xf32>
    %600 = arith.addf %599, %598 : vector<2x32xf32>
    %601 = arith.divf %599, %600 : vector<2x32xf32>
    %602 = vector.extract_strided_slice %10 {offsets = [0, 7, 0], sizes = [2, 1, 32], strides = [1, 1, 1]} : vector<2x8x32xf32> to vector<2x1x32xf32>
    %603 = vector.shape_cast %602 : vector<2x1x32xf32> to vector<2x32xf32>
    %604 = arith.mulf %593, %585 : vector<2x32xf32>
    %605 = arith.addf %603, %604 : vector<2x32xf32>
    %606 = math.tanh %605 : vector<2x32xf32>
    %cst_128 = arith.constant 1.000000e+00 : f32
    %607 = vector.broadcast %cst_128 : f32 to vector<2x32xf32>
    %608 = arith.subf %607, %601 : vector<2x32xf32>
    %609 = arith.mulf %608, %606 : vector<2x32xf32>
    %610 = arith.mulf %601, %532 : vector<2x32xf32>
    %611 = arith.addf %609, %610 : vector<2x32xf32>
    %cst_129 = arith.constant dense<0.000000e+00> : vector<2x32xf32>
    %612 = tpu.matmul %560, %15, %cst_129 {dimension_numbers = #tpu.dot_dimension_numbers<[1], [0], [0], [1], [0, 0, 1, 1], [], []>} : vector<2x32xf32>, vector<32x32xf32>, vector<2x32xf32> -> vector<2x32xf32>
    %cst_130 = arith.constant dense<0.000000e+00> : vector<2x32xf32>
    %613 = tpu.matmul %560, %16, %cst_130 {dimension_numbers = #tpu.dot_dimension_numbers<[1], [0], [0], [1], [0, 0, 1, 1], [], []>} : vector<2x32xf32>, vector<32x32xf32>, vector<2x32xf32> -> vector<2x32xf32>
    %cst_131 = arith.constant dense<0.000000e+00> : vector<2x32xf32>
    %614 = tpu.matmul %560, %17, %cst_131 {dimension_numbers = #tpu.dot_dimension_numbers<[1], [0], [0], [1], [0, 0, 1, 1], [], []>} : vector<2x32xf32>, vector<32x32xf32>, vector<2x32xf32> -> vector<2x32xf32>
    %615 = vector.broadcast %18 : vector<1x32xf32> to vector<2x32xf32>
    %616 = arith.addf %614, %615 : vector<2x32xf32>
    %617 = vector.broadcast %19 : vector<1x32xf32> to vector<2x32xf32>
    %618 = arith.addf %617, %612 : vector<2x32xf32>
    %619 = arith.negf %618 : vector<2x32xf32>
    %620 = math.exp %619 : vector<2x32xf32>
    %cst_132 = arith.constant 1.000000e+00 : f32
    %621 = vector.broadcast %cst_132 : f32 to vector<2x32xf32>
    %622 = arith.addf %621, %620 : vector<2x32xf32>
    %623 = arith.divf %621, %622 : vector<2x32xf32>
    %624 = vector.broadcast %20 : vector<1x32xf32> to vector<2x32xf32>
    %625 = arith.addf %624, %613 : vector<2x32xf32>
    %626 = arith.negf %625 : vector<2x32xf32>
    %627 = math.exp %626 : vector<2x32xf32>
    %cst_133 = arith.constant 1.000000e+00 : f32
    %628 = vector.broadcast %cst_133 : f32 to vector<2x32xf32>
    %629 = arith.addf %628, %627 : vector<2x32xf32>
    %630 = arith.divf %628, %629 : vector<2x32xf32>
    %631 = arith.mulf %623, %616 : vector<2x32xf32>
    %632 = vector.broadcast %21 : vector<1x32xf32> to vector<2x32xf32>
    %633 = arith.addf %632, %631 : vector<2x32xf32>
    %634 = math.tanh %633 : vector<2x32xf32>
    %cst_134 = arith.constant 1.000000e+00 : f32
    %635 = vector.broadcast %cst_134 : f32 to vector<2x32xf32>
    %636 = arith.subf %635, %630 : vector<2x32xf32>
    %637 = arith.mulf %636, %634 : vector<2x32xf32>
    %638 = arith.mulf %630, %560 : vector<2x32xf32>
    %639 = arith.addf %637, %638 : vector<2x32xf32>
    %640 = vector.shape_cast %611 : vector<2x32xf32> to vector<2x1x32xf32>
    %c7_i32 = arith.constant 7 : i32
    %641 = vector.broadcast %c7_i32 : i32 to vector<8x1xi32>
    %642 = arith.cmpi eq, %22, %641 : vector<8x1xi32>
    %643 = arith.extui %642 : vector<8x1xi1> to vector<8x1xi32>
    %644 = arith.sitofp %643 : vector<8x1xi32> to vector<8x1xf32>
    %645 = vector.shape_cast %644 : vector<8x1xf32> to vector<1x8x1xf32>
    %646 = vector.broadcast %640 : vector<2x1x32xf32> to vector<2x8x32xf32>
    %647 = vector.broadcast %645 : vector<1x8x1xf32> to vector<2x8x32xf32>
    %648 = arith.mulf %646, %647 : vector<2x8x32xf32>
    %649 = arith.addf %570, %648 : vector<2x8x32xf32>
    %650 = vector.shape_cast %639 : vector<2x32xf32> to vector<2x1x32xf32>
    %c7_i32_135 = arith.constant 7 : i32
    %651 = vector.broadcast %c7_i32_135 : i32 to vector<8x1xi32>
    %652 = arith.cmpi eq, %23, %651 : vector<8x1xi32>
    %653 = arith.extui %652 : vector<8x1xi1> to vector<8x1xi32>
    %654 = arith.sitofp %653 : vector<8x1xi32> to vector<8x1xf32>
    %655 = vector.shape_cast %654 : vector<8x1xf32> to vector<1x8x1xf32>
    %656 = vector.broadcast %650 : vector<2x1x32xf32> to vector<2x8x32xf32>
    %657 = vector.broadcast %655 : vector<1x8x1xf32> to vector<2x8x32xf32>
    %658 = arith.mulf %656, %657 : vector<2x8x32xf32>
    %659 = arith.addf %580, %658 : vector<2x8x32xf32>
    %c0_136 = arith.constant 0 : index
    %c0_137 = arith.constant 0 : index
    %660 = vector.load %arg17[%c0_136, %c0_137] : memref<32x1xf32, #tpu.memory_space<vmem>>, vector<32x1xf32>
    %cst_138 = arith.constant dense<0.000000e+00> : vector<2x1xf32>
    %661 = tpu.matmul %611, %660, %cst_138 {dimension_numbers = #tpu.dot_dimension_numbers<[1], [0], [0], [1], [0, 0, 1, 1], [], []>} : vector<2x32xf32>, vector<32x1xf32>, vector<2x1xf32> -> vector<2x1xf32>
    %c0_139 = arith.constant 0 : index
    %c0_140 = arith.constant 0 : index
    %662 = vector.load %arg19[%c0_139, %c0_140] : memref<2x1xf32, #tpu.memory_space<vmem>>, vector<2x1xf32>
    tpu.vector_store %arg19[%c0_139, %c0_140], %661 {strides = array<i32>} : memref<2x1xf32, #tpu.memory_space<vmem>>, vector<2x1xf32>,
    %663 = vector.shape_cast %649 : vector<2x8x32xf32> to vector<16x32xf32>
    %c0_141 = arith.constant 0 : index
    %c0_142 = arith.constant 0 : index
    %664 = vector.load %arg14[%c0_141, %c0_142] : memref<32x32xf32, #tpu.memory_space<vmem>>, vector<32x32xf32>
    %cst_143 = arith.constant dense<0.000000e+00> : vector<16x32xf32>
    %665 = tpu.matmul %663, %664, %cst_143 {dimension_numbers = #tpu.dot_dimension_numbers<[1], [0], [0], [1], [0, 0, 1, 1], [], []>} : vector<16x32xf32>, vector<32x32xf32>, vector<16x32xf32> -> vector<16x32xf32>
    %666 = vector.shape_cast %665 : vector<16x32xf32> to vector<2x8x32xf32>
    %667 = vector.shape_cast %659 : vector<2x8x32xf32> to vector<16x32xf32>
    %c0_144 = arith.constant 0 : index
    %c0_145 = arith.constant 0 : index
    %668 = vector.load %arg15[%c0_144, %c0_145] : memref<32x32xf32, #tpu.memory_space<vmem>>, vector<32x32xf32>
    %cst_146 = arith.constant dense<0.000000e+00> : vector<16x32xf32>
    %669 = tpu.matmul %667, %668, %cst_146 {dimension_numbers = #tpu.dot_dimension_numbers<[1], [0], [0], [1], [0, 0, 1, 1], [], []>} : vector<16x32xf32>, vector<32x32xf32>, vector<16x32xf32> -> vector<16x32xf32>
    %670 = vector.shape_cast %669 : vector<16x32xf32> to vector<2x8x32xf32>
    %671 = vector.shape_cast %666 : vector<2x8x32xf32> to vector<2x1x8x32xf32>
    %672 = vector.shape_cast %670 : vector<2x8x32xf32> to vector<2x8x1x32xf32>
    %673 = vector.broadcast %671 : vector<2x1x8x32xf32> to vector<2x8x8x32xf32>
    %674 = vector.broadcast %672 : vector<2x8x1x32xf32> to vector<2x8x8x32xf32>
    %675 = arith.addf %673, %674 : vector<2x8x8x32xf32>
    %676 = math.tanh %675 : vector<2x8x8x32xf32>
    %c0_147 = arith.constant 0 : index
    %c0_148 = arith.constant 0 : index
    %677 = vector.load %arg16[%c0_147, %c0_148] : memref<1x32xf32, #tpu.memory_space<vmem>>, vector<1x32xf32>
    %678 = vector.shape_cast %677 : vector<1x32xf32> to vector<1x1x1x32xf32>
    %679 = vector.broadcast %678 : vector<1x1x1x32xf32> to vector<2x8x8x32xf32>
    %680 = arith.mulf %676, %679 : vector<2x8x8x32xf32>
    %cst_149 = arith.constant dense<0.000000e+00> : vector<2x8x8xf32>
    %681 = vector.multi_reduction <add>, %680, %cst_149 [3] : vector<2x8x8x32xf32> to vector<2x8x8xf32>
    %cst_150 = arith.constant dense<0xFF800000> : vector<2x8xf32>
    %682 = vector.multi_reduction <maximumf>, %681, %cst_150 [2] : vector<2x8x8xf32> to vector<2x8xf32>
    %683 = vector.shape_cast %682 : vector<2x8xf32> to vector<2x8x1xf32>
    %684 = vector.broadcast %683 : vector<2x8x1xf32> to vector<2x8x8xf32>
    %685 = arith.subf %681, %684 : vector<2x8x8xf32>
    %686 = math.exp %685 : vector<2x8x8xf32>
    %cst_151 = arith.constant dense<0.000000e+00> : vector<2x8xf32>
    %687 = vector.multi_reduction <add>, %686, %cst_151 [2] : vector<2x8x8xf32> to vector<2x8xf32>
    %688 = vector.shape_cast %687 : vector<2x8xf32> to vector<2x8x1xf32>
    %689 = math.log %688 : vector<2x8x1xf32>
    %690 = vector.broadcast %683 : vector<2x8x1xf32> to vector<2x8x8xf32>
    %691 = arith.subf %681, %690 : vector<2x8x8xf32>
    %692 = vector.broadcast %689 : vector<2x8x1xf32> to vector<2x8x8xf32>
    %693 = arith.subf %691, %692 : vector<2x8x8xf32>
    %c0_152 = arith.constant 0 : index
    %c0_153 = arith.constant 0 : index
    %c0_154 = arith.constant 0 : index
    %694 = vector.load %arg18[%c0_152, %c0_153, %c0_154] : memref<2x8x8xf32, #tpu.memory_space<vmem>>, vector<2x8x8xf32>
    tpu.vector_store %arg18[%c0_152, %c0_153, %c0_154], %693 {strides = array<i32>} : memref<2x8x8xf32, #tpu.memory_space<vmem>>, vector<2x8x8xf32>,
    return
  }
}

</mosaic_0001>

<bundles_post_ra>
// kernel: tpu_custom_call.1
= control target key start
LH: loop header
LB: loop body
LE: loop exit
PB: predicated region body
PF: predicated region fallthrough
CT: control target
= control target key end

     0   :  { %s9649_s0 = inlined_call_operand.hbm [shape: f32[2,8,32], index: 0, kind: input, shape index: {}]   ;;  %s9650_s1 = inlined_call_operand.vmem [shape: f32[32,96], index: 1, kind: input, shape index: {}]   ;;  %s9651_s2 = inlined_call_operand.vmem [shape: f32[1,96], index: 2, kind: input, shape index: {}]   ;;  %s9652_s3 = inlined_call_operand.vmem [shape: f32[1,32], index: 3, kind: input, shape index: {}]   ;;  %s9653_s4 = inlined_call_operand.hbm [shape: f32[32,32], index: 4, kind: input, shape index: {}]   ;;  %s9654_s5 = inlined_call_operand.hbm [shape: f32[32,32], index: 5, kind: input, shape index: {}]   ;;  %s9655_s6 = inlined_call_operand.hbm [shape: f32[32,32], index: 6, kind: input, shape index: {}]   ;;  %s9656_s7 = inlined_call_operand.vmem [shape: f32[1,32], index: 7, kind: input, shape index: {}]   ;;  %s9657_s8 = inlined_call_operand.hbm [shape: f32[1,32], index: 8, kind: input, shape index: {}]   ;;  %s9658_s9 = inlined_call_operand.hbm [shape: f32[1,32], index: 9, kind: input, shape index: {}]   ;;  %s9659_s10 = inlined_call_operand.vmem [shape: f32[1,32], index: 10, kind: input, shape index: {}]   ;;  %s9660_s11 = inlined_call_operand.vmem [shape: f32[32,32], index: 11, kind: input, shape index: {}]   ;;  %s9661_s12 = inlined_call_operand.hbm [shape: f32[32,32], index: 12, kind: input, shape index: {}]   ;;  %s9662_s13 = inlined_call_operand.hbm [shape: f32[32,32], index: 13, kind: input, shape index: {}]   ;;  %s9663_s14 = inlined_call_operand.hbm [shape: f32[32,32], index: 14, kind: input, shape index: {}]   ;;  %s9664_s15 = inlined_call_operand.hbm [shape: f32[32,32], index: 15, kind: input, shape index: {}]   ;;  %s9665_s16 = inlined_call_operand.vmem [shape: f32[1,32], index: 16, kind: input, shape index: {}]   ;;  %s9666_s17 = inlined_call_operand.vmem [shape: f32[32,1], index: 17, kind: input, shape index: {}]   ;;  %s9667_s18 = inlined_call_operand.hbm [shape: f32[2,8,8], index: 18, kind: output, shape index: {0}]   ;;  %s9668_s19 = inlined_call_operand.vmem [shape: f32[2,1], index: 19, kind: output, shape index: {1}]  }
   0x1   :  { %9672 = sst [smem:[#allocation27_spill]] %s9649_s0 }
   0x2   :  { %9673 = sst [smem:[#allocation28_spill]] %s9650_s1 }
   0x3   :  { %9674 = sst [smem:[#allocation29_spill]] %s9651_s2 }
   0x4   :  { %9675 = sst [smem:[#allocation30_spill]] %s9652_s3 }
   0x5   :  { %25 = vsyncpa [#allocation3], 0 }
   0x6   :  { %26 = vsyncpa [#allocation6], 0 }
   0x7   :  { %27 = vsyncpa [#allocation9], 0 }
   0x8   :  { %28 = vsyncpa [#allocation12], 0 }
   0x9   :  { %29 = vsyncpa [#allocation15], 0 }
   0xa   :  { %30 = vsyncpa [#allocation18], 0 }
   0xb   :  { %31 = vsyncpa [#allocation4], 0  ;;  %s8074_s0 = smov [#allocation5]   ;;  %s8075_s20 = smov [#allocation8]  }
   0xc   :  { %s55_s30 = sshll.u32 %s8074_s0, 4  ;;  %s79_s21 = sshll.u32 %s8075_s20, 4  ;;  %s56_s30 = int_to_ptr.vmem [resolvable:$true] %s55_s30  ;;  %s8195_s21 = int_to_ptr.vmem [resolvable:$true] %s79_s21 }
   0xd   :  { %s7818_s2 = scalar_lea.hbm %s9653_s4, 512 }
   0xe   :  { %p7819_p0 = scmp.ne.s32.totalorder %s9653_s4, %s7818_s2  ;;  %p7822_p1 = scmp.lt.u32.totalorder %s7818_s2, %s9653_s4 }
  0x10   :  { %p7824_p2 = pnand %p7822_p1, %p7819_p0 }
  0x12   :  { %7827 = shalt.err (!%p7824_p2)
}
  0x13   :  { %s7828_s26 = scalar_lea.vmem %s56_s30, 512  ;;  %p7833_p4 = scmp.lt.s32.totalorder %s56_s30, %s56_s30 }
  0x14   :  { %p7829_p3 = scmp.ne.s32.totalorder %s56_s30, %s7828_s26  ;;  %p7834_p5 = scmp.lt.s32.totalorder %s7828_s26, %s7828_s26 }
  0x16   :  { %p7835_p6 = por %p7834_p5, %p7833_p4 }
  0x18   :  { %p7836_p7 = pnand %p7835_p6, %p7829_p3 }
  0x1a   :  { %7839 = shalt.err (!%p7836_p7)
}
  0x1b   :  { %s8076_s27 = smov 128   ;;  %s8077_s28 = smov 8  }
  0x1c   :  { %61 = dma.hbm_to_vmem [thread:$0]  %s9653_s4, 512, %s56_s30, [#allocation6], %s8076_s27, %s8076_s27, %s8077_s28  }
  0x1d   :  { %s7840_s22 = scalar_lea.hbm %s9655_s6, 512 }
  0x1e   :  { %p7841_p8 = scmp.ne.s32.totalorder %s9655_s6, %s7840_s22  ;;  %p7844_p9 = scmp.lt.u32.totalorder %s7840_s22, %s9655_s6 }
  0x20   :  { %p7846_p10 = pnand %p7844_p9, %p7841_p8 }
  0x22   :  { %7849 = shalt.err (!%p7846_p10)
}
  0x23   :  { %s7850_s3 = scalar_lea.vmem %s8195_s21, 512  ;;  %p7855_p12 = scmp.lt.s32.totalorder %s8195_s21, %s8195_s21 }
  0x24   :  { %p7851_p11 = scmp.ne.s32.totalorder %s8195_s21, %s7850_s3  ;;  %p7856_p13 = scmp.lt.s32.totalorder %s7850_s3, %s7850_s3 }
  0x26   :  { %p7857_p0 = por %p7856_p13, %p7855_p12 }
  0x28   :  { %p7858_p1 = pnand %p7857_p0, %p7851_p11 }
  0x2a   :  { %7861 = shalt.err (!%p7858_p1)
}
  0x2b   :  { %85 = dma.hbm_to_vmem [thread:$0]  %s9655_s6, 512, %s8195_s21, [#allocation9], %s8076_s27, %s8076_s27, %s8077_s28  }
  0x2c   :  { %s8078_s26 = smov [#allocation11]   ;;  %s8079_s0 = smov [#allocation14]  }
  0x2d   :  { %s104_s29 = sshll.u32 %s8078_s26, 4  ;;  %s129_s20 = sshll.u32 %s8079_s0, 4  ;;  %s105_s29 = int_to_ptr.vmem [resolvable:$true] %s104_s29  ;;  %s8232_s20 = int_to_ptr.vmem [resolvable:$true] %s129_s20 }
  0x2e   :  { %s7862_s2 = scalar_lea.hbm %s9658_s9, 16 }
  0x2f   :  { %p7863_p2 = scmp.ne.s32.totalorder %s9658_s9, %s7862_s2  ;;  %p7866_p3 = scmp.lt.u32.totalorder %s7862_s2, %s9658_s9 }
  0x31   :  { %p7868_p4 = pnand %p7866_p3, %p7863_p2 }
  0x33   :  { %7871 = shalt.err (!%p7868_p4)
}
  0x34   :  { %s7872_s6 = scalar_lea.vmem %s105_s29, 16  ;;  %s7876_s21 = scalar_lea.vmem %s105_s29, 32 }
  0x35   :  { %p7873_p5 = scmp.ne.s32.totalorder %s105_s29, %s7872_s6  ;;  %p7877_p6 = scmp.lt.s32.totalorder %s105_s29, %s105_s29 }
  0x36   :  { %p7878_p7 = scmp.lt.s32.totalorder %s7876_s21, %s7872_s6 }
  0x38   :  { %p7879_p8 = por %p7878_p7, %p7877_p6 }
  0x3a   :  { %p7880_p9 = pnand %p7879_p8, %p7873_p5 }
  0x3c   :  { %7883 = shalt.err (!%p7880_p9)
}
  0x3d   :  { %107 = dma.hbm_to_vmem [thread:$0]  %s9658_s9, 16, %s105_s29, [#allocation12]  }
  0x3e   :  { %s7884_s1 = scalar_lea.hbm %s9662_s13, 512 }
  0x3f   :  { %p7885_p10 = scmp.ne.s32.totalorder %s9662_s13, %s7884_s1  ;;  %p7888_p11 = scmp.lt.u32.totalorder %s7884_s1, %s9662_s13 }
  0x41   :  { %p7890_p12 = pnand %p7888_p11, %p7885_p10 }
  0x43   :  { %7893 = shalt.err (!%p7890_p12)
}
  0x44   :  { %s7894_s25 = scalar_lea.vmem %s8232_s20, 512  ;;  %p7899_p0 = scmp.lt.s32.totalorder %s8232_s20, %s8232_s20 }
  0x45   :  { %p7895_p13 = scmp.ne.s32.totalorder %s8232_s20, %s7894_s25  ;;  %p7900_p1 = scmp.lt.s32.totalorder %s7894_s25, %s7894_s25 }
  0x47   :  { %p7901_p2 = por %p7900_p1, %p7899_p0 }
  0x49   :  { %p7902_p3 = pnand %p7901_p2, %p7895_p13 }
  0x4b   :  { %7905 = shalt.err (!%p7902_p3)
}
  0x4c   :  { %135 = dma.hbm_to_vmem [thread:$0]  %s9662_s13, 512, %s8232_s20, [#allocation15], %s8076_s27, %s8076_s27, %s8077_s28  }
  0x4d   :  { %s8080_s3 = smov [#allocation2]   ;;  %s8081_s21 = smov [#allocation7]  }
  0x4e   :  { %s37_s6 = sshll.u32 %s8080_s3, 4  ;;  %s67_s4 = sshll.u32 %s8081_s21, 4  ;;  %s38_s6 = int_to_ptr.vmem [resolvable:$true] %s37_s6  ;;  %s8266_s4 = int_to_ptr.vmem [resolvable:$true] %s67_s4 }
  0x4f   :  { %s9676_s0 = sld [smem:[#allocation27_spill]] }
  0x55   :  { %s7906_s1 = scalar_lea.hbm %s9676_s0, 256 }
  0x56   :  { %p7907_p4 = scmp.ne.s32.totalorder %s9676_s0, %s7906_s1  ;;  %p7910_p5 = scmp.lt.u32.totalorder %s7906_s1, %s9676_s0 }
  0x58   :  { %p7912_p6 = pnand %p7910_p5, %p7907_p4 }
  0x5a   :  { %7915 = shalt.err (!%p7912_p6)
}
  0x5b   :  { %s7916_s13 = scalar_lea.vmem %s38_s6, 256  ;;  %p7921_p8 = scmp.lt.s32.totalorder %s38_s6, %s38_s6 }
  0x5c   :  { %p7917_p7 = scmp.ne.s32.totalorder %s38_s6, %s7916_s13  ;;  %p7922_p9 = scmp.lt.s32.totalorder %s7916_s13, %s7916_s13 }
  0x5e   :  { %p7923_p10 = por %p7922_p9, %p7921_p8 }
  0x60   :  { %p7924_p11 = pnand %p7923_p10, %p7917_p7 }
  0x62   :  { %7927 = shalt.err (!%p7924_p11)
}
  0x63   :  { %43 = dma.hbm_to_vmem [thread:$0]  %s9676_s0, 256, %s38_s6, [#allocation3], %s8076_s27, %s8076_s27, %s8077_s28  }
  0x64   :  { %s7928_s3 = scalar_lea.hbm %s9654_s5, 512 }
  0x65   :  { %p7929_p12 = scmp.ne.s32.totalorder %s9654_s5, %s7928_s3  ;;  %p7932_p13 = scmp.lt.u32.totalorder %s7928_s3, %s9654_s5 }
  0x67   :  { %p7934_p0 = pnand %p7932_p13, %p7929_p12 }
  0x69   :  { %7937 = shalt.err (!%p7934_p0)
}
  0x6a   :  { %s7938_s22 = scalar_lea.vmem %s8266_s4, 512  ;;  %p7943_p2 = scmp.lt.s32.totalorder %s8266_s4, %s8266_s4 }
  0x6b   :  { %p7939_p1 = scmp.ne.s32.totalorder %s8266_s4, %s7938_s22  ;;  %p7944_p3 = scmp.lt.s32.totalorder %s7938_s22, %s7938_s22 }
  0x6d   :  { %p7945_p4 = por %p7944_p3, %p7943_p2 }
  0x6f   :  { %p7946_p5 = pnand %p7945_p4, %p7939_p1 }
  0x71   :  { %7949 = shalt.err (!%p7946_p5)
}
  0x72   :  { %73 = dma.hbm_to_vmem [thread:$0]  %s9654_s5, 512, %s8266_s4, [#allocation6], %s8076_s27, %s8076_s27, %s8077_s28  }
  0x73   :  { %s8082_s2 = smov [#allocation10]   ;;  %s8083_s24 = smov [#allocation13]  }
  0x74   :  { %s94_s23 = sshll.u32 %s8082_s2, 4  ;;  %s117_s13 = sshll.u32 %s8083_s24, 4  ;;  %s95_s23 = int_to_ptr.vmem [resolvable:$true] %s94_s23  ;;  %s8303_s13 = int_to_ptr.vmem [resolvable:$true] %s117_s13 }
  0x75   :  { %s7950_s9 = scalar_lea.hbm %s9657_s8, 16 }
  0x76   :  { %p7951_p6 = scmp.ne.s32.totalorder %s9657_s8, %s7950_s9  ;;  %p7954_p7 = scmp.lt.u32.totalorder %s7950_s9, %s9657_s8 }
  0x78   :  { %p7956_p8 = pnand %p7954_p7, %p7951_p6 }
  0x7a   :  { %7959 = shalt.err (!%p7956_p8)
}
  0x7b   :  { %s7960_s5 = scalar_lea.vmem %s95_s23, 16  ;;  %s7964_s4 = scalar_lea.vmem %s95_s23, 32 }
  0x7c   :  { %p7961_p9 = scmp.ne.s32.totalorder %s95_s23, %s7960_s5  ;;  %p7965_p10 = scmp.lt.s32.totalorder %s95_s23, %s95_s23 }
  0x7d   :  { %p7966_p11 = scmp.lt.s32.totalorder %s7964_s4, %s7960_s5 }
  0x7f   :  { %p7967_p12 = por %p7966_p11, %p7965_p10 }
  0x81   :  { %p7968_p13 = pnand %p7967_p12, %p7961_p9 }
  0x83   :  { %7971 = shalt.err (!%p7968_p13)
}
  0x84   :  { %97 = dma.hbm_to_vmem [thread:$0]  %s9657_s8, 16, %s95_s23, [#allocation9]  }
  0x85   :  { %s7972_s0 = scalar_lea.hbm %s9661_s12, 512 }
  0x86   :  { %p7973_p0 = scmp.ne.s32.totalorder %s9661_s12, %s7972_s0  ;;  %p7976_p1 = scmp.lt.u32.totalorder %s7972_s0, %s9661_s12 }
  0x88   :  { %p7978_p2 = pnand %p7976_p1, %p7973_p0 }
  0x8a   :  { %7981 = shalt.err (!%p7978_p2)
}
  0x8b   :  { %s7982_s9 = scalar_lea.vmem %s8303_s13, 512  ;;  %p7987_p4 = scmp.lt.s32.totalorder %s8303_s13, %s8303_s13 }
  0x8c   :  { %p7983_p3 = scmp.ne.s32.totalorder %s8303_s13, %s7982_s9  ;;  %p7988_p5 = scmp.lt.s32.totalorder %s7982_s9, %s7982_s9 }
  0x8e   :  { %p7989_p6 = por %p7988_p5, %p7987_p4 }
  0x90   :  { %p7990_p7 = pnand %p7989_p6, %p7983_p3 }
  0x92   :  { %7993 = shalt.err (!%p7990_p7)
}
  0x93   :  { %123 = dma.hbm_to_vmem [thread:$0]  %s9661_s12, 512, %s8303_s13, [#allocation12], %s8076_s27, %s8076_s27, %s8077_s28  }
  0x94   :  { %s8084_s29 = smov [#allocation16]   ;;  %s8085_s21 = smov [#allocation17]  }
  0x95   :  { %s141_s3 = sshll.u32 %s8084_s29, 4  ;;  %s153_s30 = sshll.u32 %s8085_s21, 4  ;;  %s142_s3 = int_to_ptr.vmem [resolvable:$true] %s141_s3  ;;  %s8337_s30 = int_to_ptr.vmem [resolvable:$true] %s153_s30 }
  0x96   :  { %s7994_s26 = scalar_lea.hbm %s9663_s14, 512 }
  0x97   :  { %p7995_p8 = scmp.ne.s32.totalorder %s9663_s14, %s7994_s26  ;;  %p7998_p9 = scmp.lt.u32.totalorder %s7994_s26, %s9663_s14 }
  0x99   :  { %p8000_p10 = pnand %p7998_p9, %p7995_p8 }
  0x9b   :  { %8003 = shalt.err (!%p8000_p10)
}
  0x9c   :  { %s8004_s12 = scalar_lea.vmem %s142_s3, 512  ;;  %p8009_p12 = scmp.lt.s32.totalorder %s142_s3, %s142_s3 }
  0x9d   :  { %p8005_p11 = scmp.ne.s32.totalorder %s142_s3, %s8004_s12  ;;  %p8010_p13 = scmp.lt.s32.totalorder %s8004_s12, %s8004_s12 }
  0x9f   :  { %p8011_p0 = por %p8010_p13, %p8009_p12 }
  0xa1   :  { %p8012_p1 = pnand %p8011_p0, %p8005_p11 }
  0xa3   :  { %8015 = shalt.err (!%p8012_p1)
}
  0xa4   :  { %147 = dma.hbm_to_vmem [thread:$0]  %s9663_s14, 512, %s142_s3, [#allocation15], %s8076_s27, %s8076_s27, %s8077_s28  }
  0xa5   :  { %s8016_s25 = scalar_lea.hbm %s9664_s15, 512 }
  0xa6   :  { %p8017_p2 = scmp.ne.s32.totalorder %s9664_s15, %s8016_s25  ;;  %p8020_p3 = scmp.lt.u32.totalorder %s8016_s25, %s9664_s15 }
  0xa8   :  { %p8022_p4 = pnand %p8020_p3, %p8017_p2 }
  0xaa   :  { %8025 = shalt.err (!%p8022_p4)
}
  0xab   :  { %s8026_s21 = scalar_lea.vmem %s8337_s30, 512  ;;  %p8031_p6 = scmp.lt.s32.totalorder %s8337_s30, %s8337_s30 }
  0xac   :  { %p8027_p5 = scmp.ne.s32.totalorder %s8337_s30, %s8026_s21  ;;  %p8032_p7 = scmp.lt.s32.totalorder %s8026_s21, %s8026_s21 }
  0xae   :  { %p8033_p8 = por %p8032_p7, %p8031_p6 }
  0xb0   :  { %p8034_p9 = pnand %p8033_p8, %p8027_p5 }
  0xb2   :  { %8037 = shalt.err (!%p8034_p9)
}
  0xb3   :  { %159 = dma.hbm_to_vmem [thread:$0]  %s9664_s15, 512, %s8337_s30, [#allocation18], %s8076_s27, %s8076_s27, %s8077_s28  }
  0xb4   :  { %8060 = dma.done.wait [#allocation3], 256  }
  0xb5   :  { %8061 = vsyncadd [#allocation3], 4294967040 }
  0xb6   :  { %8062 = dma.done.wait [#allocation6], 1024  }
  0xb7   :  { %8063 = vsyncadd [#allocation6], 4294966272 }
  0xb8   :  { %8064 = dma.done.wait [#allocation9], 528  }
  0xb9   :  { %8065 = vsyncadd [#allocation9], 4294966768 }
  0xba   :  { %8066 = dma.done.wait [#allocation12], 528  }
  0xbb   :  { %8067 = vsyncadd [#allocation12], 4294966768 }
  0xbc   :  { %8068 = dma.done.wait [#allocation15], 1024  }
  0xbd   :  { %8069 = vsyncadd [#allocation15], 4294966272 }
  0xbe   :  { %8070 = dma.done.wait [#allocation18], 512  }
  0xbf   :  { %8071 = vsyncadd [#allocation18], 4294966784  ;;  %v8086_v0 = vmov 0.0|0.0   ;;  %vm8087_vm0 = vmmov 0   ;;  %v8088_v1 = vmov 0.0   ;;  %s9677_s5 = sld [smem:[#allocation28_spill]] }
  0xc0   :  { %7172 = vmatprep.subr.bf16.mxu1 %v8086_v0  ;;  %6611 = vmatprep.mubr.msk.f32.mxu1 %vm8087_vm0, %v8088_v1  ;;  %v289_v4 = vld [vmem:[#allocation5] sm:$0xff]  ;;  %vm207_vm1 = vcmask 261120   ;;  %v290_v6 = vld [vmem:[#allocation5 + $0x8] sm:$0xff]  ;;  %v291_v11 = vld [vmem:[#allocation5 + $0x10] sm:$0xff]  ;;  %s9678_s2 = sld [smem:[#allocation29_spill]]  ;;  %s8089_s24 = smov 32  }
  0xc1   :  { %v8389_v9 = vpack.c.bf16 %v290_v6, %v289_v4  ;;  %v292_v12 = vld [vmem:[#allocation5 + $0x18] sm:$0xff]  ;;  %v194_v13 = vld [vmem:[#allocation2] sm:$0xff]  ;;  %v293_v15 = vld [vmem:[#allocation7] sm:$0xff]  ;;  %s9679_s30 = sld [smem:[#allocation30_spill]]  ;;  %vm923_vm2 = vcmask 1041409   ;;  %vm5093_vm11 = vcmask 1024  }
  0xc2   :  { %6600 = vmatprep.mubr.msk.f32.mxu0 %vm207_vm1, %v194_v13  ;;  %v8393_v14 = vpack.c.bf16 %v292_v12, %v291_v11  ;;  %v294_v16 = vld [vmem:[#allocation7 + $0x8] sm:$0xff]  ;;  %v297_v17 = vld [vmem:[#allocation8] sm:$0xff]  ;;  %v195_v19 = vld [vmem:[#allocation2 + $0x8] sm:$0xff]  ;;  %vm5635_vm12 = vcmask 1042434   ;;  %vm5637_vm13 = vcmask 1043459   ;;  %vm5639_vm14 = vcmask 1044484  }
  0xc3   :  { %7174 = vmatpush3.bf16.msra.mxu1 %v8389_v9  ;;  %v298_v18 = vld [vmem:[#allocation8 + $0x8] sm:$0xff]  ;;  %v8397_v20 = vpack.c.bf16 %v294_v16, %v293_v15  ;;  %v295_v21 = vld [vmem:[#allocation7 + $0x10] sm:$0xff]  ;;  %v296_v22 = vld [vmem:[#allocation7 + $0x18] sm:$0xff]  ;;  %vm5641_vm15 = vcmask 1045509  }
  0xc4   :  { %7175 = vmatprep.subr.bf16.mxu1 %v8086_v0  ;;  %v8401_v23 = vpack.c.bf16 %v298_v18, %v297_v17  ;;  %v299_v24 = vld [vmem:[#allocation8 + $0x10] sm:$0xff]  ;;  %v300_v25 = vld [vmem:[#allocation8 + $0x18] sm:$0xff]  ;;  %v8406_v26 = vpack.c.bf16 %v296_v22, %v295_v21  ;;  %v304_v48 = vld [vmem:[%s9660_s11 + $0x10] sm:$0xff] }
  0xc5   :  { %v196_v2 = vld [vmem:[%s9677_s5] sm:$0xff]  ;;  %v197_v3 = vld [vmem:[%s9677_s5 + $0x8] sm:$0xff]  ;;  %v198_v7 = vld [vmem:[%s9677_s5 + $0x10] sm:$0xff]  ;;  %v8412_v27 = vpack.c.bf16 %v300_v25, %v299_v24 }
  0xc6   :  { %v7164_v5 = vpack.c.bf16 %v197_v3, %v196_v2  ;;  %v199_v8 = vld [vmem:[%s9677_s5 + $0x18] sm:$0xff]  ;;  %v6217_v28 = vld [vmem:[%s9678_s2] ss:$0 sm:$0xff]  ;;  %v303_v46 = vld [vmem:[%s9660_s11 + $0x8] sm:$0xff]  ;;  %s8091_s5 = smov 96  }
  0xc7   :  { %v7168_v10 = vpack.c.bf16 %v199_v8, %v198_v7  ;;  %7177 = vmatpush3.bf16.msra.mxu1 %v8393_v14  ;;  %v302_v45 = vld [vmem:[%s9660_s11] sm:$0xff]  ;;  %v305_v49 = vld [vmem:[%s9660_s11 + $0x18] sm:$0xff]  ;;  %v309_v61 = vld [vmem:[#allocation13 + $0x18] sm:$0xff]  ;;  %s8090_s11 = smov 64  }
  0xc8   :  { %7165 = vmatprep.subr.bf16.mxu0 %v7164_v5  ;;  %7184 = vmatprep.subr.bf16.mxu1 %v8086_v0  ;;  %v8443_v47 = vpack.c.bf16 %v303_v46, %v302_v45  ;;  %v8454_v50 = vpack.c.bf16 %v305_v49, %v304_v48  ;;  %v8461_v55 = vld [vmem:[%s9679_s30] ss:$0 sm:$0xff]  ;;  %v306_v57 = vld [vmem:[#allocation13] sm:$0xff]  ;;  %v308_v60 = vld [vmem:[#allocation13 + $0x10] sm:$0xff] }
  0xc9   :  { %7167 = vmatpush3.bf16.msra.mxu0 %v7164_v5  ;;  %v307_v58 = vld [vmem:[#allocation13 + $0x8] sm:$0xff]  ;;  %v8470_v63 = vpack.c.bf16 %v309_v61, %v308_v60  ;;  %v310_v6 = vld [vmem:[#allocation14] sm:$0xff]  ;;  %v312_v8 = vld [vmem:[#allocation14 + $0x10] sm:$0xff] }
  0xca   :  { %7169 = vmatprep.subr.bf16.mxu0 %v7168_v10  ;;  %6612 = vmatmul.mubr.f32.vlgmr.msra.gmra.mrb[0].mxu1 %v8088_v1  ;;  %v8467_v59 = vpack.c.bf16 %v307_v58, %v306_v57  ;;  %v311_v7 = vld [vmem:[#allocation14 + $0x8] sm:$0xff]  ;;  %v313_v11 = vld [vmem:[#allocation14 + $0x18] sm:$0xff] }
  0xcb   :  { %7186 = vmatpush3.bf16.msra.mxu1 %v8401_v23  ;;  %6633 = vmatprep.mubr.msk.f32.mxu1 %vm8087_vm0, %v8088_v1  ;;  %v8486_v12 = vpack.c.bf16 %v313_v11, %v312_v8  ;;  %v8506_v22 = vld [vmem:[%s9656_s7] ss:$0 sm:$0xff] }
  0xcc   :  { %7187 = vmatprep.subr.bf16.mxu1 %v8086_v0  ;;  %v8517_v46 = vld [vmem:[%s9659_s10] ss:$0 sm:$0xff] }
  0xcd   :  { %7171 = vmatpush3.bf16.msra.mxu0 %v7168_v10  ;;  %v8482_v10 = vpack.c.bf16 %v311_v7, %v310_v6 }
  0xce   :  { %7178 = vmatprep.subr.bf16.mxu0 %v8086_v0 }
  0xcf   :  { %7189 = vmatpush3.bf16.msra.mxu1 %v8412_v27 }
  0xd0   :  { %6601 = vmatmul.mubr.msk.f32.vlgmr.msra.gmra.mrb[0].mxu0 %vm207_vm1, %v195_v19  ;;  %7196 = vmatprep.subr.bf16.mxu1 %v8086_v0 }
  0xd1   :  { %7180 = vmatpush3.bf16.msra.mxu0 %v8397_v20  ;;  %6622 = vmatprep.mubr.msk.f32.mxu0 %vm8087_vm0, %v8088_v1 }
  0xd2   :  { %7181 = vmatprep.subr.bf16.mxu0 %v8086_v0  ;;  %6634 = vmatmul.mubr.f32.vlgmr.msra.gmra.mrb[2].mxu1 %v8088_v1 }
  0xd3   :  { %6655 = vmatprep.mubr.msk.f32.mxu1 %vm8087_vm0, %v8088_v1  ;;  %7198 = vmatpush3.bf16.msra.mxu1 %v8467_v59 }
  0xd4   :  { %7199 = vmatprep.subr.bf16.mxu1 %v8086_v0 }
  0xd5   :  { %7183 = vmatpush3.bf16.msra.mxu0 %v8406_v26 }
  0xd6   :  { %7190 = vmatprep.subr.bf16.mxu0 %v8086_v0 }
  0xd7   :  { %7201 = vmatpush3.bf16.msra.mxu1 %v8470_v63 }
  0xd8   :  { %6623 = vmatmul.mubr.f32.vlgmr.msra.gmra.mrb[2].mxu0 %v8088_v1  ;;  %7208 = vmatprep.subr.bf16.mxu1 %v8086_v0 }
  0xd9   :  { %6644 = vmatprep.mubr.msk.f32.mxu0 %vm8087_vm0, %v8088_v1  ;;  %7192 = vmatpush3.bf16.msra.mxu0 %v8443_v47 }
  0xda   :  { %7193 = vmatprep.subr.bf16.mxu0 %v8086_v0  ;;  %6656 = vmatmul.mubr.f32.vlgmr.msra.gmra.mrb[4].mxu1 %v8088_v1 }
  0xdb   :  { %7210 = vmatpush3.bf16.msra.mxu1 %v8389_v9  ;;  %6677 = vmatprep.mubr.msk.f32.mxu1 %vm8087_vm0, %v8088_v1 }
  0xdc   :  { %7211 = vmatprep.subr.bf16.mxu1 %v8086_v0 }
  0xdd   :  { %7195 = vmatpush3.bf16.msra.mxu0 %v8454_v50 }
  0xde   :  { %7202 = vmatprep.subr.bf16.mxu0 %v8086_v0 }
  0xdf   :  { %7213 = vmatpush3.bf16.msra.mxu1 %v8393_v14 }
  0xe0   :  { %6645 = vmatmul.mubr.f32.vlgmr.msra.gmra.mrb[4].mxu0 %v8088_v1  ;;  %7220 = vmatprep.subr.bf16.mxu1 %v8086_v0 }
  0xe1   :  { %6666 = vmatprep.mubr.msk.f32.mxu0 %vm8087_vm0, %v8088_v1  ;;  %7204 = vmatpush3.bf16.msra.mxu0 %v8482_v10 }
  0xe2   :  { %7205 = vmatprep.subr.bf16.mxu0 %v8086_v0 }
  0xe5   :  { %7207 = vmatpush3.bf16.msra.mxu0 %v8486_v12 }
  0xe6   :  { %7214 = vmatprep.subr.bf16.mxu0 %v8086_v0 }
  0xe8   :  { %6667 = vmatmul.mubr.f32.vlgmr.msra.gmra.mrb[6].mxu0 %v8088_v1 }
  0xe9   :  { %7216 = vmatpush3.bf16.msra.mxu0 %v8397_v20  ;;  %6688 = vmatprep.mubr.msk.f32.mxu0 %vm8087_vm0, %v8088_v1 }
  0xea   :  { %7217 = vmatprep.subr.bf16.mxu0 %v8086_v0 }
  0xed   :  { %7219 = vmatpush3.bf16.msra.mxu0 %v8406_v26 }
  0xee   :  { %7226 = vmatprep.subr.bf16.mxu0 %v8086_v0 }
 0x19d   :  { %v389_v29 = vpop.f32.mrb[0].mxu1 }
 0x19e   :  { %v540_v31 = vrot.slane %v389_v29, 1  ;;  %v6613_v33 = vpop.f32.mrb[1].mxu1 }
 0x1a3   :  { %v6602_v30 = vpop.f32.mrb[0].mxu0 }
 0x1a4   :  { %v8430_v32 = vadd.f32 %v6602_v30, %v6217_v28  ;;  %v280_v34 = vpop.f32.mrb[1].mxu0 }
 0x1a5   :  { %v8432_v35 = vadd.f32 %v6217_v28, %v280_v34  ;;  %v535_v42 = vpop.f32.mrb[2].mxu1 }
 0x1a6   :  { %v544_v36 = vadd.f32 %v540_v31, %v8430_v32  ;;  %v6635_v44 = vpop.f32.mrb[3].mxu1  ;;  %v536_v56 = vadd.f32 %v8461_v55, %v535_v42 }
 0x1a7   :  { %v543_v37 = vadd.f32 %v389_v29, %v8432_v35 }
 0x1a8   :  { %v6222_v38 = vmul.f32 -1.442695, %v544_v36  ;;  %v580_v62 = vrot.slane %v536_v56, 1 }
 0x1a9   :  { %v6221_v39 = vmul.f32 -1.442695, %v543_v37  ;;  %v8511_v37 = vld [vmem:[#allocation10] ss:$0 sm:$0xff] }
 0x1aa   :  { %7505 = vpow2.f32 %v6222_v38 }
 0x1ab   :  { %v459_v40 = vpop.f32.mrb[2].mxu0  ;;  %7507 = vpow2.f32 %v6221_v39 }
 0x1ac   :  { %v558_v41 = vrot.slane %v459_v40, 1  ;;  %v6624_v43 = vpop.f32.mrb[3].mxu0 }
 0x1ad   :  { %v749_v38 = vpop.f32.mrb[4].mxu1 }
 0x1ae   :  { %561 = vrot.lane.b32.xlu1 %v558_v41, %s8089_s24  ;;  %v848_v39 = vadd.f32 %v8511_v37, %v749_v38 }
 0x1b0   :  { %v6229_v43 = vmul.f32 -1.442695, %v848_v39 }
 0x1b2   :  { %559 = vrot.lane.b32.xlu1 %v459_v40, %s8089_s24  ;;  %v6657_v40 = vpop.f32.mrb[5].mxu1 }
 0x1b3   :  { %v679_v24 = vpop.f32.mrb[4].mxu0 }
 0x1b4   :  { %v7506_v51 = vpop.eup %7505  ;;  %v835_v25 = vadd.f32 %v8506_v22, %v679_v24  ;;  %v6646_v28 = vpop.f32.mrb[5].mxu0 }
 0x1b5   :  { %v7508_v52 = vpop.eup %7507  ;;  %v552_v53 = vadd.f32 1.0, %v7506_v51 }
 0x1b6   :  { %v551_v54 = vadd.f32 1.0, %v7508_v52  ;;  %v6227_v30 = vmul.f32 -1.442695, %v835_v25 }
 0x1b7   :  { %7509 = vrcp.f32 %v552_v53 }
 0x1b8   :  { %7511 = vrcp.f32 %v551_v54 }
 0x1bb   :  { %v825_v49 = vpop.f32.mrb[6].mxu0 }
 0x1bc   :  { %v826_v52 = vadd.f32 %v8517_v46, %v825_v49  ;;  %v6668_v53 = vpop.f32.mrb[7].mxu0 }
 0x1c1   :  { %v7510_v2 = vpop.eup %7509 }
 0x1c2   :  { %v7512_v3 = vpop.eup %7511  ;;  %v584_v4 = vmul.f32 %v7510_v2, %v580_v62 }
 0x1c3   :  { %v583_v5 = vmul.f32 %v7512_v3, %v536_v56  ;;  %v8520_v56 = vld [vmem:[#allocation11] ss:$0 sm:$0xff] }
 0x1c4   :  { %589 = vrot.lane.b32.xlu0 %v584_v4, %s8090_s11 }
 0x1c8   :  { %587 = vrot.lane.b32.xlu0 %v583_v5, %s8090_s11 }
 0x220   :  { %v562_v21 = vpop.permute.xlu1 %561 }
 0x221   :  { %v566_v31 = vadd.f32 %v562_v21, %v8430_v32 }
 0x223   :  { %v6224_v34 = vmul.f32 -1.442695, %v566_v31 }
 0x224   :  { %v560_v29 = vpop.permute.xlu1 %559 }
 0x225   :  { %v565_v33 = vadd.f32 %v560_v29, %v8432_v35 }
 0x227   :  { %v6223_v36 = vmul.f32 -1.442695, %v565_v33 }
 0x236   :  { %v590_v13 = vpop.permute.xlu0 %589 }
 0x237   :  { %v594_v15 = vadd.f32 %v590_v13, %v8430_v32 }
 0x239   :  { %7513 = vtanh.f32 %v594_v15 }
 0x23a   :  { %v588_v16 = vpop.permute.xlu0 %587 }
 0x23b   :  { %v593_v17 = vadd.f32 %v588_v16, %v8432_v35 }
 0x23d   :  { %7515 = vtanh.f32 %v593_v17 }
 0x23e   :  { %7517 = vpow2.f32 %v6227_v30 }
 0x23f   :  { %7519 = vpow2.f32 %v6224_v34 }
 0x240   :  { %7521 = vpow2.f32 %v6223_v36 }
 0x243   :  { %v7514_v18 = vpop.eup %7513 }
 0x244   :  { %603 = vrot.lane.b32.xlu0 %v7514_v18, %s8091_s5 }
 0x247   :  { %v7516_v19 = vpop.eup %7515 }
 0x248   :  { %601 = vrot.lane.b32.xlu1 %v7516_v19, %s8091_s5  ;;  %v7518_v41 = vpop.eup %7517 }
 0x249   :  { %v839_v42 = vadd.f32 1.0, %v7518_v41  ;;  %v7520_v44 = vpop.eup %7519 }
 0x24a   :  { %v7522_v45 = vpop.eup %7521  ;;  %v574_v48 = vadd.f32 1.0, %v7520_v44 }
 0x24b   :  { %7523 = vrcp.f32 %v839_v42  ;;  %v573_v51 = vadd.f32 1.0, %v7522_v45 }
 0x24c   :  { %7525 = vpow2.f32 %v6229_v43 }
 0x24d   :  { %7527 = vrcp.f32 %v574_v48 }
 0x24e   :  { %7529 = vrcp.f32 %v573_v51 }
 0x255   :  { %v7524_v54 = vpop.eup %7523 }
 0x256   :  { %v7526_v57 = vpop.eup %7525  ;;  %v855_v58 = vmul.f32 %v7524_v54, %v826_v52 }
 0x257   :  { %v852_v60 = vadd.f32 1.0, %v7526_v57  ;;  %v7528_v62 = vpop.eup %7527 }
 0x258   :  { %v862_v61 = vadd.f32 %v8520_v56, %v855_v58  ;;  %v7530_v2 = vpop.eup %7529  ;;  %v598_v4 = vsub.f32 1.0, %v7528_v62  ;;  %v610_v8 = vmul.f32 0.0, %v7528_v62 }
 0x259   :  { %7531 = vrcp.f32 %v852_v60  ;;  %v597_v17 = vsub.f32 1.0, %v7530_v2  ;;  %v609_v21 = vmul.f32 0.0, %v7530_v2 }
 0x25a   :  { %7533 = vtanh.f32 %v862_v61 }
 0x263   :  { %v7532_v3 = vpop.eup %7531 }
 0x264   :  { %v7534_v5 = vpop.eup %7533  ;;  %v864_v7 = vsub.f32 1.0, %v7532_v3  ;;  %v866_v13 = vmul.f32 0.0, %v7532_v3 }
 0x266   :  { %v865_v15 = vmul.f32 %v7534_v5, %v864_v7 }
 0x268   :  { %v8525_v19 = vadd.f32 %v866_v13, %v865_v15 }
 0x2b6   :  { %v604_v6 = vpop.permute.xlu0 %603 }
 0x2b7   :  { %v608_v11 = vmul.f32 %v604_v6, %v598_v4 }
 0x2b9   :  { %v8523_v16 = vadd.f32 %v610_v8, %v608_v11 }
 0x2ba   :  { %v602_v18 = vpop.permute.xlu1 %601 }
 0x2bb   :  { %v607_v24 = vmul.f32 %v602_v18, %v597_v17  ;;  %v922_v25 = vrot.slane %v8523_v16, 7 }
 0x2bd   :  { %v8528_v28 = vadd.f32 %v609_v21, %v607_v24 }
 0x2bf   :  { %v924_v29 = vsel %vm923_vm2, %v922_v25, %v8528_v28 }
 0x2c0   :  { %925 = vrot.lane.b32.xlu0 %v924_v29, %s8091_s5 }
 0x332   :  { %v926_v30 = vpop.permute.xlu0 %925 }
 0x333   :  { %6678 = vmatmul.mubr.msk.f32.vlgmr.msra.gmra.mrb[6].mxu1 %vm207_vm1, %v926_v30  ;;  %6689 = vmatmul.mubr.msk.f32.vlgmr.msra.gmra.mrb[8].mxu0 %vm207_vm1, %v926_v30 }
 0x334   :  { %7222 = vmatpush3.bf16.msra.mxu1 %v8401_v23  ;;  %7228 = vmatpush3.bf16.msra.mxu0 %v8443_v47 }
 0x335   :  { %7223 = vmatprep.subr.bf16.mxu1 %v8086_v0  ;;  %7229 = vmatprep.subr.bf16.mxu0 %v8086_v0 }
 0x336   :  { %6699 = vmatprep.mubr.msk.f32.mxu1 %vm8087_vm0, %v8088_v1  ;;  %6710 = vmatprep.mubr.msk.f32.mxu0 %vm8087_vm0, %v8088_v1 }
 0x338   :  { %7225 = vmatpush3.bf16.msra.mxu1 %v8412_v27  ;;  %7231 = vmatpush3.bf16.msra.mxu0 %v8454_v50 }
 0x339   :  { %7232 = vmatprep.subr.bf16.mxu1 %v8086_v0  ;;  %7238 = vmatprep.subr.bf16.mxu0 %v8086_v0 }
 0x33b   :  { %6700 = vmatmul.mubr.msk.f32.vlgmr.msra.gmra.mrb[8].mxu1 %vm207_vm1, %v926_v30  ;;  %6711 = vmatmul.mubr.msk.f32.vlgmr.msra.gmra.mrb[10].mxu0 %vm207_vm1, %v8525_v19 }
 0x33c   :  { %7234 = vmatpush3.bf16.msra.mxu1 %v8467_v59  ;;  %6721 = vmatprep.mubr.msk.f32.mxu1 %vm8087_vm0, %v8088_v1 }
 0x33d   :  { %7235 = vmatprep.subr.bf16.mxu1 %v8086_v0  ;;  %7240 = vmatpush3.bf16.msra.mxu0 %v8482_v10 }
 0x33e   :  { %7241 = vmatprep.subr.bf16.mxu0 %v8086_v0  ;;  %6732 = vmatprep.mubr.msk.f32.mxu0 %vm8087_vm0, %v8088_v1 }
 0x340   :  { %7237 = vmatpush3.bf16.msra.mxu1 %v8470_v63 }
 0x341   :  { %7243 = vmatpush3.bf16.msra.mxu0 %v8486_v12  ;;  %7244 = vmatprep.subr.bf16.mxu1 %v8086_v0 }
 0x342   :  { %7250 = vmatprep.subr.bf16.mxu0 %v8086_v0 }
 0x343   :  { %6722 = vmatmul.mubr.msk.f32.vlgmr.msra.gmra.mrb[10].mxu1 %vm207_vm1, %v8525_v19 }
 0x344   :  { %6733 = vmatmul.mubr.msk.f32.vlgmr.msra.gmra.mrb[12].mxu0 %vm207_vm1, %v8525_v19  ;;  %7246 = vmatpush3.bf16.msra.mxu1 %v8389_v9 }
 0x345   :  { %7252 = vmatpush3.bf16.msra.mxu0 %v8397_v20  ;;  %7247 = vmatprep.subr.bf16.mxu1 %v8086_v0 }
 0x346   :  { %7253 = vmatprep.subr.bf16.mxu0 %v8086_v0  ;;  %6743 = vmatprep.mubr.msk.f32.mxu1 %vm8087_vm0, %v8088_v1 }
 0x347   :  { %6754 = vmatprep.mubr.msk.f32.mxu0 %vm8087_vm0, %v8088_v1 }
 0x348   :  { %7249 = vmatpush3.bf16.msra.mxu1 %v8393_v14 }
 0x349   :  { %7255 = vmatpush3.bf16.msra.mxu0 %v8406_v26  ;;  %7256 = vmatprep.subr.bf16.mxu1 %v8086_v0 }
 0x34a   :  { %7262 = vmatprep.subr.bf16.mxu0 %v8086_v0 }
 0x406   :  { %v995_v31 = vpop.f32.mrb[6].mxu1  ;;  %v1065_v33 = vpop.f32.mrb[8].mxu0 }
 0x407   :  { %v1140_v34 = vrot.slane %v995_v31, 7  ;;  %v1144_v36 = vadd.f32 %v995_v31, %v8430_v32  ;;  %v6679_v38 = vpop.f32.mrb[7].mxu1  ;;  %v6690_v39 = vpop.f32.mrb[9].mxu0  ;;  %v1158_v24 = vrot.slane %v1065_v33, 7 }
 0x409   :  { %v1143_v40 = vadd.f32 %v1140_v34, %v8432_v35  ;;  %v6236_v41 = vmul.f32 -1.442695, %v1144_v36 }
 0x40b   :  { %v6235_v42 = vmul.f32 -1.442695, %v1143_v40  ;;  %7535 = vpow2.f32 %v6236_v41 }
 0x40d   :  { %7537 = vpow2.f32 %v6235_v42 }
 0x40e   :  { %v1135_v43 = vpop.f32.mrb[8].mxu1  ;;  %v1284_v44 = vpop.f32.mrb[10].mxu0 }
 0x40f   :  { %v1428_v45 = vadd.f32 %v8506_v22, %v1284_v44  ;;  %v6701_v48 = vpop.f32.mrb[9].mxu1  ;;  %v6712_v49 = vpop.f32.mrb[11].mxu0  ;;  %v1136_v6 = vadd.f32 %v8461_v55, %v1135_v43 }
 0x411   :  { %v6242_v51 = vmul.f32 -1.442695, %v1428_v45  ;;  %v1180_v8 = vrot.slane %v1136_v6, 7 }
 0x413   :  { %7539 = vpow2.f32 %v6242_v51 }
 0x415   :  { %v7536_v52 = vpop.eup %7535 }
 0x416   :  { %v1152_v53 = vadd.f32 1.0, %v7536_v52  ;;  %v1354_v54 = vpop.f32.mrb[10].mxu1 }
 0x417   :  { %v7538_v57 = vpop.eup %7537  ;;  %v1435_v58 = vadd.f32 %v8511_v37, %v1354_v54  ;;  %v1424_v60 = vpop.f32.mrb[12].mxu0 }
 0x418   :  { %v6723_v61 = vpop.f32.mrb[11].mxu1  ;;  %v1151_v62 = vadd.f32 1.0, %v7538_v57  ;;  %7541 = vrcp.f32 %v1152_v53  ;;  %v6734_v2 = vpop.f32.mrb[13].mxu0  ;;  %v1425_v21 = vadd.f32 %v8517_v46, %v1424_v60 }
 0x419   :  { %v6243_v3 = vmul.f32 -1.442695, %v1435_v58  ;;  %v318_v2 = vlaneseq }
 0x41a   :  { %7543 = vrcp.f32 %v1151_v62 }
 0x41b   :  { %7545 = vpow2.f32 %v6243_v3  ;;  %v8601_v3 = vshrl.u32 %v318_v2, 7 }
 0x41d   :  { %v7540_v4 = vpop.eup %7539  ;;  %vm868_vm3 = vcmp.eq.s32.totalorder %v8601_v3, 0  ;;  %vm1449_vm4 = vcmp.eq.s32.totalorder %v8601_v3, 1  ;;  %vm2033_vm5 = vcmp.eq.s32.totalorder %v8601_v3, 2  ;;  %vm2618_vm6 = vcmp.eq.s32.totalorder %v8601_v3, 3 }
 0x41e   :  { %v1432_v5 = vadd.f32 1.0, %v7540_v4  ;;  %vm3203_vm7 = vcmp.eq.s32.totalorder %v8601_v3, 4  ;;  %vm3788_vm8 = vcmp.eq.s32.totalorder %v8601_v3, 5  ;;  %vm4373_vm9 = vcmp.eq.s32.totalorder %v8601_v3, 6 }
 0x41f   :  { %vm4958_vm10 = vcmp.eq.s32.totalorder %v8601_v3, 7 }
 0x420   :  { %7547 = vrcp.f32 %v1432_v5 }
 0x422   :  { %v7542_v7 = vpop.eup %7541 }
 0x423   :  { %v1184_v11 = vmul.f32 %v7542_v7, %v1136_v6  ;;  %v8604_v6 = vsub.s32 0, %v8601_v3 }
 0x424   :  { %v7544_v13 = vpop.eup %7543 }
 0x425   :  { %v7546_v15 = vpop.eup %7545  ;;  %1189 = vrot.lane.b32.xlu0 %v1184_v11, %s8090_s11  ;;  %v1183_v17 = vmul.f32 %v7544_v13, %v1180_v8  ;;  %v1209_v11 = vrot.slane %v8528_v28, 7 }
 0x426   :  { %v1439_v18 = vadd.f32 1.0, %v7546_v15  ;;  %v8611_v15 = vsub.s32 1, %v8601_v3 }
 0x427   :  { %1187 = vrot.lane.b32.xlu1 %v1183_v17, %s8090_s11 }
 0x428   :  { %7549 = vrcp.f32 %v1439_v18 }
 0x429   :  { %1161 = vrot.lane.b32.xlu0 %v1065_v33, %s8089_s24 }
 0x42a   :  { %v7548_v29 = vpop.eup %7547 }
 0x42b   :  { %v1442_v30 = vmul.f32 %v7548_v29, %v1425_v21  ;;  %1159 = vrot.lane.b32.xlu1 %v1158_v24, %s8089_s24  ;;  %v878_v21 = vrot.slane %v8523_v16, %v8604_v6  ;;  %v8628_v16 = vsel %vm1449_vm4, 1.0, %v8088_v1 }
 0x42d   :  { %v1443_v31 = vadd.f32 %v8520_v56, %v1442_v30 }
 0x42f   :  { %7551 = vtanh.f32 %v1443_v31 }
 0x432   :  { %v7550_v34 = vpop.eup %7549 }
 0x433   :  { %v1445_v36 = vsub.f32 1.0, %v7550_v34  ;;  %v1447_v40 = vmul.f32 %v7550_v34, %v8525_v19  ;;  %v8619_v34 = vsel %vm868_vm3, 1.0, %v8088_v1  ;;  %vm5656_vm3 = vcmask 64512  }
 0x439   :  { %v7552_v38 = vpop.eup %7551 }
 0x43a   :  { %v1446_v39 = vmul.f32 %v7552_v38, %v1445_v36 }
 0x43c   :  { %v8592_v41 = vadd.f32 %v1447_v40, %v1446_v39  ;;  %v880_v39 = vmul.f32 %v8619_v34, %v878_v21 }
 0x497   :  { %v1190_v42 = vpop.permute.xlu0 %1189 }
 0x498   :  { %v1194_v43 = vadd.f32 %v1190_v42, %v8430_v32 }
 0x499   :  { %v1188_v33 = vpop.permute.xlu1 %1187 }
 0x49a   :  { %7553 = vtanh.f32 %v1194_v43  ;;  %v1193_v44 = vadd.f32 %v1188_v33, %v8432_v35 }
 0x49b   :  { %v1162_v49 = vpop.permute.xlu0 %1161 }
 0x49c   :  { %7555 = vtanh.f32 %v1193_v44  ;;  %v1166_v52 = vadd.f32 %v1162_v49, %v8430_v32 }
 0x49d   :  { %v1160_v51 = vpop.permute.xlu1 %1159 }
 0x49e   :  { %v1165_v53 = vadd.f32 %v1160_v51, %v8432_v35  ;;  %v6238_v54 = vmul.f32 -1.442695, %v1166_v52 }
 0x4a0   :  { %v6237_v57 = vmul.f32 -1.442695, %v1165_v53  ;;  %7557 = vpow2.f32 %v6238_v54 }
 0x4a2   :  { %7559 = vpow2.f32 %v6237_v57 }
 0x4a4   :  { %v7554_v45 = vpop.eup %7553 }
 0x4a5   :  { %1203 = vrot.lane.b32.xlu0 %v7554_v45, %s8091_s5 }
 0x4a6   :  { %v7556_v48 = vpop.eup %7555 }
 0x4a7   :  { %1201 = vrot.lane.b32.xlu1 %v7556_v48, %s8091_s5 }
 0x4aa   :  { %v7558_v58 = vpop.eup %7557 }
 0x4ab   :  { %v1174_v61 = vadd.f32 1.0, %v7558_v58 }
 0x4ac   :  { %v7560_v60 = vpop.eup %7559 }
 0x4ad   :  { %v1173_v62 = vadd.f32 1.0, %v7560_v60  ;;  %7561 = vrcp.f32 %v1174_v61 }
 0x4af   :  { %7563 = vrcp.f32 %v1173_v62 }
 0x4b7   :  { %v7562_v4 = vpop.eup %7561 }
 0x4b8   :  { %v1198_v7 = vsub.f32 1.0, %v7562_v4  ;;  %v1213_v13 = vmul.f32 %v7562_v4, %v922_v25  ;;  %v874_v25 = vrot.slane %v8528_v28, %v8604_v6 }
 0x4b9   :  { %v7564_v5 = vpop.eup %7563 }
 0x4ba   :  { %v1197_v18 = vsub.f32 1.0, %v7564_v5  ;;  %v1212_v30 = vmul.f32 %v7564_v5, %v1209_v11  ;;  %v879_v33 = vmul.f32 %v8619_v34, %v874_v25 }
 0x517   :  { %v1204_v8 = vpop.permute.xlu0 %1203 }
 0x518   :  { %v1208_v17 = vmul.f32 %v1204_v8, %v1198_v7 }
 0x519   :  { %v1202_v24 = vpop.permute.xlu1 %1201 }
 0x51a   :  { %v8616_v29 = vadd.f32 %v1213_v13, %v1208_v17  ;;  %v1207_v31 = vmul.f32 %v1202_v24, %v1197_v18 }
 0x51c   :  { %v1459_v36 = vrot.slane %v8616_v29, %v8611_v15  ;;  %v8625_v38 = vadd.f32 %v1212_v30, %v1207_v31 }
 0x51e   :  { %v1461_v40 = vmul.f32 %v8628_v16, %v1459_v36  ;;  %v1455_v42 = vrot.slane %v8625_v38, %v8611_v15  ;;  %v1503_v43 = vrot.slane %v8625_v38, 1 }
 0x520   :  { %v8636_v28 = vadd.f32 %v1461_v40, %v880_v39  ;;  %v1460_v44 = vmul.f32 %v8628_v16, %v1455_v42  ;;  %v1504_v45 = vsel %vm923_vm2, %v8616_v29, %v1503_v43 }
 0x521   :  { %1505 = vrot.lane.b32.xlu1 %v1504_v45, %s8091_s5 }
 0x522   :  { %v8642_v48 = vadd.f32 %v1460_v44, %v879_v33 }
 0x593   :  { %v1506_v49 = vpop.permute.xlu1 %1505 }
 0x594   :  { %6744 = vmatmul.mubr.msk.f32.vlgmr.msra.gmra.mrb[12].mxu1 %vm207_vm1, %v1506_v49  ;;  %6755 = vmatmul.mubr.msk.f32.vlgmr.msra.gmra.mrb[14].mxu0 %vm207_vm1, %v1506_v49 }
 0x595   :  { %7258 = vmatpush3.bf16.msra.mxu1 %v8401_v23  ;;  %7264 = vmatpush3.bf16.msra.mxu0 %v8443_v47 }
 0x596   :  { %7259 = vmatprep.subr.bf16.mxu1 %v8086_v0  ;;  %7265 = vmatprep.subr.bf16.mxu0 %v8086_v0 }
 0x597   :  { %6765 = vmatprep.mubr.msk.f32.mxu1 %vm8087_vm0, %v8088_v1  ;;  %6776 = vmatprep.mubr.msk.f32.mxu0 %vm8087_vm0, %v8088_v1 }
 0x599   :  { %7261 = vmatpush3.bf16.msra.mxu1 %v8412_v27  ;;  %7267 = vmatpush3.bf16.msra.mxu0 %v8454_v50 }
 0x59a   :  { %7268 = vmatprep.subr.bf16.mxu1 %v8086_v0  ;;  %7274 = vmatprep.subr.bf16.mxu0 %v8086_v0 }
 0x59c   :  { %6766 = vmatmul.mubr.msk.f32.vlgmr.msra.gmra.mrb[14].mxu1 %vm207_vm1, %v1506_v49  ;;  %6777 = vmatmul.mubr.msk.f32.vlgmr.msra.gmra.mrb[16].mxu0 %vm207_vm1, %v8592_v41 }
 0x59d   :  { %7270 = vmatpush3.bf16.msra.mxu1 %v8467_v59  ;;  %7276 = vmatpush3.bf16.msra.mxu0 %v8482_v10 }
 0x59e   :  { %7271 = vmatprep.subr.bf16.mxu1 %v8086_v0  ;;  %7277 = vmatprep.subr.bf16.mxu0 %v8086_v0 }
 0x59f   :  { %6787 = vmatprep.mubr.msk.f32.mxu1 %vm8087_vm0, %v8088_v1  ;;  %6798 = vmatprep.mubr.msk.f32.mxu0 %vm8087_vm0, %v8088_v1 }
 0x5a1   :  { %7273 = vmatpush3.bf16.msra.mxu1 %v8470_v63  ;;  %7279 = vmatpush3.bf16.msra.mxu0 %v8486_v12 }
 0x5a2   :  { %7280 = vmatprep.subr.bf16.mxu1 %v8086_v0  ;;  %7286 = vmatprep.subr.bf16.mxu0 %v8086_v0 }
 0x5a4   :  { %6788 = vmatmul.mubr.msk.f32.vlgmr.msra.gmra.mrb[16].mxu1 %vm207_vm1, %v8592_v41  ;;  %6799 = vmatmul.mubr.msk.f32.vlgmr.msra.gmra.mrb[18].mxu0 %vm207_vm1, %v8592_v41 }
 0x5a5   :  { %7282 = vmatpush3.bf16.msra.mxu1 %v8389_v9  ;;  %7288 = vmatpush3.bf16.msra.mxu0 %v8397_v20 }
 0x5a6   :  { %7283 = vmatprep.subr.bf16.mxu1 %v8086_v0  ;;  %7289 = vmatprep.subr.bf16.mxu0 %v8086_v0 }
 0x5a7   :  { %6809 = vmatprep.mubr.msk.f32.mxu1 %vm8087_vm0, %v8088_v1  ;;  %6820 = vmatprep.mubr.msk.f32.mxu0 %vm8087_vm0, %v8088_v1 }
 0x5a9   :  { %7285 = vmatpush3.bf16.msra.mxu1 %v8393_v14  ;;  %7291 = vmatpush3.bf16.msra.mxu0 %v8406_v26 }
 0x5aa   :  { %7292 = vmatprep.subr.bf16.mxu1 %v8086_v0  ;;  %7298 = vmatprep.subr.bf16.mxu0 %v8086_v0 }
 0x667   :  { %v1575_v51 = vpop.f32.mrb[12].mxu1  ;;  %v1645_v52 = vpop.f32.mrb[14].mxu0 }
 0x668   :  { %v1720_v53 = vrot.slane %v1575_v51, 6  ;;  %v1721_v54 = vrot.slane %v1575_v51, 7  ;;  %v6745_v57 = vpop.f32.mrb[13].mxu1  ;;  %v6756_v58 = vpop.f32.mrb[15].mxu0 }
 0x66a   :  { %v1724_v60 = vadd.f32 %v1720_v53, %v8432_v35  ;;  %v1725_v61 = vadd.f32 %v1721_v54, %v8430_v32 }
 0x66c   :  { %v6248_v62 = vmul.f32 -1.442695, %v1724_v60  ;;  %v6249_v4 = vmul.f32 -1.442695, %v1725_v61  ;;  %v1739_v61 = vrot.slane %v1645_v52, 6 }
 0x66e   :  { %7565 = vpow2.f32 %v6248_v62 }
 0x66f   :  { %7567 = vpow2.f32 %v6249_v4  ;;  %v1715_v5 = vpop.f32.mrb[14].mxu1  ;;  %v1868_v7 = vpop.f32.mrb[16].mxu0 }
 0x670   :  { %v2012_v8 = vadd.f32 %v8506_v22, %v1868_v7  ;;  %v6767_v11 = vpop.f32.mrb[15].mxu1  ;;  %v6778_v13 = vpop.f32.mrb[17].mxu0  ;;  %v1716_v44 = vadd.f32 %v8461_v55, %v1715_v5  ;;  %v1740_v7 = vrot.slane %v1645_v52, 7 }
 0x672   :  { %v6255_v17 = vmul.f32 -1.442695, %v2012_v8  ;;  %v1762_v45 = vrot.slane %v1716_v44, 6  ;;  %v1763_v51 = vrot.slane %v1716_v44, 7 }
 0x674   :  { %7569 = vpow2.f32 %v6255_v17 }
 0x677   :  { %v1938_v18 = vpop.f32.mrb[16].mxu1  ;;  %v2008_v21 = vpop.f32.mrb[18].mxu0 }
 0x678   :  { %v7566_v24 = vpop.eup %7565  ;;  %v2019_v30 = vadd.f32 %v8511_v37, %v1938_v18  ;;  %v6789_v31 = vpop.f32.mrb[17].mxu1  ;;  %v2009_v62 = vadd.f32 %v8517_v46, %v2008_v21 }
 0x679   :  { %v6800_v25 = vpop.f32.mrb[19].mxu0  ;;  %v7568_v36 = vpop.eup %7567  ;;  %v1732_v39 = vadd.f32 1.0, %v7566_v24 }
 0x67a   :  { %v1733_v40 = vadd.f32 1.0, %v7568_v36  ;;  %v6256_v42 = vmul.f32 -1.442695, %v2019_v30 }
 0x67b   :  { %7571 = vrcp.f32 %v1732_v39 }
 0x67c   :  { %7573 = vrcp.f32 %v1733_v40 }
 0x67d   :  { %7575 = vpow2.f32 %v6256_v42 }
 0x67e   :  { %v7570_v43 = vpop.eup %7569 }
 0x67f   :  { %v2016_v33 = vadd.f32 1.0, %v7570_v43 }
 0x681   :  { %7577 = vrcp.f32 %v2016_v33 }
 0x685   :  { %v7572_v49 = vpop.eup %7571 }
 0x686   :  { %v7574_v53 = vpop.eup %7573  ;;  %v1766_v54 = vmul.f32 %v7572_v49, %v1762_v45 }
 0x687   :  { %v7576_v57 = vpop.eup %7575  ;;  %v1767_v58 = vmul.f32 %v7574_v53, %v1763_v51 }
 0x688   :  { %v2023_v60 = vadd.f32 1.0, %v7576_v57  ;;  %1770 = vrot.lane.b32.xlu0 %v1766_v54, %s8090_s11 }
 0x689   :  { %1772 = vrot.lane.b32.xlu1 %v1767_v58, %s8090_s11 }
 0x68a   :  { %7579 = vrcp.f32 %v2023_v60 }
 0x68b   :  { %v7578_v4 = vpop.eup %7577 }
 0x68c   :  { %v2026_v5 = vmul.f32 %v7578_v4, %v2009_v62  ;;  %1741 = vrot.lane.b32.xlu0 %v1739_v61, %s8089_s24  ;;  %v1792_v61 = vrot.slane %v8625_v38, 7  ;;  %v1793_v4 = vrot.slane %v8616_v29, 7 }
 0x68d   :  { %1743 = vrot.lane.b32.xlu1 %v1740_v7, %s8089_s24 }
 0x68e   :  { %v2027_v8 = vadd.f32 %v8520_v56, %v2026_v5  ;;  %v8712_v5 = vsub.s32 2, %v8601_v3 }
 0x690   :  { %7581 = vtanh.f32 %v2027_v8 }
 0x694   :  { %v7580_v11 = vpop.eup %7579 }
 0x695   :  { %v2029_v13 = vsub.f32 1.0, %v7580_v11  ;;  %v2031_v24 = vmul.f32 %v7580_v11, %v8592_v41 }
 0x69a   :  { %v7582_v17 = vpop.eup %7581 }
 0x69b   :  { %v2030_v18 = vmul.f32 %v7582_v17, %v2029_v13 }
 0x69d   :  { %v8701_v30 = vadd.f32 %v2031_v24, %v2030_v18 }
 0x6fa   :  { %v1771_v21 = vpop.permute.xlu0 %1770 }
 0x6fb   :  { %v1773_v31 = vpop.permute.xlu1 %1772  ;;  %v1776_v52 = vadd.f32 %v1771_v21, %v8432_v35 }
 0x6fc   :  { %v1777_v25 = vadd.f32 %v1773_v31, %v8430_v32  ;;  %v8723_v31 = vsel %vm2033_vm5, 1.0, %v8088_v1 }
 0x6fd   :  { %7583 = vtanh.f32 %v1776_v52 }
 0x6fe   :  { %7585 = vtanh.f32 %v1777_v25  ;;  %v1742_v40 = vpop.permute.xlu0 %1741 }
 0x6ff   :  { %v1744_v42 = vpop.permute.xlu1 %1743  ;;  %v1747_v43 = vadd.f32 %v1742_v40, %v8432_v35 }
 0x700   :  { %v1748_v33 = vadd.f32 %v1744_v42, %v8430_v32 }
 0x701   :  { %v6250_v44 = vmul.f32 -1.442695, %v1747_v43 }
 0x702   :  { %v6251_v45 = vmul.f32 -1.442695, %v1748_v33 }
 0x703   :  { %7587 = vpow2.f32 %v6250_v44 }
 0x704   :  { %7589 = vpow2.f32 %v6251_v45 }
 0x707   :  { %v7584_v36 = vpop.eup %7583 }
 0x708   :  { %v7586_v39 = vpop.eup %7585  ;;  %1784 = vrot.lane.b32.xlu0 %v7584_v36, %s8091_s5 }
 0x709   :  { %1786 = vrot.lane.b32.xlu1 %v7586_v39, %s8091_s5 }
 0x70d   :  { %v7588_v49 = vpop.eup %7587 }
 0x70e   :  { %v7590_v51 = vpop.eup %7589  ;;  %v1755_v53 = vadd.f32 1.0, %v7588_v49 }
 0x70f   :  { %v1756_v54 = vadd.f32 1.0, %v7590_v51 }
 0x710   :  { %7591 = vrcp.f32 %v1755_v53 }
 0x711   :  { %7593 = vrcp.f32 %v1756_v54 }
 0x71a   :  { %v7592_v57 = vpop.eup %7591 }
 0x71b   :  { %v7594_v58 = vpop.eup %7593  ;;  %v1780_v60 = vsub.f32 1.0, %v7592_v57  ;;  %v1796_v11 = vmul.f32 %v7592_v57, %v1792_v61 }
 0x71c   :  { %v1781_v62 = vsub.f32 1.0, %v7594_v58  ;;  %v1797_v17 = vmul.f32 %v7594_v58, %v1793_v4 }
 0x77a   :  { %v1785_v7 = vpop.permute.xlu0 %1784 }
 0x77b   :  { %v1787_v8 = vpop.permute.xlu1 %1786  ;;  %v1790_v13 = vmul.f32 %v1785_v7, %v1780_v60 }
 0x77c   :  { %v1791_v18 = vmul.f32 %v1787_v8, %v1781_v62 }
 0x77d   :  { %v8715_v24 = vadd.f32 %v1796_v11, %v1790_v13 }
 0x77e   :  { %v8717_v21 = vadd.f32 %v1797_v17, %v1791_v18 }
 0x77f   :  { %v2039_v38 = vrot.slane %v8715_v24, %v8712_v5  ;;  %v2087_v29 = vrot.slane %v8715_v24, 2 }
 0x780   :  { %v2043_v52 = vrot.slane %v8717_v21, %v8712_v5  ;;  %v2088_v25 = vrot.slane %v8717_v21, 1 }
 0x781   :  { %v2044_v36 = vmul.f32 %v8723_v31, %v2039_v38 }
 0x782   :  { %v2045_v39 = vmul.f32 %v8723_v31, %v2043_v52  ;;  %v2089_v40 = vsel %vm923_vm2, %v2088_v25, %v2087_v29 }
 0x783   :  { %v8732_v42 = vadd.f32 %v2044_v36, %v8642_v48  ;;  %2090 = vrot.lane.b32.xlu0 %v2089_v40, %s8091_s5 }
 0x784   :  { %v8736_v43 = vadd.f32 %v2045_v39, %v8636_v28 }
 0x7f5   :  { %v2091_v33 = vpop.permute.xlu0 %2090 }
 0x7f6   :  { %6810 = vmatmul.mubr.msk.f32.vlgmr.msra.gmra.mrb[18].mxu1 %vm207_vm1, %v2091_v33  ;;  %6821 = vmatmul.mubr.msk.f32.vlgmr.msra.gmra.mrb[20].mxu0 %vm207_vm1, %v2091_v33 }
 0x7f7   :  { %7294 = vmatpush3.bf16.msra.mxu1 %v8401_v23  ;;  %7300 = vmatpush3.bf16.msra.mxu0 %v8443_v47 }
 0x7f8   :  { %7295 = vmatprep.subr.bf16.mxu1 %v8086_v0  ;;  %7301 = vmatprep.subr.bf16.mxu0 %v8086_v0 }
 0x7f9   :  { %6831 = vmatprep.mubr.msk.f32.mxu1 %vm8087_vm0, %v8088_v1  ;;  %6842 = vmatprep.mubr.msk.f32.mxu0 %vm8087_vm0, %v8088_v1 }
 0x7fb   :  { %7297 = vmatpush3.bf16.msra.mxu1 %v8412_v27  ;;  %7303 = vmatpush3.bf16.msra.mxu0 %v8454_v50 }
 0x7fc   :  { %7304 = vmatprep.subr.bf16.mxu1 %v8086_v0  ;;  %7310 = vmatprep.subr.bf16.mxu0 %v8086_v0 }
 0x7fe   :  { %6832 = vmatmul.mubr.msk.f32.vlgmr.msra.gmra.mrb[20].mxu1 %vm207_vm1, %v2091_v33  ;;  %6843 = vmatmul.mubr.msk.f32.vlgmr.msra.gmra.mrb[22].mxu0 %vm207_vm1, %v8701_v30 }
 0x7ff   :  { %7306 = vmatpush3.bf16.msra.mxu1 %v8467_v59  ;;  %7312 = vmatpush3.bf16.msra.mxu0 %v8482_v10 }
 0x800   :  { %7307 = vmatprep.subr.bf16.mxu1 %v8086_v0  ;;  %7313 = vmatprep.subr.bf16.mxu0 %v8086_v0 }
 0x801   :  { %6853 = vmatprep.mubr.msk.f32.mxu1 %vm8087_vm0, %v8088_v1  ;;  %6864 = vmatprep.mubr.msk.f32.mxu0 %vm8087_vm0, %v8088_v1 }
 0x803   :  { %7309 = vmatpush3.bf16.msra.mxu1 %v8470_v63  ;;  %7315 = vmatpush3.bf16.msra.mxu0 %v8486_v12 }
 0x804   :  { %7316 = vmatprep.subr.bf16.mxu1 %v8086_v0  ;;  %7322 = vmatprep.subr.bf16.mxu0 %v8086_v0 }
 0x806   :  { %6854 = vmatmul.mubr.msk.f32.vlgmr.msra.gmra.mrb[22].mxu1 %vm207_vm1, %v8701_v30  ;;  %6865 = vmatmul.mubr.msk.f32.vlgmr.msra.gmra.mrb[24].mxu0 %vm207_vm1, %v8701_v30 }
 0x807   :  { %7318 = vmatpush3.bf16.msra.mxu1 %v8389_v9  ;;  %7324 = vmatpush3.bf16.msra.mxu0 %v8397_v20 }
 0x808   :  { %7319 = vmatprep.subr.bf16.mxu1 %v8086_v0  ;;  %7325 = vmatprep.subr.bf16.mxu0 %v8086_v0 }
 0x809   :  { %6875 = vmatprep.mubr.msk.f32.mxu1 %vm8087_vm0, %v8088_v1  ;;  %6886 = vmatprep.mubr.msk.f32.mxu0 %vm8087_vm0, %v8088_v1 }
 0x80b   :  { %7321 = vmatpush3.bf16.msra.mxu1 %v8393_v14  ;;  %7327 = vmatpush3.bf16.msra.mxu0 %v8406_v26 }
 0x80c   :  { %7328 = vmatprep.subr.bf16.mxu1 %v8086_v0  ;;  %7334 = vmatprep.subr.bf16.mxu0 %v8086_v0 }
 0x8c9   :  { %v2160_v28 = vpop.f32.mrb[18].mxu1  ;;  %v2230_v48 = vpop.f32.mrb[20].mxu0 }
 0x8ca   :  { %v2305_v44 = vrot.slane %v2160_v28, 5  ;;  %v2306_v45 = vrot.slane %v2160_v28, 6  ;;  %v6811_v49 = vpop.f32.mrb[19].mxu1  ;;  %v6822_v51 = vpop.f32.mrb[21].mxu0 }
 0x8cc   :  { %v2309_v53 = vadd.f32 %v2305_v44, %v8432_v35  ;;  %v2310_v54 = vadd.f32 %v2306_v45, %v8430_v32 }
 0x8ce   :  { %v6261_v57 = vmul.f32 -1.442695, %v2309_v53  ;;  %v6262_v58 = vmul.f32 -1.442695, %v2310_v54 }
 0x8d0   :  { %7595 = vpow2.f32 %v6261_v57  ;;  %v2324_v57 = vrot.slane %v2230_v48, 5 }
 0x8d1   :  { %7597 = vpow2.f32 %v6262_v58  ;;  %v2300_v60 = vpop.f32.mrb[20].mxu1  ;;  %v2453_v61 = vpop.f32.mrb[22].mxu0 }
 0x8d2   :  { %v2597_v62 = vadd.f32 %v8506_v22, %v2453_v61  ;;  %v6833_v4 = vpop.f32.mrb[21].mxu1  ;;  %v6844_v7 = vpop.f32.mrb[23].mxu0  ;;  %v2301_v33 = vadd.f32 %v8461_v55, %v2300_v60 }
 0x8d4   :  { %v6268_v8 = vmul.f32 -1.442695, %v2597_v62  ;;  %v2347_v28 = vrot.slane %v2301_v33, 5  ;;  %v2348_v45 = vrot.slane %v2301_v33, 6  ;;  %v2325_v62 = vrot.slane %v2230_v48, 6 }
 0x8d6   :  { %7599 = vpow2.f32 %v6268_v8 }
 0x8d9   :  { %v2523_v11 = vpop.f32.mrb[22].mxu1  ;;  %v2593_v13 = vpop.f32.mrb[24].mxu0 }
 0x8da   :  { %v7596_v17 = vpop.eup %7595  ;;  %v2604_v18 = vadd.f32 %v8511_v37, %v2523_v11  ;;  %v6855_v38 = vpop.f32.mrb[23].mxu1  ;;  %v2594_v58 = vadd.f32 %v8517_v46, %v2593_v13 }
 0x8db   :  { %v6866_v29 = vpop.f32.mrb[25].mxu0  ;;  %v7598_v52 = vpop.eup %7597  ;;  %v2317_v25 = vadd.f32 1.0, %v7596_v17 }
 0x8dc   :  { %v2318_v36 = vadd.f32 1.0, %v7598_v52  ;;  %v6269_v39 = vmul.f32 -1.442695, %v2604_v18 }
 0x8dd   :  { %7601 = vrcp.f32 %v2317_v25 }
 0x8de   :  { %7603 = vrcp.f32 %v2318_v36 }
 0x8df   :  { %7605 = vpow2.f32 %v6269_v39 }
 0x8e0   :  { %v7600_v40 = vpop.eup %7599 }
 0x8e1   :  { %v2601_v22 = vadd.f32 1.0, %v7600_v40 }
 0x8e3   :  { %7607 = vrcp.f32 %v2601_v22 }
 0x8e7   :  { %v7602_v44 = vpop.eup %7601 }
 0x8e8   :  { %v7604_v49 = vpop.eup %7603  ;;  %v2351_v51 = vmul.f32 %v7602_v44, %v2347_v28 }
 0x8e9   :  { %v7606_v37 = vpop.eup %7605  ;;  %v2352_v53 = vmul.f32 %v7604_v49, %v2348_v45 }
 0x8ea   :  { %v2608_v54 = vadd.f32 1.0, %v7606_v37  ;;  %2355 = vrot.lane.b32.xlu1 %v2351_v51, %s8090_s11 }
 0x8eb   :  { %2357 = vrot.lane.b32.xlu0 %v2352_v53, %s8090_s11  ;;  %v2377_v53 = vrot.slane %v8715_v24, 7 }
 0x8ec   :  { %7609 = vrcp.f32 %v2608_v54 }
 0x8ed   :  { %v7608_v61 = vpop.eup %7607 }
 0x8ee   :  { %v2611_v55 = vmul.f32 %v7608_v61, %v2594_v58  ;;  %2326 = vrot.lane.b32.xlu1 %v2324_v57, %s8089_s24  ;;  %v2378_v57 = vrot.slane %v8717_v21, 7  ;;  %v8806_v61 = vsub.s32 3, %v8601_v3 }
 0x8ef   :  { %2328 = vrot.lane.b32.xlu0 %v2325_v62, %s8089_s24 }
 0x8f0   :  { %v2612_v60 = vadd.f32 %v8520_v56, %v2611_v55 }
 0x8f2   :  { %7611 = vtanh.f32 %v2612_v60 }
 0x8f6   :  { %v7610_v4 = vpop.eup %7609 }
 0x8f7   :  { %v2614_v7 = vsub.f32 1.0, %v7610_v4  ;;  %v2616_v17 = vmul.f32 %v7610_v4, %v8701_v30 }
 0x8fc   :  { %v7612_v8 = vpop.eup %7611 }
 0x8fd   :  { %v2615_v11 = vmul.f32 %v7612_v8, %v2614_v7 }
 0x8ff   :  { %v8795_v18 = vadd.f32 %v2616_v17, %v2615_v11  ;;  %v8817_v17 = vsel %vm2618_vm6, 1.0, %v8088_v1 }
 0x95c   :  { %v2356_v46 = vpop.permute.xlu1 %2355 }
 0x95d   :  { %v2358_v13 = vpop.permute.xlu0 %2357  ;;  %v2361_v48 = vadd.f32 %v2356_v46, %v8432_v35 }
 0x95e   :  { %v2362_v38 = vadd.f32 %v2358_v13, %v8430_v32 }
 0x95f   :  { %7613 = vtanh.f32 %v2361_v48 }
 0x960   :  { %7615 = vtanh.f32 %v2362_v38  ;;  %v2327_v56 = vpop.permute.xlu1 %2326 }
 0x961   :  { %v2329_v25 = vpop.permute.xlu0 %2328  ;;  %v2332_v36 = vadd.f32 %v2327_v56, %v8432_v35 }
 0x962   :  { %v2333_v39 = vadd.f32 %v2329_v25, %v8430_v32 }
 0x963   :  { %v6263_v40 = vmul.f32 -1.442695, %v2332_v36 }
 0x964   :  { %v6264_v22 = vmul.f32 -1.442695, %v2333_v39 }
 0x965   :  { %7617 = vpow2.f32 %v6263_v40 }
 0x966   :  { %7619 = vpow2.f32 %v6264_v22 }
 0x969   :  { %v7614_v29 = vpop.eup %7613 }
 0x96a   :  { %v7616_v52 = vpop.eup %7615  ;;  %2369 = vrot.lane.b32.xlu1 %v7614_v29, %s8091_s5 }
 0x96b   :  { %2371 = vrot.lane.b32.xlu0 %v7616_v52, %s8091_s5 }
 0x96f   :  { %v7618_v33 = vpop.eup %7617 }
 0x970   :  { %v7620_v28 = vpop.eup %7619  ;;  %v2340_v44 = vadd.f32 1.0, %v7618_v33 }
 0x971   :  { %v2341_v45 = vadd.f32 1.0, %v7620_v28 }
 0x972   :  { %7621 = vrcp.f32 %v2340_v44 }
 0x973   :  { %7623 = vrcp.f32 %v2341_v45 }
 0x97c   :  { %v7622_v49 = vpop.eup %7621 }
 0x97d   :  { %v7624_v51 = vpop.eup %7623  ;;  %v2365_v37 = vsub.f32 1.0, %v7622_v49  ;;  %v2381_v55 = vmul.f32 %v7622_v49, %v2377_v53 }
 0x97e   :  { %v2366_v54 = vsub.f32 1.0, %v7624_v51  ;;  %v2382_v4 = vmul.f32 %v7624_v51, %v2378_v57 }
 0x9dc   :  { %v2370_v58 = vpop.permute.xlu1 %2369 }
 0x9dd   :  { %v2372_v62 = vpop.permute.xlu0 %2371  ;;  %v2375_v60 = vmul.f32 %v2370_v58, %v2365_v37  ;;  %v8882_v37 = vld [vmem:[%s9656_s7] ss:$0 sm:$0xff] }
 0x9de   :  { %v2376_v7 = vmul.f32 %v2372_v62, %v2366_v54 }
 0x9df   :  { %v8809_v8 = vadd.f32 %v2381_v55, %v2375_v60 }
 0x9e0   :  { %v8811_v11 = vadd.f32 %v2382_v4, %v2376_v7  ;;  %v8885_v4 = vld [vmem:[#allocation10] ss:$0 sm:$0xff] }
 0x9e1   :  { %v2624_v24 = vrot.slane %v8809_v8, %v8806_v61  ;;  %v2672_v21 = vrot.slane %v8809_v8, 3 }
 0x9e2   :  { %v2628_v46 = vrot.slane %v8811_v11, %v8806_v61  ;;  %v2673_v13 = vrot.slane %v8811_v11, 2 }
 0x9e3   :  { %v2629_v48 = vmul.f32 %v8817_v17, %v2624_v24 }
 0x9e4   :  { %v2630_v38 = vmul.f32 %v8817_v17, %v2628_v46  ;;  %v2674_v29 = vsel %vm923_vm2, %v2673_v13, %v2672_v21 }
 0x9e5   :  { %v8826_v52 = vadd.f32 %v2629_v48, %v8732_v42  ;;  %2675 = vrot.lane.b32.xlu1 %v2674_v29, %s8091_s5 }
 0x9e6   :  { %v8830_v56 = vadd.f32 %v2630_v38, %v8736_v43 }
 0xa57   :  { %v2676_v25 = vpop.permute.xlu1 %2675 }
 0xa58   :  { %6876 = vmatmul.mubr.msk.f32.vlgmr.msra.gmra.mrb[24].mxu1 %vm207_vm1, %v2676_v25  ;;  %6887 = vmatmul.mubr.msk.f32.vlgmr.msra.gmra.mrb[26].mxu0 %vm207_vm1, %v2676_v25 }
 0xa59   :  { %7330 = vmatpush3.bf16.msra.mxu1 %v8401_v23  ;;  %7336 = vmatpush3.bf16.msra.mxu0 %v8443_v47 }
 0xa5a   :  { %7331 = vmatprep.subr.bf16.mxu1 %v8086_v0  ;;  %7337 = vmatprep.subr.bf16.mxu0 %v8086_v0 }
 0xa5b   :  { %6897 = vmatprep.mubr.msk.f32.mxu1 %vm8087_vm0, %v8088_v1  ;;  %6908 = vmatprep.mubr.msk.f32.mxu0 %vm8087_vm0, %v8088_v1 }
 0xa5d   :  { %7333 = vmatpush3.bf16.msra.mxu1 %v8412_v27  ;;  %7339 = vmatpush3.bf16.msra.mxu0 %v8454_v50 }
 0xa5e   :  { %7340 = vmatprep.subr.bf16.mxu1 %v8086_v0  ;;  %7346 = vmatprep.subr.bf16.mxu0 %v8086_v0 }
 0xa60   :  { %6898 = vmatmul.mubr.msk.f32.vlgmr.msra.gmra.mrb[26].mxu1 %vm207_vm1, %v2676_v25  ;;  %6909 = vmatmul.mubr.msk.f32.vlgmr.msra.gmra.mrb[28].mxu0 %vm207_vm1, %v8795_v18 }
 0xa61   :  { %7342 = vmatpush3.bf16.msra.mxu1 %v8467_v59  ;;  %7348 = vmatpush3.bf16.msra.mxu0 %v8482_v10 }
 0xa62   :  { %7343 = vmatprep.subr.bf16.mxu1 %v8086_v0  ;;  %7349 = vmatprep.subr.bf16.mxu0 %v8086_v0 }
 0xa63   :  { %6919 = vmatprep.mubr.msk.f32.mxu1 %vm8087_vm0, %v8088_v1  ;;  %6930 = vmatprep.mubr.msk.f32.mxu0 %vm8087_vm0, %v8088_v1 }
 0xa65   :  { %7345 = vmatpush3.bf16.msra.mxu1 %v8470_v63  ;;  %7351 = vmatpush3.bf16.msra.mxu0 %v8486_v12 }
 0xa66   :  { %7352 = vmatprep.subr.bf16.mxu1 %v8086_v0  ;;  %7358 = vmatprep.subr.bf16.mxu0 %v8086_v0 }
 0xa68   :  { %6920 = vmatmul.mubr.msk.f32.vlgmr.msra.gmra.mrb[28].mxu1 %vm207_vm1, %v8795_v18  ;;  %6931 = vmatmul.mubr.msk.f32.vlgmr.msra.gmra.mrb[30].mxu0 %vm207_vm1, %v8795_v18 }
 0xa69   :  { %7354 = vmatpush3.bf16.msra.mxu1 %v8389_v9  ;;  %7360 = vmatpush3.bf16.msra.mxu0 %v8397_v20 }
 0xa6a   :  { %7355 = vmatprep.subr.bf16.mxu1 %v8086_v0  ;;  %7361 = vmatprep.subr.bf16.mxu0 %v8086_v0 }
 0xa6b   :  { %6941 = vmatprep.mubr.msk.f32.mxu1 %vm8087_vm0, %v8088_v1  ;;  %6952 = vmatprep.mubr.msk.f32.mxu0 %vm8087_vm0, %v8088_v1 }
 0xa6d   :  { %7357 = vmatpush3.bf16.msra.mxu1 %v8393_v14  ;;  %7363 = vmatpush3.bf16.msra.mxu0 %v8406_v26 }
 0xa6e   :  { %7364 = vmatprep.subr.bf16.mxu1 %v8086_v0  ;;  %7370 = vmatprep.subr.bf16.mxu0 %v8086_v0 }
 0xb2b   :  { %v2745_v42 = vpop.f32.mrb[24].mxu1  ;;  %v2815_v43 = vpop.f32.mrb[26].mxu0 }
 0xb2c   :  { %v2890_v36 = vrot.slane %v2745_v42, 4  ;;  %v2891_v39 = vrot.slane %v2745_v42, 5  ;;  %v6877_v40 = vpop.f32.mrb[25].mxu1  ;;  %v6888_v22 = vpop.f32.mrb[27].mxu0  ;;  %v8891_v42 = vld [vmem:[%s9679_s30] ss:$0 sm:$0xff] }
 0xb2e   :  { %v2894_v33 = vadd.f32 %v2890_v36, %v8432_v35  ;;  %v2895_v28 = vadd.f32 %v2891_v39, %v8430_v32 }
 0xb30   :  { %v6274_v44 = vmul.f32 -1.442695, %v2894_v33  ;;  %v6275_v45 = vmul.f32 -1.442695, %v2895_v28 }
 0xb32   :  { %7625 = vpow2.f32 %v6274_v44 }
 0xb33   :  { %7627 = vpow2.f32 %v6275_v45  ;;  %v2885_v49 = vpop.f32.mrb[26].mxu1  ;;  %v3038_v51 = vpop.f32.mrb[28].mxu0 }
 0xb34   :  { %v3182_v53 = vadd.f32 %v8882_v37, %v3038_v51  ;;  %v6899_v54 = vpop.f32.mrb[27].mxu1  ;;  %v6910_v57 = vpop.f32.mrb[29].mxu0  ;;  %v2886_v36 = vadd.f32 %v8891_v42, %v2885_v49 }
 0xb35   :  { %v8899_v54 = vld [vmem:[%s9659_s10] ss:$0 sm:$0xff] }
 0xb36   :  { %v6281_v58 = vmul.f32 -1.442695, %v3182_v53  ;;  %v2932_v39 = vrot.slane %v2886_v36, 4  ;;  %v2933_v22 = vrot.slane %v2886_v36, 5  ;;  %v2909_v53 = vrot.slane %v2815_v43, 4 }
 0xb38   :  { %7629 = vpow2.f32 %v6281_v58  ;;  %v2910_v58 = vrot.slane %v2815_v43, 5 }
 0xb3b   :  { %v3108_v62 = vpop.f32.mrb[28].mxu1  ;;  %v3178_v55 = vpop.f32.mrb[30].mxu0 }
 0xb3c   :  { %v7626_v60 = vpop.eup %7625  ;;  %v3189_v7 = vadd.f32 %v8885_v4, %v3108_v62  ;;  %v6921_v24 = vpop.f32.mrb[29].mxu1  ;;  %v3179_v49 = vadd.f32 %v8899_v54, %v3178_v55 }
 0xb3d   :  { %v6932_v21 = vpop.f32.mrb[31].mxu0  ;;  %v7628_v46 = vpop.eup %7627  ;;  %v2902_v13 = vadd.f32 1.0, %v7626_v60  ;;  %v8904_v60 = vld [vmem:[#allocation11] ss:$0 sm:$0xff] }
 0xb3e   :  { %v2903_v48 = vadd.f32 1.0, %v7628_v46  ;;  %v6282_v38 = vmul.f32 -1.442695, %v3189_v7 }
 0xb3f   :  { %7631 = vrcp.f32 %v2902_v13 }
 0xb40   :  { %7633 = vrcp.f32 %v2903_v48 }
 0xb41   :  { %7635 = vpow2.f32 %v6282_v38 }
 0xb42   :  { %v7630_v29 = vpop.eup %7629 }
 0xb43   :  { %v3186_v25 = vadd.f32 1.0, %v7630_v29 }
 0xb45   :  { %7637 = vrcp.f32 %v3186_v25 }
 0xb49   :  { %v7632_v40 = vpop.eup %7631 }
 0xb4a   :  { %v7634_v33 = vpop.eup %7633  ;;  %v2936_v28 = vmul.f32 %v7632_v40, %v2932_v39 }
 0xb4b   :  { %v7636_v44 = vpop.eup %7635  ;;  %v2937_v45 = vmul.f32 %v7634_v33, %v2933_v22 }
 0xb4c   :  { %v3193_v51 = vadd.f32 1.0, %v7636_v44  ;;  %2940 = vrot.lane.b32.xlu0 %v2936_v28, %s8090_s11 }
 0xb4d   :  { %2942 = vrot.lane.b32.xlu1 %v2937_v45, %s8090_s11 }
 0xb4e   :  { %7639 = vrcp.f32 %v3193_v51 }
 0xb4f   :  { %v7638_v57 = vpop.eup %7637 }
 0xb50   :  { %v3196_v62 = vmul.f32 %v7638_v57, %v3179_v49  ;;  %2911 = vrot.lane.b32.xlu0 %v2909_v53, %s8089_s24 }
 0xb51   :  { %2913 = vrot.lane.b32.xlu1 %v2910_v58, %s8089_s24 }
 0xb52   :  { %v3197_v7 = vadd.f32 %v8904_v60, %v3196_v62 }
 0xb54   :  { %7641 = vtanh.f32 %v3197_v7 }
 0xb58   :  { %v7640_v24 = vpop.eup %7639 }
 0xb59   :  { %v3199_v21 = vsub.f32 1.0, %v7640_v24  ;;  %v3201_v48 = vmul.f32 %v7640_v24, %v8795_v18  ;;  %v2962_v24 = vrot.slane %v8809_v8, 7 }
 0xb5e   :  { %v7642_v46 = vpop.eup %7641 }
 0xb5f   :  { %v3200_v13 = vmul.f32 %v7642_v46, %v3199_v21  ;;  %v2963_v46 = vrot.slane %v8811_v11, 7 }
 0xb61   :  { %v8908_v55 = vadd.f32 %v3201_v48, %v3200_v13  ;;  %v8919_v48 = vsub.s32 4, %v8601_v3 }
 0xbbe   :  { %v2941_v43 = vpop.permute.xlu0 %2940 }
 0xbbf   :  { %v2943_v38 = vpop.permute.xlu1 %2942  ;;  %v2946_v29 = vadd.f32 %v2941_v43, %v8432_v35 }
 0xbc0   :  { %v2947_v25 = vadd.f32 %v2943_v38, %v8430_v32 }
 0xbc1   :  { %7643 = vtanh.f32 %v2946_v29 }
 0xbc2   :  { %7645 = vtanh.f32 %v2947_v25  ;;  %v2912_v40 = vpop.permute.xlu0 %2911 }
 0xbc3   :  { %v2914_v22 = vpop.permute.xlu1 %2913  ;;  %v2917_v33 = vadd.f32 %v2912_v40, %v8432_v35 }
 0xbc4   :  { %v2918_v28 = vadd.f32 %v2914_v22, %v8430_v32  ;;  %v8930_v22 = vsel %vm3203_vm7, 1.0, %v8088_v1 }
 0xbc5   :  { %v6276_v44 = vmul.f32 -1.442695, %v2917_v33 }
 0xbc6   :  { %v6277_v45 = vmul.f32 -1.442695, %v2918_v28 }
 0xbc7   :  { %7647 = vpow2.f32 %v6276_v44 }
 0xbc8   :  { %7649 = vpow2.f32 %v6277_v45 }
 0xbcb   :  { %v7644_v36 = vpop.eup %7643 }
 0xbcc   :  { %v7646_v39 = vpop.eup %7645  ;;  %2954 = vrot.lane.b32.xlu0 %v7644_v36, %s8091_s5 }
 0xbcd   :  { %2956 = vrot.lane.b32.xlu1 %v7646_v39, %s8091_s5 }
 0xbd1   :  { %v7648_v51 = vpop.eup %7647 }
 0xbd2   :  { %v7650_v53 = vpop.eup %7649  ;;  %v2925_v49 = vadd.f32 1.0, %v7648_v51 }
 0xbd3   :  { %v2926_v57 = vadd.f32 1.0, %v7650_v53 }
 0xbd4   :  { %7651 = vrcp.f32 %v2925_v49 }
 0xbd5   :  { %7653 = vrcp.f32 %v2926_v57 }
 0xbde   :  { %v7652_v58 = vpop.eup %7651 }
 0xbdf   :  { %v7654_v62 = vpop.eup %7653  ;;  %v2950_v7 = vsub.f32 1.0, %v7652_v58  ;;  %v2966_v38 = vmul.f32 %v7652_v58, %v2962_v24 }
 0xbe0   :  { %v2951_v21 = vsub.f32 1.0, %v7654_v62  ;;  %v2967_v25 = vmul.f32 %v7654_v62, %v2963_v46 }
 0xc3e   :  { %v2955_v13 = vpop.permute.xlu0 %2954 }
 0xc3f   :  { %v2957_v43 = vpop.permute.xlu1 %2956  ;;  %v2960_v29 = vmul.f32 %v2955_v13, %v2950_v7 }
 0xc40   :  { %v2961_v36 = vmul.f32 %v2957_v43, %v2951_v21 }
 0xc41   :  { %v8922_v39 = vadd.f32 %v2966_v38, %v2960_v29 }
 0xc42   :  { %v8924_v40 = vadd.f32 %v2967_v25, %v2961_v36 }
 0xc43   :  { %v3209_v8 = vrot.slane %v8922_v39, %v8919_v48  ;;  %v3257_v11 = vrot.slane %v8922_v39, 4 }
 0xc44   :  { %v3213_v33 = vrot.slane %v8924_v40, %v8919_v48  ;;  %v3258_v28 = vrot.slane %v8924_v40, 3 }
 0xc45   :  { %v3214_v44 = vmul.f32 %v8930_v22, %v3209_v8 }
 0xc46   :  { %v3215_v45 = vmul.f32 %v8930_v22, %v3213_v33  ;;  %v3259_v51 = vsel %vm923_vm2, %v3258_v28, %v3257_v11 }
 0xc47   :  { %3260 = vrot.lane.b32.xlu0 %v3259_v51, %s8091_s5  ;;  %v8940_v53 = vadd.f32 %v3214_v44, %v8826_v52 }
 0xc48   :  { %v8943_v49 = vadd.f32 %v3215_v45, %v8830_v56 }
 0xcb9   :  { %v3261_v57 = vpop.permute.xlu0 %3260 }
 0xcba   :  { %6942 = vmatmul.mubr.msk.f32.vlgmr.msra.gmra.mrb[30].mxu1 %vm207_vm1, %v3261_v57  ;;  %6953 = vmatmul.mubr.msk.f32.vlgmr.msra.gmra.mrb[32].mxu0 %vm207_vm1, %v3261_v57 }
 0xcbb   :  { %7366 = vmatpush3.bf16.msra.mxu1 %v8401_v23  ;;  %7372 = vmatpush3.bf16.msra.mxu0 %v8443_v47 }
 0xcbc   :  { %7367 = vmatprep.subr.bf16.mxu1 %v8086_v0  ;;  %7373 = vmatprep.subr.bf16.mxu0 %v8086_v0 }
 0xcbd   :  { %6963 = vmatprep.mubr.msk.f32.mxu1 %vm8087_vm0, %v8088_v1  ;;  %6974 = vmatprep.mubr.msk.f32.mxu0 %vm8087_vm0, %v8088_v1 }
 0xcbf   :  { %7369 = vmatpush3.bf16.msra.mxu1 %v8412_v27  ;;  %7375 = vmatpush3.bf16.msra.mxu0 %v8454_v50 }
 0xcc0   :  { %7376 = vmatprep.subr.bf16.mxu1 %v8086_v0  ;;  %7382 = vmatprep.subr.bf16.mxu0 %v8086_v0 }
 0xcc2   :  { %6964 = vmatmul.mubr.msk.f32.vlgmr.msra.gmra.mrb[32].mxu1 %vm207_vm1, %v3261_v57  ;;  %6975 = vmatmul.mubr.msk.f32.vlgmr.msra.gmra.mrb[34].mxu0 %vm207_vm1, %v8908_v55 }
 0xcc3   :  { %7378 = vmatpush3.bf16.msra.mxu1 %v8467_v59  ;;  %7384 = vmatpush3.bf16.msra.mxu0 %v8482_v10 }
 0xcc4   :  { %7379 = vmatprep.subr.bf16.mxu1 %v8086_v0  ;;  %7385 = vmatprep.subr.bf16.mxu0 %v8086_v0 }
 0xcc5   :  { %6985 = vmatprep.mubr.msk.f32.mxu1 %vm8087_vm0, %v8088_v1  ;;  %6996 = vmatprep.mubr.msk.f32.mxu0 %vm8087_vm0, %v8088_v1 }
 0xcc7   :  { %7381 = vmatpush3.bf16.msra.mxu1 %v8470_v63  ;;  %7387 = vmatpush3.bf16.msra.mxu0 %v8486_v12 }
 0xcc8   :  { %7388 = vmatprep.subr.bf16.mxu1 %v8086_v0  ;;  %7394 = vmatprep.subr.bf16.mxu0 %v8086_v0 }
 0xcca   :  { %6986 = vmatmul.mubr.msk.f32.vlgmr.msra.gmra.mrb[34].mxu1 %vm207_vm1, %v8908_v55  ;;  %6997 = vmatmul.mubr.msk.f32.vlgmr.msra.gmra.mrb[36].mxu0 %vm207_vm1, %v8908_v55 }
 0xccb   :  { %7390 = vmatpush3.bf16.msra.mxu1 %v8389_v9  ;;  %7396 = vmatpush3.bf16.msra.mxu0 %v8397_v20 }
 0xccc   :  { %7391 = vmatprep.subr.bf16.mxu1 %v8086_v0  ;;  %7397 = vmatprep.subr.bf16.mxu0 %v8086_v0 }
 0xccd   :  { %7007 = vmatprep.mubr.msk.f32.mxu1 %vm8087_vm0, %v8088_v1  ;;  %7018 = vmatprep.mubr.msk.f32.mxu0 %vm8087_vm0, %v8088_v1 }
 0xccf   :  { %7393 = vmatpush3.bf16.msra.mxu1 %v8393_v14  ;;  %7399 = vmatpush3.bf16.msra.mxu0 %v8406_v26 }
 0xcd0   :  { %7400 = vmatprep.subr.bf16.mxu1 %v8086_v0  ;;  %7406 = vmatprep.subr.bf16.mxu0 %v8086_v0 }
 0xd8d   :  { %v3330_v52 = vpop.f32.mrb[30].mxu1  ;;  %v3400_v56 = vpop.f32.mrb[32].mxu0 }
 0xd8e   :  { %v3475_v58 = vrot.slane %v3330_v52, 3  ;;  %v3476_v62 = vrot.slane %v3330_v52, 4  ;;  %v6943_v7 = vpop.f32.mrb[31].mxu1  ;;  %v6954_v24 = vpop.f32.mrb[33].mxu0 }
 0xd90   :  { %v3479_v21 = vadd.f32 %v3475_v58, %v8432_v35  ;;  %v3480_v46 = vadd.f32 %v3476_v62, %v8430_v32 }
 0xd92   :  { %v6287_v13 = vmul.f32 -1.442695, %v3479_v21  ;;  %v6288_v43 = vmul.f32 -1.442695, %v3480_v46 }
 0xd94   :  { %7655 = vpow2.f32 %v6287_v13 }
 0xd95   :  { %7657 = vpow2.f32 %v6288_v43  ;;  %v3470_v38 = vpop.f32.mrb[32].mxu1  ;;  %v3623_v29 = vpop.f32.mrb[34].mxu0 }
 0xd96   :  { %v3767_v25 = vadd.f32 %v8882_v37, %v3623_v29  ;;  %v6965_v36 = vpop.f32.mrb[33].mxu1  ;;  %v6976_v8 = vpop.f32.mrb[35].mxu0  ;;  %v3471_v46 = vadd.f32 %v8891_v42, %v3470_v38 }
 0xd98   :  { %v6294_v11 = vmul.f32 -1.442695, %v3767_v25  ;;  %v3517_v13 = vrot.slane %v3471_v46, 3  ;;  %v3518_v29 = vrot.slane %v3471_v46, 4 }
 0xd9a   :  { %7659 = vpow2.f32 %v6294_v11 }
 0xd9d   :  { %v3693_v33 = vpop.f32.mrb[34].mxu1  ;;  %v3763_v28 = vpop.f32.mrb[36].mxu0 }
 0xd9e   :  { %v7656_v44 = vpop.eup %7655  ;;  %v3774_v45 = vadd.f32 %v8885_v4, %v3693_v33  ;;  %v6987_v51 = vpop.f32.mrb[35].mxu1 }
 0xd9f   :  { %v6998_v57 = vpop.f32.mrb[37].mxu0  ;;  %v7658_v52 = vpop.eup %7657  ;;  %v3487_v58 = vadd.f32 1.0, %v7656_v44  ;;  %v3494_v44 = vrot.slane %v3400_v56, 3 }
 0xda0   :  { %v3488_v62 = vadd.f32 1.0, %v7658_v52  ;;  %v6295_v7 = vmul.f32 -1.442695, %v3774_v45  ;;  %v3764_v45 = vadd.f32 %v8899_v54, %v3763_v28  ;;  %v3495_v57 = vrot.slane %v3400_v56, 4 }
 0xda1   :  { %7661 = vrcp.f32 %v3487_v58 }
 0xda2   :  { %7663 = vrcp.f32 %v3488_v62 }
 0xda3   :  { %7665 = vpow2.f32 %v6295_v7 }
 0xda4   :  { %v7660_v24 = vpop.eup %7659 }
 0xda5   :  { %v3771_v21 = vadd.f32 1.0, %v7660_v24 }
 0xda7   :  { %7667 = vrcp.f32 %v3771_v21 }
 0xdab   :  { %v7662_v43 = vpop.eup %7661 }
 0xdac   :  { %v7664_v25 = vpop.eup %7663  ;;  %v3521_v36 = vmul.f32 %v7662_v43, %v3517_v13 }
 0xdad   :  { %v7666_v8 = vpop.eup %7665  ;;  %v3522_v11 = vmul.f32 %v7664_v25, %v3518_v29 }
 0xdae   :  { %v3778_v33 = vadd.f32 1.0, %v7666_v8  ;;  %3525 = vrot.lane.b32.xlu1 %v3521_v36, %s8090_s11 }
 0xdaf   :  { %3527 = vrot.lane.b32.xlu0 %v3522_v11, %s8090_s11 }
 0xdb0   :  { %7669 = vrcp.f32 %v3778_v33 }
 0xdb1   :  { %v7668_v51 = vpop.eup %7667 }
 0xdb2   :  { %v3781_v38 = vmul.f32 %v7668_v51, %v3764_v45  ;;  %3496 = vrot.lane.b32.xlu1 %v3494_v44, %s8089_s24 }
 0xdb3   :  { %3498 = vrot.lane.b32.xlu0 %v3495_v57, %s8089_s24 }
 0xdb4   :  { %v3782_v52 = vadd.f32 %v8904_v60, %v3781_v38 }
 0xdb6   :  { %7671 = vtanh.f32 %v3782_v52 }
 0xdba   :  { %v7670_v58 = vpop.eup %7669 }
 0xdbb   :  { %v3784_v62 = vsub.f32 1.0, %v7670_v58  ;;  %v3786_v21 = vmul.f32 %v7670_v58, %v8908_v55 }
 0xdc0   :  { %v7672_v7 = vpop.eup %7671 }
 0xdc1   :  { %v3785_v24 = vmul.f32 %v7672_v7, %v3784_v62 }
 0xdc3   :  { %v9002_v46 = vadd.f32 %v3786_v21, %v3785_v24  ;;  %v3547_v24 = vrot.slane %v8922_v39, 7 }
 0xe20   :  { %v3526_v28 = vpop.permute.xlu1 %3525 }
 0xe21   :  { %v3528_v13 = vpop.permute.xlu0 %3527  ;;  %v3531_v56 = vadd.f32 %v3526_v28, %v8432_v35  ;;  %v3548_v28 = vrot.slane %v8924_v40, 7 }
 0xe22   :  { %v3532_v43 = vadd.f32 %v3528_v13, %v8430_v32 }
 0xe23   :  { %7673 = vtanh.f32 %v3531_v56  ;;  %v9013_v56 = vsub.s32 5, %v8601_v3 }
 0xe24   :  { %7675 = vtanh.f32 %v3532_v43  ;;  %v3497_v36 = vpop.permute.xlu1 %3496 }
 0xe25   :  { %v3499_v8 = vpop.permute.xlu0 %3498  ;;  %v3502_v11 = vadd.f32 %v3497_v36, %v8432_v35 }
 0xe26   :  { %v3503_v33 = vadd.f32 %v3499_v8, %v8430_v32 }
 0xe27   :  { %v6289_v44 = vmul.f32 -1.442695, %v3502_v11 }
 0xe28   :  { %v6290_v45 = vmul.f32 -1.442695, %v3503_v33 }
 0xe29   :  { %7677 = vpow2.f32 %v6289_v44  ;;  %v9024_v44 = vsel %vm3788_vm8, 1.0, %v8088_v1 }
 0xe2a   :  { %7679 = vpow2.f32 %v6290_v45 }
 0xe2d   :  { %v7674_v29 = vpop.eup %7673 }
 0xe2e   :  { %v7676_v25 = vpop.eup %7675  ;;  %3539 = vrot.lane.b32.xlu1 %v7674_v29, %s8091_s5 }
 0xe2f   :  { %3541 = vrot.lane.b32.xlu0 %v7676_v25, %s8091_s5 }
 0xe33   :  { %v7678_v51 = vpop.eup %7677 }
 0xe34   :  { %v7680_v57 = vpop.eup %7679  ;;  %v3510_v38 = vadd.f32 1.0, %v7678_v51 }
 0xe35   :  { %v3511_v52 = vadd.f32 1.0, %v7680_v57 }
 0xe36   :  { %7681 = vrcp.f32 %v3510_v38 }
 0xe37   :  { %7683 = vrcp.f32 %v3511_v52 }
 0xe40   :  { %v7682_v58 = vpop.eup %7681 }
 0xe41   :  { %v7684_v62 = vpop.eup %7683  ;;  %v3535_v7 = vsub.f32 1.0, %v7682_v58  ;;  %v3551_v29 = vmul.f32 %v7682_v58, %v3547_v24 }
 0xe42   :  { %v3536_v21 = vsub.f32 1.0, %v7684_v62  ;;  %v3552_v36 = vmul.f32 %v7684_v62, %v3548_v28 }
 0xea0   :  { %v3540_v13 = vpop.permute.xlu1 %3539 }
 0xea1   :  { %v3542_v43 = vpop.permute.xlu0 %3541  ;;  %v3545_v25 = vmul.f32 %v3540_v13, %v3535_v7 }
 0xea2   :  { %v3546_v8 = vmul.f32 %v3542_v43, %v3536_v21 }
 0xea3   :  { %v9016_v11 = vadd.f32 %v3551_v29, %v3545_v25 }
 0xea4   :  { %v9018_v33 = vadd.f32 %v3552_v36, %v3546_v8 }
 0xea5   :  { %v3794_v39 = vrot.slane %v9016_v11, %v9013_v56  ;;  %v3842_v40 = vrot.slane %v9016_v11, 5 }
 0xea6   :  { %v3798_v45 = vrot.slane %v9018_v33, %v9013_v56  ;;  %v3843_v51 = vrot.slane %v9018_v33, 4 }
 0xea7   :  { %v3799_v57 = vmul.f32 %v9024_v44, %v3794_v39 }
 0xea8   :  { %v3800_v38 = vmul.f32 %v9024_v44, %v3798_v45  ;;  %v3844_v52 = vsel %vm923_vm2, %v3843_v51, %v3842_v40 }
 0xea9   :  { %3845 = vrot.lane.b32.xlu1 %v3844_v52, %s8091_s5  ;;  %v9034_v58 = vadd.f32 %v3799_v57, %v8940_v53 }
 0xeaa   :  { %v9037_v62 = vadd.f32 %v3800_v38, %v8943_v49 }
 0xf1b   :  { %v3846_v7 = vpop.permute.xlu1 %3845 }
 0xf1c   :  { %7008 = vmatmul.mubr.msk.f32.vlgmr.msra.gmra.mrb[36].mxu1 %vm207_vm1, %v3846_v7  ;;  %7019 = vmatmul.mubr.msk.f32.vlgmr.msra.gmra.mrb[38].mxu0 %vm207_vm1, %v3846_v7 }
 0xf1d   :  { %7402 = vmatpush3.bf16.msra.mxu1 %v8401_v23  ;;  %7408 = vmatpush3.bf16.msra.mxu0 %v8443_v47 }
 0xf1e   :  { %7403 = vmatprep.subr.bf16.mxu1 %v8086_v0  ;;  %7409 = vmatprep.subr.bf16.mxu0 %v8086_v0 }
 0xf1f   :  { %7029 = vmatprep.mubr.msk.f32.mxu1 %vm8087_vm0, %v8088_v1  ;;  %7040 = vmatprep.mubr.msk.f32.mxu0 %vm8087_vm0, %v8088_v1 }
 0xf21   :  { %7405 = vmatpush3.bf16.msra.mxu1 %v8412_v27  ;;  %7411 = vmatpush3.bf16.msra.mxu0 %v8454_v50 }
 0xf22   :  { %7412 = vmatprep.subr.bf16.mxu1 %v8086_v0  ;;  %7418 = vmatprep.subr.bf16.mxu0 %v8086_v0 }
 0xf24   :  { %7030 = vmatmul.mubr.msk.f32.vlgmr.msra.gmra.mrb[38].mxu1 %vm207_vm1, %v3846_v7  ;;  %7041 = vmatmul.mubr.msk.f32.vlgmr.msra.gmra.mrb[40].mxu0 %vm207_vm1, %v9002_v46 }
 0xf25   :  { %7414 = vmatpush3.bf16.msra.mxu1 %v8467_v59  ;;  %7420 = vmatpush3.bf16.msra.mxu0 %v8482_v10 }
 0xf26   :  { %7415 = vmatprep.subr.bf16.mxu1 %v8086_v0  ;;  %7421 = vmatprep.subr.bf16.mxu0 %v8086_v0 }
 0xf27   :  { %7051 = vmatprep.mubr.msk.f32.mxu1 %vm8087_vm0, %v8088_v1  ;;  %7062 = vmatprep.mubr.msk.f32.mxu0 %vm8087_vm0, %v8088_v1 }
 0xf29   :  { %7417 = vmatpush3.bf16.msra.mxu1 %v8470_v63  ;;  %7423 = vmatpush3.bf16.msra.mxu0 %v8486_v12 }
 0xf2a   :  { %7424 = vmatprep.subr.bf16.mxu1 %v8086_v0  ;;  %7430 = vmatprep.subr.bf16.mxu0 %v8086_v0 }
 0xf2c   :  { %7052 = vmatmul.mubr.msk.f32.vlgmr.msra.gmra.mrb[40].mxu1 %vm207_vm1, %v9002_v46  ;;  %7063 = vmatmul.mubr.msk.f32.vlgmr.msra.gmra.mrb[42].mxu0 %vm207_vm1, %v9002_v46 }
 0xf2d   :  { %7426 = vmatpush3.bf16.msra.mxu1 %v8389_v9  ;;  %7432 = vmatpush3.bf16.msra.mxu0 %v8397_v20 }
 0xf2e   :  { %7427 = vmatprep.subr.bf16.mxu1 %v8086_v0  ;;  %7433 = vmatprep.subr.bf16.mxu0 %v8086_v0 }
 0xf2f   :  { %7073 = vmatprep.mubr.msk.f32.mxu1 %vm8087_vm0, %v8088_v1  ;;  %7084 = vmatprep.mubr.msk.f32.mxu0 %vm8087_vm0, %v8088_v1 }
 0xf31   :  { %7429 = vmatpush3.bf16.msra.mxu1 %v8393_v14  ;;  %7435 = vmatpush3.bf16.msra.mxu0 %v8406_v26 }
 0xf32   :  { %7436 = vmatprep.subr.bf16.mxu1 %v8086_v0  ;;  %7442 = vmatprep.subr.bf16.mxu0 %v8086_v0 }
 0xfef   :  { %v3915_v9 = vpop.f32.mrb[36].mxu1  ;;  %v3985_v20 = vpop.f32.mrb[38].mxu0 }
 0xff0   :  { %v4060_v53 = vrot.slane %v3915_v9, 2  ;;  %v4061_v49 = vrot.slane %v3915_v9, 3  ;;  %v7009_v24 = vpop.f32.mrb[37].mxu1  ;;  %v7020_v21 = vpop.f32.mrb[39].mxu0 }
 0xff2   :  { %v4064_v28 = vadd.f32 %v4060_v53, %v8432_v35  ;;  %v4065_v13 = vadd.f32 %v4061_v49, %v8430_v32 }
 0xff4   :  { %v6300_v43 = vmul.f32 -1.442695, %v4064_v28  ;;  %v6301_v29 = vmul.f32 -1.442695, %v4065_v13 }
 0xff6   :  { %7685 = vpow2.f32 %v6300_v43 }
 0xff7   :  { %7687 = vpow2.f32 %v6301_v29  ;;  %v4055_v14 = vpop.f32.mrb[38].mxu1  ;;  %v4208_v26 = vpop.f32.mrb[40].mxu0 }
 0xff8   :  { %v4352_v25 = vadd.f32 %v8882_v37, %v4208_v26  ;;  %v7031_v36 = vpop.f32.mrb[39].mxu1  ;;  %v7042_v8 = vpop.f32.mrb[41].mxu0  ;;  %v4056_v28 = vadd.f32 %v8891_v42, %v4055_v14 }
 0xffa   :  { %v6307_v39 = vmul.f32 -1.442695, %v4352_v25  ;;  %v4102_v13 = vrot.slane %v4056_v28, 2  ;;  %v4103_v29 = vrot.slane %v4056_v28, 3 }
 0xffc   :  { %7689 = vpow2.f32 %v6307_v39 }
 0xfff   :  { %v4278_v40 = vpop.f32.mrb[40].mxu1  ;;  %v4348_v45 = vpop.f32.mrb[42].mxu0 }
0x1000   :  { %v7686_v51 = vpop.eup %7685  ;;  %v4359_v57 = vadd.f32 %v8885_v4, %v4278_v40  ;;  %v7053_v38 = vpop.f32.mrb[41].mxu1  ;;  %v4079_v40 = vrot.slane %v3985_v20, 2 }
0x1001   :  { %v7064_v52 = vpop.f32.mrb[43].mxu0  ;;  %v7688_v7 = vpop.eup %7687  ;;  %v4072_v9 = vadd.f32 1.0, %v7686_v51  ;;  %v4349_v51 = vadd.f32 %v8899_v54, %v4348_v45  ;;  %v4080_v38 = vrot.slane %v3985_v20, 3 }
0x1002   :  { %v4073_v53 = vadd.f32 1.0, %v7688_v7  ;;  %v6308_v49 = vmul.f32 -1.442695, %v4359_v57 }
0x1003   :  { %7691 = vrcp.f32 %v4072_v9 }
0x1004   :  { %7693 = vrcp.f32 %v4073_v53 }
0x1005   :  { %7695 = vpow2.f32 %v6308_v49 }
0x1006   :  { %v7690_v24 = vpop.eup %7689 }
0x1007   :  { %v4356_v21 = vadd.f32 1.0, %v7690_v24 }
0x1009   :  { %7697 = vrcp.f32 %v4356_v21 }
0x100d   :  { %v7692_v43 = vpop.eup %7691 }
0x100e   :  { %v7694_v26 = vpop.eup %7693  ;;  %v4106_v25 = vmul.f32 %v7692_v43, %v4102_v13 }
0x100f   :  { %v7696_v36 = vpop.eup %7695  ;;  %v4107_v8 = vmul.f32 %v7694_v26, %v4103_v29 }
0x1010   :  { %v4363_v39 = vadd.f32 1.0, %v7696_v36  ;;  %4110 = vrot.lane.b32.xlu0 %v4106_v25, %s8090_s11 }
0x1011   :  { %4112 = vrot.lane.b32.xlu1 %v4107_v8, %s8090_s11 }
0x1012   :  { %7699 = vrcp.f32 %v4363_v39 }
0x1013   :  { %v7698_v57 = vpop.eup %7697 }
0x1014   :  { %v4366_v14 = vmul.f32 %v7698_v57, %v4349_v51  ;;  %4081 = vrot.lane.b32.xlu0 %v4079_v40, %s8089_s24 }
0x1015   :  { %4083 = vrot.lane.b32.xlu1 %v4080_v38, %s8089_s24 }
0x1016   :  { %v4367_v52 = vadd.f32 %v8904_v60, %v4366_v14 }
0x1018   :  { %7701 = vtanh.f32 %v4367_v52 }
0x101c   :  { %v7700_v7 = vpop.eup %7699 }
0x101d   :  { %v4369_v9 = vsub.f32 1.0, %v7700_v7  ;;  %v4371_v24 = vmul.f32 %v7700_v7, %v9002_v46 }
0x1022   :  { %v7702_v53 = vpop.eup %7701 }
0x1023   :  { %v4370_v49 = vmul.f32 %v7702_v53, %v4369_v9  ;;  %v4132_v53 = vrot.slane %v9016_v11, 7 }
0x1025   :  { %v9096_v21 = vadd.f32 %v4371_v24, %v4370_v49  ;;  %v4133_v24 = vrot.slane %v9018_v33, 7 }
0x1082   :  { %v4111_v45 = vpop.permute.xlu0 %4110 }
0x1083   :  { %v4113_v28 = vpop.permute.xlu1 %4112  ;;  %v4116_v20 = vadd.f32 %v4111_v45, %v8432_v35 }
0x1084   :  { %v4117_v13 = vadd.f32 %v4113_v28, %v8430_v32  ;;  %v9107_v28 = vsub.s32 6, %v8601_v3 }
0x1085   :  { %7703 = vtanh.f32 %v4116_v20 }
0x1086   :  { %7705 = vtanh.f32 %v4117_v13  ;;  %v4082_v26 = vpop.permute.xlu0 %4081 }
0x1087   :  { %v4084_v25 = vpop.permute.xlu1 %4083  ;;  %v4087_v36 = vadd.f32 %v4082_v26, %v8432_v35 }
0x1088   :  { %v4088_v8 = vadd.f32 %v4084_v25, %v8430_v32 }
0x1089   :  { %v6302_v39 = vmul.f32 -1.442695, %v4087_v36 }
0x108a   :  { %v6303_v40 = vmul.f32 -1.442695, %v4088_v8 }
0x108b   :  { %7707 = vpow2.f32 %v6302_v39 }
0x108c   :  { %7709 = vpow2.f32 %v6303_v40  ;;  %v9121_v40 = vsel %vm4373_vm9, 1.0, %v8088_v1 }
0x108f   :  { %v7704_v43 = vpop.eup %7703 }
0x1090   :  { %v7706_v29 = vpop.eup %7705  ;;  %4124 = vrot.lane.b32.xlu0 %v7704_v43, %s8091_s5 }
0x1091   :  { %4126 = vrot.lane.b32.xlu1 %v7706_v29, %s8091_s5 }
0x1095   :  { %v7708_v51 = vpop.eup %7707 }
0x1096   :  { %v7710_v57 = vpop.eup %7709  ;;  %v4095_v38 = vadd.f32 1.0, %v7708_v51 }
0x1097   :  { %v4096_v14 = vadd.f32 1.0, %v7710_v57 }
0x1098   :  { %7711 = vrcp.f32 %v4095_v38 }
0x1099   :  { %7713 = vrcp.f32 %v4096_v14 }
0x10a2   :  { %v7712_v52 = vpop.eup %7711 }
0x10a3   :  { %v7714_v7 = vpop.eup %7713  ;;  %v4120_v9 = vsub.f32 1.0, %v7712_v52  ;;  %v4136_v13 = vmul.f32 %v7712_v52, %v4132_v53 }
0x10a4   :  { %v4121_v49 = vsub.f32 1.0, %v7714_v7  ;;  %v4137_v29 = vmul.f32 %v7714_v7, %v4133_v24 }
0x1102   :  { %v4125_v45 = vpop.permute.xlu0 %4124 }
0x1103   :  { %v4127_v20 = vpop.permute.xlu1 %4126  ;;  %v4130_v43 = vmul.f32 %v4125_v45, %v4120_v9 }
0x1104   :  { %v4131_v26 = vmul.f32 %v4127_v20, %v4121_v49 }
0x1105   :  { %v9109_v25 = vadd.f32 %v4136_v13, %v4130_v43 }
0x1106   :  { %v9112_v36 = vadd.f32 %v4137_v29, %v4131_v26 }
0x1107   :  { %v4379_v11 = vrot.slane %v9109_v25, %v9107_v28  ;;  %v4427_v33 = vrot.slane %v9109_v25, 6 }
0x1108   :  { %v4383_v8 = vrot.slane %v9112_v36, %v9107_v28  ;;  %v4428_v39 = vrot.slane %v9112_v36, 5 }
0x1109   :  { %v4384_v51 = vmul.f32 %v9121_v40, %v4379_v11 }
0x110a   :  { %v4429_v57 = vsel %vm923_vm2, %v4428_v39, %v4427_v33  ;;  %v4385_v38 = vmul.f32 %v9121_v40, %v4383_v8 }
0x110b   :  { %4430 = vrot.lane.b32.xlu0 %v4429_v57, %s8091_s5  ;;  %v9128_v14 = vadd.f32 %v4384_v51, %v9034_v58 }
0x110c   :  { %v9131_v52 = vadd.f32 %v4385_v38, %v9037_v62 }
0x117d   :  { %v4431_v7 = vpop.permute.xlu0 %4430 }
0x117e   :  { %7074 = vmatmul.mubr.msk.f32.vlgmr.msra.gmra.mrb[42].mxu1 %vm207_vm1, %v4431_v7  ;;  %7085 = vmatmul.mubr.msk.f32.vlgmr.msra.gmra.mrb[44].mxu0 %vm207_vm1, %v4431_v7 }
0x117f   :  { %7438 = vmatpush3.bf16.msra.mxu1 %v8401_v23  ;;  %7444 = vmatpush3.bf16.msra.mxu0 %v8443_v47 }
0x1180   :  { %7439 = vmatprep.subr.bf16.mxu1 %v8086_v0  ;;  %7445 = vmatprep.subr.bf16.mxu0 %v8086_v0 }
0x1181   :  { %7095 = vmatprep.mubr.msk.f32.mxu1 %vm8087_vm0, %v8088_v1  ;;  %7106 = vmatprep.mubr.msk.f32.mxu0 %vm8087_vm0, %v8088_v1 }
0x1183   :  { %7441 = vmatpush3.bf16.msra.mxu1 %v8412_v27  ;;  %7447 = vmatpush3.bf16.msra.mxu0 %v8454_v50 }
0x1184   :  { %7448 = vmatprep.subr.bf16.mxu1 %v8086_v0  ;;  %7454 = vmatprep.subr.bf16.mxu0 %v8086_v0 }
0x1186   :  { %7096 = vmatmul.mubr.msk.f32.vlgmr.msra.gmra.mrb[44].mxu1 %vm207_vm1, %v4431_v7  ;;  %7107 = vmatmul.mubr.msk.f32.vlgmr.msra.gmra.mrb[46].mxu0 %vm207_vm1, %v9096_v21 }
0x1187   :  { %7450 = vmatpush3.bf16.msra.mxu1 %v8467_v59  ;;  %7456 = vmatpush3.bf16.msra.mxu0 %v8482_v10 }
0x1188   :  { %7451 = vmatprep.subr.bf16.mxu1 %v8086_v0  ;;  %7457 = vmatprep.subr.bf16.mxu0 %v8086_v0 }
0x1189   :  { %7117 = vmatprep.mubr.msk.f32.mxu1 %vm8087_vm0, %v8088_v1  ;;  %7128 = vmatprep.mubr.msk.f32.mxu0 %vm8087_vm0, %v8088_v1 }
0x118b   :  { %7453 = vmatpush3.bf16.msra.mxu1 %v8470_v63  ;;  %7459 = vmatpush3.bf16.msra.mxu0 %v8486_v12 }
0x118c   :  { %7460 = vmatprep.subr.bf16.mxu1 %v8086_v0 }
0x118e   :  { %7118 = vmatmul.mubr.msk.f32.vlgmr.msra.gmra.mrb[46].mxu1 %vm207_vm1, %v9096_v21  ;;  %7129 = vmatmul.mubr.msk.f32.vlgmr.msra.gmra.mrb[48].mxu0 %vm207_vm1, %v9096_v21 }
0x118f   :  { %7139 = vmatprep.mubr.msk.f32.mxu1 %vm8087_vm0, %v8088_v1  ;;  %vm5643_vm0 = vcmask 1046534  }
0x1251   :  { %v4500_v23 = vpop.f32.mrb[42].mxu1  ;;  %v4570_v27 = vpop.f32.mrb[44].mxu0 }
0x1252   :  { %v4645_v47 = vrot.slane %v4500_v23, 1  ;;  %v4646_v50 = vrot.slane %v4500_v23, 2  ;;  %v7075_v59 = vpop.f32.mrb[43].mxu1  ;;  %v7086_v10 = vpop.f32.mrb[45].mxu0 }
0x1254   :  { %v4649_v63 = vadd.f32 %v4645_v47, %v8432_v35  ;;  %v4650_v12 = vadd.f32 %v4646_v50, %v8430_v32 }
0x1256   :  { %v6313_v58 = vmul.f32 -1.442695, %v4649_v63  ;;  %v6314_v62 = vmul.f32 -1.442695, %v4650_v12 }
0x1258   :  { %7715 = vpow2.f32 %v6313_v58  ;;  %v4664_v58 = vrot.slane %v4570_v27, 1 }
0x1259   :  { %7717 = vpow2.f32 %v6314_v62  ;;  %v4640_v9 = vpop.f32.mrb[44].mxu1  ;;  %v4793_v53 = vpop.f32.mrb[46].mxu0 }
0x125a   :  { %v4937_v49 = vadd.f32 %v8882_v37, %v4793_v53  ;;  %v7097_v24 = vpop.f32.mrb[45].mxu1  ;;  %v7108_v45 = vpop.f32.mrb[47].mxu0  ;;  %v4641_v7 = vadd.f32 %v8891_v42, %v4640_v9 }
0x125c   :  { %v6320_v20 = vmul.f32 -1.442695, %v4937_v49  ;;  %v4687_v23 = vrot.slane %v4641_v7, 1  ;;  %v4688_v50 = vrot.slane %v4641_v7, 2  ;;  %v4665_v49 = vrot.slane %v4570_v27, 2  ;;  %v5096_v7 = vld [vmem:[#allocation16 + $0x8] sm:$0xff] }
0x125e   :  { %7719 = vpow2.f32 %v6320_v20 }
0x1261   :  { %v4863_v13 = vpop.f32.mrb[46].mxu1  ;;  %v4933_v43 = vpop.f32.mrb[48].mxu0 }
0x1262   :  { %v7716_v29 = vpop.eup %7715  ;;  %v4944_v26 = vadd.f32 %v8885_v4, %v4863_v13  ;;  %v7119_v11 = vpop.f32.mrb[47].mxu1  ;;  %v4934_v62 = vadd.f32 %v8899_v54, %v4933_v43 }
0x1263   :  { %v7130_v33 = vpop.f32.mrb[49].mxu0  ;;  %v7718_v8 = vpop.eup %7717  ;;  %v4657_v39 = vadd.f32 1.0, %v7716_v29 }
0x1264   :  { %v4658_v51 = vadd.f32 1.0, %v7718_v8  ;;  %v6321_v57 = vmul.f32 -1.442695, %v4944_v26  ;;  %v5011_v8 = vld [vmem:[%s9666_s17 + $0x8] sm:$0xff] }
0x1265   :  { %7721 = vrcp.f32 %v4657_v39  ;;  %v5012_v39 = vld [vmem:[%s9666_s17 + $0x10] sm:$0xff] }
0x1266   :  { %7723 = vrcp.f32 %v4658_v51 }
0x1267   :  { %7725 = vpow2.f32 %v6321_v57 }
0x1268   :  { %v7720_v38 = vpop.eup %7719 }
0x1269   :  { %v4941_v37 = vadd.f32 1.0, %v7720_v38  ;;  %v5013_v38 = vld [vmem:[%s9666_s17 + $0x18] sm:$0xff] }
0x126b   :  { %7727 = vrcp.f32 %v4941_v37  ;;  %v5095_v37 = vld [vmem:[#allocation16] sm:$0xff] }
0x126f   :  { %v7722_v47 = vpop.eup %7721 }
0x1270   :  { %v7724_v59 = vpop.eup %7723  ;;  %v4691_v10 = vmul.f32 %v7722_v47, %v4687_v23  ;;  %v7466_v23 = vpack.c.bf16 %v5096_v7, %v5095_v37  ;;  %v5184_v47 = vld [vmem:[#allocation17] sm:$0xff] }
0x1271   :  { %v7726_v4 = vpop.eup %7725  ;;  %v4692_v63 = vmul.f32 %v7724_v59, %v4688_v50  ;;  %v5185_v50 = vld [vmem:[#allocation17 + $0x8] sm:$0xff]  ;;  %v7464_v59 = vpack.c.bf16 %v5013_v38, %v5012_v39 }
0x1272   :  { %v4948_v12 = vadd.f32 1.0, %v7726_v4  ;;  %4695 = vrot.lane.b32.xlu1 %v4691_v10, %s8090_s11  ;;  %7467 = vmatprep.subr.bf16.mxu0 %v7466_v23  ;;  %v9198_v10 = vpack.c.bf16 %v5185_v50, %v5184_v47 }
0x1273   :  { %4697 = vrot.lane.b32.xlu0 %v4692_v63, %s8090_s11  ;;  %7469 = vmatpush3.bf16.msra.mxu0 %v7466_v23 }
0x1274   :  { %7729 = vrcp.f32 %v4948_v12 }
0x1275   :  { %v7728_v53 = vpop.eup %7727 }
0x1276   :  { %v4951_v42 = vmul.f32 %v7728_v53, %v4934_v62  ;;  %4666 = vrot.lane.b32.xlu1 %v4664_v58, %s8089_s24 }
0x1277   :  { %4668 = vrot.lane.b32.xlu0 %v4665_v49, %s8089_s24 }
0x1278   :  { %v4952_v9 = vadd.f32 %v8904_v60, %v4951_v42  ;;  %v5010_v60 = vld [vmem:[%s9666_s17] sm:$0xff] }
0x1279   :  { %v7461_v57 = vpack.c.bf16 %v5011_v8, %v5010_v60 }
0x127a   :  { %7731 = vtanh.f32 %v4952_v9 }
0x127b   :  { %7462 = vmatpush3.bf16.msra.mxu1 %v7461_v57 }
0x127c   :  { %7463 = vmatprep.subr.bf16.mxu1 %v8086_v0 }
0x127e   :  { %v7730_v24 = vpop.eup %7729 }
0x127f   :  { %v4954_v45 = vsub.f32 1.0, %v7730_v24  ;;  %v4956_v13 = vmul.f32 %v7730_v24, %v9096_v21  ;;  %7465 = vmatpush3.bf16.msra.mxu1 %v7464_v59  ;;  %v5097_v24 = vld [vmem:[#allocation16 + $0x10] sm:$0xff] }
0x1280   :  { %7475 = vmatprep.subr.bf16.mxu1 %v9198_v10 }
0x1284   :  { %v7732_v20 = vpop.eup %7731 }
0x1285   :  { %v4955_v29 = vmul.f32 %v7732_v20, %v4954_v45  ;;  %v5098_v45 = vld [vmem:[#allocation16 + $0x18] sm:$0xff] }
0x1286   :  { %v7470_v20 = vpack.c.bf16 %v5098_v45, %v5097_v24 }
0x1287   :  { %v9179_v26 = vadd.f32 %v4956_v13, %v4955_v29 }
0x1288   :  { %7471 = vmatprep.subr.bf16.mxu0 %v7470_v20 }
0x1289   :  { %7473 = vmatpush3.bf16.msra.mxu0 %v7470_v20 }
0x12e4   :  { %v4696_v54 = vpop.permute.xlu1 %4695 }
0x12e5   :  { %v4698_v43 = vpop.permute.xlu0 %4697  ;;  %v4701_v27 = vadd.f32 %v4696_v54, %v8432_v35 }
0x12e6   :  { %v4702_v11 = vadd.f32 %v4698_v43, %v8430_v32  ;;  %v4718_v43 = vrot.slane %v9112_v36, 7  ;;  %v9212_v36 = vsel %vm4958_vm10, 1.0, %v8088_v1 }
0x12e7   :  { %7733 = vtanh.f32 %v4701_v27 }
0x12e8   :  { %7735 = vtanh.f32 %v4702_v11  ;;  %v4667_v4 = vpop.permute.xlu1 %4666  ;;  %v9206_v11 = vsub.s32 7, %v8601_v3 }
0x12e9   :  { %v4669_v63 = vpop.permute.xlu0 %4668  ;;  %v4672_v12 = vadd.f32 %v4667_v4, %v8432_v35 }
0x12ea   :  { %v4673_v58 = vadd.f32 %v4669_v63, %v8430_v32  ;;  %v4717_v32 = vrot.slane %v9109_v25, 7 }
0x12eb   :  { %v6315_v62 = vmul.f32 -1.442695, %v4672_v12  ;;  %v8092_v12 = vmov 1966171168  }
0x12ec   :  { %v6316_v53 = vmul.f32 -1.442695, %v4673_v58  ;;  %v885_v58 = vunpack.c.l.s4 %v8092_v12 }
0x12ed   :  { %7737 = vpow2.f32 %v6315_v62 }
0x12ee   :  { %7739 = vpow2.f32 %v6316_v53  ;;  %v886_v1 = vunpack.c.0.s8 %v885_v58 }
0x12f0   :  { %v9223_v62 = vsub.s32 %v886_v1, %v8601_v3 }
0x12f1   :  { %v7734_v33 = vpop.eup %7733 }
0x12f2   :  { %v7736_v51 = vpop.eup %7735  ;;  %4709 = vrot.lane.b32.xlu1 %v7734_v33, %s8091_s5  ;;  %v1471_v53 = vrot.slane %v8592_v41, %v9223_v62  ;;  %v3225_v24 = vrot.slane %v8908_v55, %v9223_v62 }
0x12f3   :  { %4711 = vrot.lane.b32.xlu0 %v7736_v51, %s8091_s5 }
0x12f4   :  { %v1472_v45 = vcombine.high %v1471_v53, %v1471_v53 }
0x12f6   :  { %v1486_v55 = vrot.slane %v1472_v45, %v9223_v62 }
0x12f7   :  { %v7738_v49 = vpop.eup %7737 }
0x12f8   :  { %v7740_v42 = vpop.eup %7739  ;;  %v4680_v0 = vadd.f32 1.0, %v7738_v49  ;;  %v890_v49 = vrot.slane %v8525_v19, %v9223_v62 }
0x12f9   :  { %v4681_v9 = vadd.f32 1.0, %v7740_v42  ;;  %v2640_v42 = vrot.slane %v8795_v18, %v9223_v62 }
0x12fa   :  { %7741 = vrcp.f32 %v4680_v0  ;;  %v898_v0 = vrot.slane %v890_v49, %v9223_v62  ;;  %v891_v20 = vcombine.high %v890_v49, %v890_v49 }
0x12fb   :  { %7743 = vrcp.f32 %v4681_v9  ;;  %v2648_v19 = vrot.slane %v2640_v42, %v9223_v62 }
0x1304   :  { %v7742_v13 = vpop.eup %7741 }
0x1305   :  { %v7744_v29 = vpop.eup %7743  ;;  %v4705_v35 = vsub.f32 1.0, %v7742_v13  ;;  %v4721_v60 = vmul.f32 %v7742_v13, %v4717_v32  ;;  %v4395_v32 = vrot.slane %v9096_v21, %v9223_v62 }
0x1306   :  { %v4706_v54 = vsub.f32 1.0, %v7744_v29  ;;  %v4722_v39 = vmul.f32 %v7744_v29, %v4718_v43  ;;  %v909_v29 = vrot.slane %v898_v0, %v8604_v6 }
0x1364   :  { %v4710_v27 = vpop.permute.xlu1 %4709 }
0x1365   :  { %v4712_v33 = vpop.permute.xlu0 %4711  ;;  %v4715_v8 = vmul.f32 %v4710_v27, %v4705_v35  ;;  %v3233_v35 = vrot.slane %v3225_v24, %v9223_v62  ;;  %v2659_v27 = vrot.slane %v2648_v19, %v8604_v6 }
0x1366   :  { %v4716_v51 = vmul.f32 %v4712_v33, %v4706_v54  ;;  %v2641_v54 = vcombine.high %v2640_v42, %v2640_v42  ;;  %v4980_v33 = vrot.slane %v9179_v26, %v9223_v62 }
0x1367   :  { %v4723_v57 = vadd.f32 %v4721_v60, %v4715_v8  ;;  %v905_v60 = vrot.slane %v891_v20, %v9223_v62  ;;  %v3226_v8 = vcombine.high %v3225_v24, %v3225_v24  ;;  %v2666_v26 = vmul.f32 %v8817_v17, %v2659_v27 }
0x1368   :  { %v4724_v38 = vadd.f32 %v4722_v39, %v4716_v51  ;;  %v916_v51 = vmul.f32 %v8619_v34, %v909_v29  ;;  %v4981_v49 = vcombine.high %v4980_v33, %v4980_v33 }
0x1369   :  { %v4964_v37 = vrot.slane %v4723_v57, %v9206_v11  ;;  %v5016_v7 = vrot.slane %v4723_v57, 7  ;;  %v3244_v57 = vrot.slane %v3233_v35, %v8604_v6  ;;  %v3240_v12 = vrot.slane %v3226_v8, %v9223_v62 }
0x136a   :  { %v4968_v25 = vrot.slane %v4724_v38, %v9206_v11  ;;  %v5017_v23 = vrot.slane %v4724_v38, 6  ;;  %v4403_v38 = vrot.slane %v4395_v32, %v9223_v62  ;;  %v4995_v35 = vrot.slane %v4981_v49, %v9223_v62 }
0x136b   :  { %v4969_v47 = vmul.f32 %v9212_v36, %v4964_v37  ;;  %v3251_v1 = vmul.f32 %v8930_v22, %v3244_v57  ;;  %v3248_v19 = vrot.slane %v3240_v12, %v8604_v6 }
0x136c   :  { %v5018_v50 = vsel %vm923_vm2, %v5017_v23, %v5016_v7  ;;  %v4970_v59 = vmul.f32 %v9212_v36, %v4968_v25  ;;  %v1494_v7 = vrot.slane %v1486_v55, %v8604_v6  ;;  %v2655_v25 = vrot.slane %v2641_v54, %v9223_v62  ;;  %v5187_v54 = vld [vmem:[#allocation17 + $0x18] sm:$0xff] }
0x136d   :  { %5019 = vrot.lane.b32.xlu1 %v5018_v50, %s8091_s5  ;;  %v4971_v4 = vadd.f32 %v4969_v47, %v9128_v14  ;;  %v2055_v14 = vrot.slane %v8701_v30, %v9223_v62  ;;  %v3810_v30 = vrot.slane %v9002_v46, %v9223_v62  ;;  %v4988_v50 = vrot.slane %v4980_v33, %v9223_v62 }
0x136e   :  { %v4972_v63 = vadd.f32 %v4970_v59, %v9131_v52  ;;  %v1479_v52 = vrot.slane %v1471_v53, %v9223_v62  ;;  %v4396_v59 = vcombine.high %v4395_v32, %v4395_v32  ;;  %v4414_v53 = vrot.slane %v4403_v38, %v8604_v6 }
0x136f   :  { %5101 = vrot.lane.b32.xlu0 %v4971_v4, %s8091_s5  ;;  %v2063_v9 = vrot.slane %v2055_v14, %v9223_v62  ;;  %v2056_v13 = vcombine.high %v2055_v14, %v2055_v14  ;;  %v3818_v46 = vrot.slane %v3810_v30, %v9223_v62  ;;  %v3811_v37 = vcombine.high %v3810_v30, %v3810_v30 }
0x1370   :  { %v1490_v41 = vrot.slane %v1479_v52, %v8604_v6  ;;  %v913_v4 = vrot.slane %v905_v60, %v8604_v6  ;;  %v1498_v14 = vmul.f32 %v8628_v16, %v1494_v7  ;;  %v2663_v52 = vrot.slane %v2655_v25, %v8604_v6 }
0x1371   :  { %5103 = vrot.lane.b32.xlu1 %v4972_v63, %s8091_s5  ;;  %v2074_v18 = vrot.slane %v2063_v9, %v8604_v6  ;;  %v2070_v39 = vrot.slane %v2056_v13, %v9223_v62  ;;  %v3829_v47 = vrot.slane %v3818_v46, %v8604_v6  ;;  %v3825_v42 = vrot.slane %v3811_v37, %v9223_v62 }
0x1372   :  { %v1497_v43 = vmul.f32 %v8628_v16, %v1490_v41  ;;  %v4999_v24 = vrot.slane %v4988_v50, %v8604_v6  ;;  %v917_v45 = vmul.f32 %v8619_v34, %v913_v4  ;;  %v4410_v30 = vrot.slane %v4396_v59, %v9223_v62  ;;  %v5186_v34 = vld [vmem:[#allocation17 + $0x10] sm:$0xff] }
0x1373   :  { %v2081_v21 = vmul.f32 %v8723_v31, %v2074_v18  ;;  %v2078_v63 = vrot.slane %v2070_v39, %v8604_v6  ;;  %v3836_v9 = vmul.f32 %v9024_v44, %v3829_v47  ;;  %v4421_v16 = vmul.f32 %v9121_v40, %v4414_v53 }
0x1374   :  { %v1499_v23 = vadd.f32 %v1497_v43, %v916_v51  ;;  %v1500_v13 = vadd.f32 %v1498_v14, %v917_v45  ;;  %v2667_v29 = vmul.f32 %v8817_v17, %v2663_v52  ;;  %v3833_v18 = vrot.slane %v3825_v42, %v8604_v6 }
0x1375   :  { %v2082_v41 = vmul.f32 %v8723_v31, %v2078_v63  ;;  %v5006_v55 = vmul.f32 %v9212_v36, %v4999_v24  ;;  %v3252_v43 = vmul.f32 %v8930_v22, %v3248_v19  ;;  %v4418_v27 = vrot.slane %v4410_v30, %v8604_v6 }
0x1376   :  { %v2083_v58 = vadd.f32 %v2081_v21, %v1499_v23  ;;  %v7478_v33 = vpack.c.bf16 %v5187_v54, %v5186_v34  ;;  %v3837_v8 = vmul.f32 %v9024_v44, %v3833_v18  ;;  %v5003_v17 = vrot.slane %v4995_v35, %v8604_v6 }
0x1377   :  { %v2084_v31 = vadd.f32 %v2082_v41, %v1500_v13  ;;  %v4422_v57 = vmul.f32 %v9121_v40, %v4418_v27 }
0x1378   :  { %v2668_v0 = vadd.f32 %v2666_v26, %v2083_v58  ;;  %v5007_v44 = vmul.f32 %v9212_v36, %v5003_v17 }
0x1379   :  { %v2669_v60 = vadd.f32 %v2667_v29, %v2084_v31 }
0x137a   :  { %v3253_v20 = vadd.f32 %v3251_v1, %v2668_v0 }
0x137b   :  { %v3254_v21 = vadd.f32 %v3252_v43, %v2669_v60 }
0x137c   :  { %v3838_v32 = vadd.f32 %v3836_v9, %v3253_v20 }
0x137d   :  { %v3839_v38 = vadd.f32 %v3837_v8, %v3254_v21 }
0x137e   :  { %v4423_v46 = vadd.f32 %v4421_v16, %v3838_v32 }
0x137f   :  { %v4424_v7 = vadd.f32 %v4422_v57, %v3839_v38 }
0x1380   :  { %v5008_v51 = vadd.f32 %v5006_v55, %v4423_v46 }
0x1381   :  { %v5009_v25 = vadd.f32 %v5007_v44, %v4424_v7 }
0x13df   :  { %v5020_v39 = vpop.permute.xlu1 %5019 }
0x13e0   :  { %7140 = vmatmul.mubr.msk.f32.vlgmr.msra.gmra.mrb[48].mxu1 %vm207_vm1, %v5020_v39 }
0x13e1   :  { %7477 = vmatpush3.bf16.msra.mxu1 %v9198_v10  ;;  %7161 = vmatprep.mubr.msk.f32.mxu1 %vm207_vm1, %v5008_v51  ;;  %v5102_v22 = vpop.permute.xlu0 %5101 }
0x13e2   :  { %7150 = vmatprep.mubr.msk.f32.mxu0 %vm207_vm1, %v5102_v22  ;;  %7479 = vmatprep.subr.bf16.mxu1 %v7478_v33 }
0x13e3   :  { %v5104_v37 = vpop.permute.xlu1 %5103 }
0x13e4   :  { %7151 = vmatmul.mubr.msk.f32.vlgmr.msra.gmra.mrb[50].mxu0 %vm207_vm1, %v5104_v37 }
0x13e5   :  { %7481 = vmatpush3.bf16.msra.mxu1 %v7478_v33 }
0x13e8   :  { %7162 = vmatmul.mubr.msk.f32.vlgmr.msra.gmra.mrb[50].mxu1 %vm207_vm1, %v5009_v25 }
0x14b3   :  { %v5089_v40 = vpop.f32.mrb[48].mxu1 }
0x14b4   :  { %5094 = vst.msk [vmem:[%s9668_s19] sm:$0x3] %vm5093_vm11, %v5089_v40  ;;  %v7141_v10 = vpop.f32.mrb[49].mxu1 }
0x14b7   :  { %v7152_v23 = vpop.f32.mrb[50].mxu0 }
0x14b8   :  { %v5175_v26 = vpop.f32.mrb[51].mxu0 }
0x14bb   :  { %v7163_v47 = vpop.f32.mrb[50].mxu1 }
0x14bc   :  { %v5320_v50 = vcombine.high %v7163_v47, %v7163_v47  ;;  %v5327_v36 = vrot.slane %v7163_v47, %v9223_v62  ;;  %v5260_v59 = vpop.f32.mrb[51].mxu1 }
0x14bd   :  { %v5271_v4 = vcombine.high %v5260_v59, %v5260_v59  ;;  %v5278_v63 = vrot.slane %v5260_v59, %v9223_v62 }
0x14be   :  { %v5334_v12 = vrot.slane %v5320_v50, %v9223_v62  ;;  %v5335_v58 = vcombine.high %v5327_v36, %v5327_v36  ;;  %v5343_v1 = vrot.slane %v5327_v36, %v9223_v62 }
0x14bf   :  { %v5285_v53 = vrot.slane %v5271_v4, %v9223_v62  ;;  %v5286_v49 = vcombine.high %v5278_v63, %v5278_v63  ;;  %v5294_v14 = vrot.slane %v5278_v63, %v9223_v62 }
0x14c0   :  { %v5336_v52 = vcombine.high %v5334_v12, %v5334_v12  ;;  %v5350_v42 = vrot.slane %v5334_v12, %v9223_v62  ;;  %v5357_v0 = vrot.slane %v5335_v58, %v9223_v62  ;;  %v5365_v9 = vcombine.high %v5343_v1, %v5343_v1  ;;  %v9331_v58 = vld [vmem:[%s9665_s16] ss:$0 sm:$0xff]  ;;  %s8094_s16 = smov [#allocation19]  }
0x14c1   :  { %v5404_v24 = vrot.slane %v5343_v1, %v8604_v6  ;;  %v5287_v45 = vcombine.high %v5285_v53, %v5285_v53  ;;  %v5301_v41 = vrot.slane %v5285_v53, %v9223_v62  ;;  %v5308_v19 = vrot.slane %v5286_v49, %v9223_v62  ;;  %s6196_s3 = sshll.u32 %s8094_s16, 4  ;;  %s6197_s3 = int_to_ptr.vmem [resolvable:$true] %s6196_s3 }
0x14c2   :  { %v5364_v30 = vrot.slane %v5336_v52, %v9223_v62  ;;  %v5366_v20 = vcombine.high %v5350_v42, %v5350_v42  ;;  %v5367_v16 = vcombine.high %v5357_v0, %v5357_v0  ;;  %v5408_v13 = vrot.slane %v5357_v0, %v8604_v6  ;;  %s8038_s15 = scalar_lea.vmem %s6197_s3, 256  ;;  %p8043_p11 = scmp.lt.s32.totalorder %s6197_s3, %s6197_s3 }
0x14c3   :  { %v5412_v29 = vrot.slane %v5365_v9, %v8604_v6  ;;  %v5420_v18 = vrot.slane %v5350_v42, %v8604_v6  ;;  %v5457_v35 = vadd.f32 %v7152_v23, %v5404_v24  ;;  %v5315_v32 = vrot.slane %v5287_v45, %v9223_v62  ;;  %p8039_p10 = scmp.ne.s32.totalorder %s6197_s3, %s8038_s15  ;;  %p8044_p12 = scmp.lt.s32.totalorder %s8038_s15, %s8038_s15 }
0x14c4   :  { %v5368_v55 = vcombine.high %v5364_v30, %v5364_v30  ;;  %v5416_v34 = vrot.slane %v5367_v16, %v8604_v6  ;;  %v5424_v54 = vrot.slane %v5364_v30, %v8604_v6  ;;  %v5428_v31 = vrot.slane %v5366_v20, %v8604_v6 }
0x14c5   :  { %v5458_v43 = vadd.f32 %v7152_v23, %v5408_v13  ;;  %v5459_v27 = vadd.f32 %v7152_v23, %v5412_v29  ;;  %v5461_v46 = vadd.f32 %v7152_v23, %v5420_v18  ;;  %7745 = vtanh.f32 %v5457_v35  ;;  %p8045_p13 = por %p8044_p12, %p8043_p11 }
0x14c6   :  { %v5432_v33 = vrot.slane %v5368_v55, %v8604_v6  ;;  %v5460_v60 = vadd.f32 %v7152_v23, %v5416_v34  ;;  %v5462_v8 = vadd.f32 %v7152_v23, %v5424_v54  ;;  %v5463_v17 = vadd.f32 %v7152_v23, %v5428_v31 }
0x14c7   :  { %v5316_v39 = vcombine.high %v5294_v14, %v5294_v14  ;;  %v5317_v51 = vcombine.high %v5301_v41, %v5301_v41  ;;  %v5318_v21 = vcombine.high %v5308_v19, %v5308_v19  ;;  %v5319_v57 = vcombine.high %v5315_v32, %v5315_v32  ;;  %p8046_p0 = pnand %p8045_p13, %p8039_p10 }
0x14c8   :  { %v9318_v62 = vadd.f32 %v7152_v23, %v5432_v33  ;;  %v5372_v22 = vrot.slane %v5294_v14, %v8604_v6  ;;  %v5376_v38 = vrot.slane %v5308_v19, %v8604_v6  ;;  %v5388_v7 = vrot.slane %v5301_v41, %v8604_v6 }
0x14c9   :  { %v5380_v44 = vrot.slane %v5316_v39, %v8604_v6  ;;  %v5384_v37 = vrot.slane %v5318_v21, %v8604_v6  ;;  %v5392_v25 = vrot.slane %v5315_v32, %v8604_v6  ;;  %v5396_v40 = vrot.slane %v5317_v51, %v8604_v6 }
0x14ca   :  { %v5400_v10 = vrot.slane %v5319_v57, %v8604_v6  ;;  %v5449_v47 = vadd.f32 %v5372_v22, %v5175_v26  ;;  %v5450_v23 = vadd.f32 %v5376_v38, %v5175_v26  ;;  %7747 = vtanh.f32 %v5458_v43 }
0x14cb   :  { %v5451_v50 = vadd.f32 %v5380_v44, %v5175_v26  ;;  %v5452_v36 = vadd.f32 %v5384_v37, %v5175_v26  ;;  %v5453_v59 = vadd.f32 %v5388_v7, %v5175_v26  ;;  %v5454_v4 = vadd.f32 %v5392_v25, %v5175_v26 }
0x14cc   :  { %v5455_v63 = vadd.f32 %v5396_v40, %v5175_v26  ;;  %v5456_v12 = vadd.f32 %v5400_v10, %v5175_v26  ;;  %7749 = vtanh.f32 %v5449_v47 }
0x14cd   :  { %7751 = vtanh.f32 %v5450_v23 }
0x14ce   :  { %7753 = vtanh.f32 %v5451_v50 }
0x14cf   :  { %v7746_v1 = vpop.eup %7745  ;;  %7755 = vtanh.f32 %v5459_v27 }
0x14d0   :  { %v5496_v53 = vmul.f32 %v7746_v1, %v9331_v58  ;;  %7757 = vtanh.f32 %v5453_v59 }
0x14d1   :  { %7759 = vtanh.f32 %v5461_v46 }
0x14d2   :  { %v5528_v49 = vsel %vm207_vm1, %v5496_v53, 0.0  ;;  %7761 = vtanh.f32 %v5452_v36  ;;  %v5569_v53 = vand.u32 127, %v318_v2 }
0x14d3   :  { %5529 = vadd.xlane.f32.xlu0 %v5528_v49  ;;  %7763 = vtanh.f32 %v5460_v60 }
0x14d4   :  { %v7748_v14 = vpop.eup %7747  ;;  %7765 = vtanh.f32 %v5454_v4 }
0x14d5   :  { %v5497_v45 = vmul.f32 %v7748_v14, %v9331_v58  ;;  %7767 = vtanh.f32 %v5462_v8 }
0x14d6   :  { %v7750_v26 = vpop.eup %7749  ;;  %7769 = vtanh.f32 %v5455_v63 }
0x14d7   :  { %v7752_v52 = vpop.eup %7751  ;;  %v5488_v42 = vmul.f32 %v7750_v26, %v9331_v58  ;;  %v5531_v16 = vsel %vm207_vm1, %v5497_v45, 0.0  ;;  %7771 = vtanh.f32 %v5463_v17  ;;  %v9386_v26 = vsub.s32 %v5569_v53, %v8601_v3 }
0x14d8   :  { %v7754_v0 = vpop.eup %7753  ;;  %v5489_v9 = vmul.f32 %v7752_v52, %v9331_v58  ;;  %7773 = vtanh.f32 %v5456_v12 }
0x14d9   :  { %v5504_v24 = vsel %vm207_vm1, %v5488_v42, 0.0  ;;  %v7756_v41 = vpop.eup %7755  ;;  %v5490_v30 = vmul.f32 %v7754_v0, %v9331_v58  ;;  %7775 = vtanh.f32 %v9318_v62 }
0x14da   :  { %v5507_v19 = vsel %vm207_vm1, %v5489_v9, 0.0  ;;  %5505 = vadd.xlane.f32.xlu0 %v5504_v24  ;;  %v7758_v20 = vpop.eup %7757  ;;  %v5498_v13 = vmul.f32 %v7756_v41, %v9331_v58 }
0x14db   :  { %5508 = vadd.xlane.f32.xlu1 %v5507_v19  ;;  %v7760_v29 = vpop.eup %7759  ;;  %v5510_v18 = vsel %vm207_vm1, %v5490_v30, 0.0  ;;  %v5492_v35 = vmul.f32 %v7758_v20, %v9331_v58 }
0x14dc   :  { %v7762_v32 = vpop.eup %7761  ;;  %v5534_v55 = vsel %vm207_vm1, %v5498_v13, 0.0  ;;  %v5500_v34 = vmul.f32 %v7760_v29, %v9331_v58 }
0x14dd   :  { %v7764_v54 = vpop.eup %7763  ;;  %v5516_v31 = vsel %vm207_vm1, %v5492_v35, 0.0  ;;  %v5491_v43 = vmul.f32 %v7762_v32, %v9331_v58 }
0x14de   :  { %5532 = vadd.xlane.f32.xlu0 %v5531_v16  ;;  %v7766_v27 = vpop.eup %7765  ;;  %v5540_v46 = vsel %vm207_vm1, %v5500_v34, 0.0  ;;  %v5499_v33 = vmul.f32 %v7764_v54, %v9331_v58 }
0x14df   :  { %5511 = vadd.xlane.f32.xlu1 %v5510_v18  ;;  %v7768_v60 = vpop.eup %7767  ;;  %v5513_v8 = vsel %vm207_vm1, %v5491_v43, 0.0  ;;  %v5493_v17 = vmul.f32 %v7766_v27, %v9331_v58 }
0x14e0   :  { %v7770_v39 = vpop.eup %7769  ;;  %v5537_v51 = vsel %vm207_vm1, %v5499_v33, 0.0  ;;  %v5501_v21 = vmul.f32 %v7768_v60, %v9331_v58 }
0x14e1   :  { %v7772_v57 = vpop.eup %7771  ;;  %v5519_v22 = vsel %vm207_vm1, %v5493_v17, 0.0  ;;  %v5494_v62 = vmul.f32 %v7770_v39, %v9331_v58 }
0x14e2   :  { %5535 = vadd.xlane.f32.xlu0 %v5534_v55  ;;  %v7774_v38 = vpop.eup %7773  ;;  %v5543_v44 = vsel %vm207_vm1, %v5501_v21, 0.0  ;;  %v5502_v37 = vmul.f32 %v7772_v57, %v9331_v58 }
0x14e3   :  { %5517 = vadd.xlane.f32.xlu1 %v5516_v31  ;;  %v7776_v7 = vpop.eup %7775  ;;  %v5522_v25 = vsel %vm207_vm1, %v5494_v62, 0.0  ;;  %v5495_v40 = vmul.f32 %v7774_v38, %v9331_v58 }
0x14e4   :  { %v5546_v10 = vsel %vm207_vm1, %v5502_v37, 0.0  ;;  %v5503_v47 = vmul.f32 %v7776_v7, %v9331_v58 }
0x14e5   :  { %v5525_v23 = vsel %vm207_vm1, %v5495_v40, 0.0 }
0x14e6   :  { %5541 = vadd.xlane.f32.xlu0 %v5540_v46  ;;  %v5549_v50 = vsel %vm207_vm1, %v5503_v47, 0.0  ;;  %vm5645_vm1 = vcmask 1047559  }
0x14e7   :  { %5514 = vadd.xlane.f32.xlu1 %v5513_v8 }
0x14ea   :  { %5538 = vadd.xlane.f32.xlu0 %v5537_v51 }
0x14eb   :  { %5520 = vadd.xlane.f32.xlu1 %v5519_v22 }
0x14ee   :  { %5544 = vadd.xlane.f32.xlu0 %v5543_v44 }
0x14ef   :  { %5523 = vadd.xlane.f32.xlu1 %v5522_v25  ;;  %v8093_v25 = vmov 0  }
0x14f0   :  { %7504 = vset.pattern.permute.xlu0 %v8093_v25  ;;  %7503 = vset.pattern.permute.xlu1 %v8093_v25 }
0x14f2   :  { %5547 = vadd.xlane.f32.xlu0 %v5546_v10 }
0x14f3   :  { %5526 = vadd.xlane.f32.xlu1 %v5525_v23 }
0x14f6   :  { %5550 = vadd.xlane.f32.xlu0 %v5549_v50 }
0x1560   :  { %v9366_v36 = vpop.xlane.xlu0 %5529 }
0x1561   :  { %v5605_v30 = vrot.slane %v9366_v36, %v9386_v26 }
0x1567   :  { %v9368_v59 = vpop.xlane.xlu0 %5505 }
0x1568   :  { %v9370_v4 = vpop.xlane.xlu1 %5508  ;;  %v5573_v42 = vrot.slane %v9368_v59, %v9386_v26 }
0x1569   :  { %v5577_v52 = vrot.slane %v9370_v4, %v9386_v26 }
0x156b   :  { %v9372_v63 = vpop.xlane.xlu0 %5532  ;;  %v5634_v45 = vsel %vm923_vm2, %v5577_v52, %v5573_v42 }
0x156c   :  { %v9374_v12 = vpop.xlane.xlu1 %5511  ;;  %v5609_v3 = vrot.slane %v9372_v63, %v9386_v26 }
0x156d   :  { %v5581_v9 = vrot.slane %v9374_v12, %v9386_v26 }
0x156e   :  { %v5647_v35 = vsel %vm923_vm2, %v5609_v3, %v5605_v30 }
0x156f   :  { %v9376_v1 = vpop.xlane.xlu0 %5535  ;;  %v5636_v20 = vsel %vm5635_vm12, %v5581_v9, %v5634_v45 }
0x1570   :  { %v9378_v58 = vpop.xlane.xlu1 %5517  ;;  %v5613_v41 = vrot.slane %v9376_v1, %v9386_v26 }
0x1571   :  { %v5589_v32 = vrot.slane %v9378_v58, %v9386_v26 }
0x1572   :  { %v5648_v34 = vsel %vm5635_vm12, %v5613_v41, %v5647_v35 }
0x1573   :  { %v9381_v49 = vpop.xlane.xlu0 %5541 }
0x1574   :  { %v9383_v14 = vpop.xlane.xlu1 %5514  ;;  %v5621_v33 = vrot.slane %v9381_v49, %v9386_v26 }
0x1575   :  { %v5585_v2 = vrot.slane %v9383_v14, %v9386_v26 }
0x1577   :  { %v9392_v0 = vpop.xlane.xlu0 %5538  ;;  %v5638_v29 = vsel %vm5637_vm13, %v5585_v2, %v5636_v20 }
0x1578   :  { %v5521_v24 = vpop.xlane.xlu1 %5520  ;;  %v5617_v16 = vrot.slane %v9392_v0, %v9386_v26  ;;  %v5640_v46 = vsel %vm5639_vm14, %v5589_v32, %v5638_v29 }
0x1579   :  { %v5593_v18 = vrot.slane %v5521_v24, %v9386_v26 }
0x157a   :  { %v5649_v31 = vsel %vm5637_vm13, %v5617_v16, %v5648_v34 }
0x157b   :  { %v9403_v19 = vpop.xlane.xlu0 %5544  ;;  %v5642_v17 = vsel %vm5641_vm15, %v5593_v18, %v5640_v46  ;;  %v5650_v57 = vsel %vm5639_vm14, %v5621_v33, %v5649_v31 }
0x157c   :  { %v5524_v13 = vpop.xlane.xlu1 %5523  ;;  %v5625_v43 = vrot.slane %v9403_v19, %v9386_v26 }
0x157d   :  { %v5597_v55 = vrot.slane %v5524_v13, %v9386_v26 }
0x157e   :  { %v5651_v38 = vsel %vm5641_vm15, %v5625_v43, %v5650_v57 }
0x157f   :  { %v9417_v54 = vpop.xlane.xlu0 %5547  ;;  %v5644_v39 = vsel %vm5643_vm0, %v5597_v55, %v5642_v17 }
0x1580   :  { %v5527_v27 = vpop.xlane.xlu1 %5526  ;;  %v5629_v8 = vrot.slane %v9417_v54, %v9386_v26 }
0x1581   :  { %v5601_v60 = vrot.slane %v5527_v27, %v9386_v26 }
0x1582   :  { %v5652_v44 = vsel %vm5643_vm0, %v5629_v8, %v5651_v38 }
0x1583   :  { %v5646_v51 = vsel %vm5645_vm1, %v5601_v60, %v5644_v39  ;;  %v9431_v21 = vpop.xlane.xlu0 %5550 }
0x1584   :  { %v5657_v22 = vsel %vm5656_vm3, %v5646_v51, -inf  ;;  %v5633_v62 = vrot.slane %v9431_v21, %v9386_v26 }
0x1585   :  { %5658 = vmax.xlane.f32.xlu1 %v5657_v22 }
0x1586   :  { %v5653_v37 = vsel %vm5645_vm1, %v5633_v62, %v5652_v44 }
0x1587   :  { %v5660_v7 = vsel %vm5656_vm3, %v5653_v37, -inf }
0x1588   :  { %5661 = vmax.xlane.f32.xlu0 %v5660_v7 }
0x1612   :  { %v9441_v40 = vpop.xlane.xlu1 %5658 }
0x1613   :  { %v5672_v10 = vrot.slane %v9441_v40, %v8611_v15  ;;  %v5688_v47 = vrot.slane %v9441_v40, %v9013_v56  ;;  %v5692_v42 = vrot.slane %v9441_v40, %v9107_v28  ;;  %v5696_v41 = vrot.slane %v9441_v40, %v9206_v11 }
0x1614   :  { %v5668_v17 = vrot.slane %v9441_v40, %v8604_v6  ;;  %v5676_v22 = vrot.slane %v9441_v40, %v8712_v5 }
0x1615   :  { %v9448_v23 = vsub.f32 %v9370_v4, %v5672_v10  ;;  %v9450_v50 = vpop.xlane.xlu0 %5661  ;;  %v9458_v9 = vsub.f32 %v5521_v24, %v5688_v47  ;;  %v9471_v30 = vsub.f32 %v5524_v13, %v5692_v42 }
0x1616   :  { %v5700_v53 = vrot.slane %v9450_v50, %v8604_v6  ;;  %v5704_v52 = vrot.slane %v9450_v50, %v8611_v15  ;;  %v5708_v3 = vrot.slane %v9450_v50, %v8712_v5  ;;  %v5712_v16 = vrot.slane %v9450_v50, %v8806_v61 }
0x1617   :  { %v5763_v2 = vmul.f32 1.442695, %v9448_v23  ;;  %v5771_v20 = vmul.f32 1.442695, %v9458_v9  ;;  %v5773_v18 = vmul.f32 1.442695, %v9471_v30  ;;  %v5716_v13 = vrot.slane %v9450_v50, %v8919_v48 }
0x1618   :  { %v9464_v4 = vsub.f32 %v9366_v36, %v5700_v53  ;;  %v9467_v45 = vsub.f32 %v9372_v63, %v5704_v52  ;;  %v9478_v29 = vsub.f32 %v9376_v1, %v5708_v3  ;;  %v9481_v63 = vsub.f32 %v5527_v27, %v5696_v41 }
0x1619   :  { %7777 = vpow2.f32 %v5763_v2  ;;  %v9487_v35 = vsub.f32 %v9392_v0, %v5712_v16  ;;  %v5720_v34 = vrot.slane %v9450_v50, %v9013_v56  ;;  %v9494_v31 = vsub.f32 %v9381_v49, %v5716_v13 }
0x161a   :  { %v5777_v24 = vmul.f32 1.442695, %v9464_v4  ;;  %v5779_v36 = vmul.f32 1.442695, %v9467_v45  ;;  %v5781_v32 = vmul.f32 1.442695, %v9478_v29  ;;  %v5724_v46 = vrot.slane %v9450_v50, %v9107_v28 }
0x161b   :  { %v5775_v1 = vmul.f32 1.442695, %v9481_v63  ;;  %v5783_v43 = vmul.f32 1.442695, %v9487_v35  ;;  %v9500_v33 = vsub.f32 %v9403_v19, %v5720_v34  ;;  %v5785_v60 = vmul.f32 1.442695, %v9494_v31 }
0x161c   :  { %7779 = vpow2.f32 %v5777_v24  ;;  %v9506_v39 = vsub.f32 %v9417_v54, %v5724_v46  ;;  %v9512_v62 = vsub.f32 %v9368_v59, %v5668_v17  ;;  %v5680_v54 = vrot.slane %v9441_v40, %v8806_v61 }
0x161d   :  { %7781 = vpow2.f32 %v5771_v20  ;;  %v5787_v51 = vmul.f32 1.442695, %v9500_v33  ;;  %v9518_v37 = vsub.f32 %v9374_v12, %v5676_v22  ;;  %v5684_v59 = vrot.slane %v9441_v40, %v8919_v48 }
0x161e   :  { %7783 = vpow2.f32 %v5779_v36  ;;  %v5789_v38 = vmul.f32 1.442695, %v9506_v39  ;;  %v5761_v7 = vmul.f32 1.442695, %v9512_v62  ;;  %v9524_v10 = vsub.f32 %v9383_v14, %v5680_v54 }
0x161f   :  { %7785 = vpow2.f32 %v5773_v18  ;;  %v5765_v47 = vmul.f32 1.442695, %v9518_v37  ;;  %v9528_v52 = vsub.f32 %v9378_v58, %v5684_v59  ;;  %v5728_v42 = vrot.slane %v9450_v50, %v9206_v11 }
0x1620   :  { %7787 = vpow2.f32 %v5781_v32  ;;  %v5767_v12 = vmul.f32 1.442695, %v9524_v10 }
0x1621   :  { %7789 = vpow2.f32 %v5775_v1  ;;  %v5769_v40 = vmul.f32 1.442695, %v9528_v52  ;;  %v9535_v14 = vsub.f32 %v9431_v21, %v5728_v42 }
0x1622   :  { %7791 = vpow2.f32 %v5783_v43 }
0x1623   :  { %v7778_v55 = vpop.eup %7777  ;;  %7793 = vpow2.f32 %v5785_v60  ;;  %v5791_v41 = vmul.f32 1.442695, %v9535_v14 }
0x1624   :  { %5813 = vperm.xlu0 %7504, %v7778_v55   ;;  %7795 = vpow2.f32 %v5787_v51 }
0x1625   :  { %7797 = vpow2.f32 %v5789_v38 }
0x1626   :  { %v7780_v27 = vpop.eup %7779  ;;  %7799 = vpow2.f32 %v5761_v7 }
0x1627   :  { %5834 = vperm.xlu1 %7503, %v7780_v27   ;;  %v7782_v0 = vpop.eup %7781  ;;  %7801 = vpow2.f32 %v5765_v47 }
0x1628   :  { %5825 = vperm.xlu0 %7504, %v7782_v0   ;;  %v7784_v49 = vpop.eup %7783  ;;  %7803 = vpow2.f32 %v5767_v12 }
0x1629   :  { %v7786_v8 = vpop.eup %7785  ;;  %7805 = vpow2.f32 %v5769_v40 }
0x162a   :  { %v7788_v57 = vpop.eup %7787  ;;  %7807 = vpow2.f32 %v5791_v41 }
0x162b   :  { %5837 = vperm.xlu1 %7503, %v7784_v49   ;;  %v7790_v19 = vpop.eup %7789 }
0x162c   :  { %5828 = vperm.xlu0 %7504, %v7786_v8   ;;  %v7792_v44 = vpop.eup %7791 }
0x162d   :  { %v7794_v25 = vpop.eup %7793 }
0x162e   :  { %v7796_v53 = vpop.eup %7795 }
0x162f   :  { %5840 = vperm.xlu1 %7503, %v7788_v57   ;;  %v7798_v2 = vpop.eup %7797 }
0x1630   :  { %5831 = vperm.xlu0 %7504, %v7790_v19   ;;  %v7800_v3 = vpop.eup %7799 }
0x1631   :  { %v7802_v58 = vpop.eup %7801 }
0x1632   :  { %v7804_v20 = vpop.eup %7803 }
0x1633   :  { %5843 = vperm.xlu1 %7503, %v7792_v44   ;;  %v7806_v50 = vpop.eup %7805 }
0x1634   :  { %v7808_v24 = vpop.eup %7807 }
0x1637   :  { %5846 = vperm.xlu1 %7503, %v7794_v25  }
0x163b   :  { %5849 = vperm.xlu1 %7503, %v7796_v53  }
0x163f   :  { %5852 = vperm.xlu1 %7503, %v7798_v2  }
0x1643   :  { %5810 = vperm.xlu1 %7503, %v7800_v3  }
0x1647   :  { %5816 = vperm.xlu1 %7503, %v7802_v58  }
0x164b   :  { %5819 = vperm.xlu1 %7503, %v7804_v20  }
0x164f   :  { %5822 = vperm.xlu1 %7503, %v7806_v50  }
0x1653   :  { %5855 = vperm.xlu1 %7503, %v7808_v24  }
0x16a3   :  { %v5814_v1 = vpop.permute.xlu0 %5813 }
0x16a4   :  { %v5864_v17 = vrot.slane %v5814_v1, %v9386_v26 }
0x16a6   :  { %v5835_v16 = vpop.permute.xlu1 %5834 }
0x16a7   :  { %v5826_v43 = vpop.permute.xlu0 %5825  ;;  %v5892_v19 = vrot.slane %v5835_v16, %v9386_v26 }
0x16a8   :  { %v5880_v12 = vrot.slane %v5826_v43, %v9386_v26 }
0x16aa   :  { %v5838_v36 = vpop.permute.xlu1 %5837 }
0x16ab   :  { %v5829_v0 = vpop.permute.xlu0 %5828  ;;  %v5896_v49 = vrot.slane %v5838_v36, %v9386_v26 }
0x16ac   :  { %v5884_v3 = vrot.slane %v5829_v0, %v9386_v26 }
0x16ad   :  { %v5928_v7 = vsel %vm923_vm2, %v5896_v49, %v5892_v19 }
0x16ae   :  { %v5841_v18 = vpop.permute.xlu1 %5840 }
0x16af   :  { %v5900_v51 = vrot.slane %v5841_v18, %v9386_v26  ;;  %v5832_v25 = vpop.permute.xlu0 %5831 }
0x16b0   :  { %v5888_v20 = vrot.slane %v5832_v25, %v9386_v26 }
0x16b1   :  { %v5929_v42 = vsel %vm5635_vm12, %v5900_v51, %v5928_v7 }
0x16b2   :  { %v5844_v21 = vpop.permute.xlu1 %5843 }
0x16b3   :  { %v5904_v22 = vrot.slane %v5844_v21, %v9386_v26 }
0x16b5   :  { %v5930_v41 = vsel %vm5637_vm13, %v5904_v22, %v5929_v42 }
0x16b6   :  { %v5847_v13 = vpop.permute.xlu1 %5846 }
0x16b7   :  { %v5908_v38 = vrot.slane %v5847_v13, %v9386_v26 }
0x16b9   :  { %v5931_v50 = vsel %vm5639_vm14, %v5908_v38, %v5930_v41 }
0x16ba   :  { %v5850_v32 = vpop.permute.xlu1 %5849 }
0x16bb   :  { %v5912_v59 = vrot.slane %v5850_v32, %v9386_v26 }
0x16bd   :  { %v5932_v36 = vsel %vm5641_vm15, %v5912_v59, %v5931_v50 }
0x16be   :  { %v5853_v55 = vpop.permute.xlu1 %5852 }
0x16bf   :  { %v5916_v2 = vrot.slane %v5853_v55, %v9386_v26 }
0x16c1   :  { %v5933_v32 = vsel %vm5643_vm0, %v5916_v2, %v5932_v36 }
0x16c2   :  { %v5811_v34 = vpop.permute.xlu1 %5810 }
0x16c3   :  { %v5860_v46 = vrot.slane %v5811_v34, %v9386_v26 }
0x16c5   :  { %v5921_v44 = vsel %vm923_vm2, %v5864_v17, %v5860_v46 }
0x16c6   :  { %v5817_v27 = vpop.permute.xlu1 %5816 }
0x16c7   :  { %v5868_v8 = vrot.slane %v5817_v27, %v9386_v26 }
0x16c9   :  { %v5922_v47 = vsel %vm5635_vm12, %v5868_v8, %v5921_v44 }
0x16ca   :  { %v5820_v60 = vpop.permute.xlu1 %5819 }
0x16cb   :  { %v5872_v57 = vrot.slane %v5820_v60, %v9386_v26 }
0x16cd   :  { %v5923_v40 = vsel %vm5637_vm13, %v5872_v57, %v5922_v47 }
0x16ce   :  { %v5823_v54 = vpop.permute.xlu1 %5822 }
0x16cf   :  { %v5876_v53 = vrot.slane %v5823_v54, %v9386_v26 }
0x16d1   :  { %v5924_v58 = vsel %vm5639_vm14, %v5876_v53, %v5923_v40 }
0x16d2   :  { %v5856_v24 = vpop.permute.xlu1 %5855  ;;  %v5925_v16 = vsel %vm5641_vm15, %v5880_v12, %v5924_v58 }
0x16d3   :  { %v5920_v18 = vrot.slane %v5856_v24, %v9386_v26  ;;  %v5926_v21 = vsel %vm5643_vm0, %v5884_v3, %v5925_v16 }
0x16d4   :  { %v5927_v13 = vsel %vm5645_vm1, %v5888_v20, %v5926_v21 }
0x16d5   :  { %v5937_v1 = vsel %vm5656_vm3, %v5927_v13, 0.0  ;;  %v5934_v55 = vsel %vm5645_vm1, %v5920_v18, %v5933_v32 }
0x16d6   :  { %5938 = vadd.xlane.f32.xlu0 %v5937_v1  ;;  %v5940_v34 = vsel %vm5656_vm3, %v5934_v55, 0.0 }
0x16d7   :  { %5941 = vadd.xlane.f32.xlu1 %v5940_v34 }
0x1763   :  { %v5939_v43 = vpop.xlane.xlu0 %5938 }
0x1764   :  { %7809 = vlog2.f32 %v5939_v43  ;;  %v5942_v27 = vpop.xlane.xlu1 %5941 }
0x1765   :  { %7811 = vlog2.f32 %v5942_v27 }
0x176e   :  { %v7810_v0 = vpop.eup %7809 }
0x176f   :  { %v7812_v46 = vpop.eup %7811  ;;  %v5944_v60 = vmul.f32 0.6931472, %v7810_v0 }
0x1770   :  { %v5946_v49 = vmul.f32 0.6931472, %v7812_v46 }
0x1771   :  { %v5952_v22 = vrot.slane %v5944_v60, %v8604_v6  ;;  %v5960_v7 = vrot.slane %v5944_v60, %v8712_v5  ;;  %v5956_v47 = vrot.slane %v5944_v60, %v8611_v15 }
0x1772   :  { %v5988_v8 = vrot.slane %v5946_v49, %v8611_v15  ;;  %v5984_v17 = vrot.slane %v5946_v49, %v8604_v6  ;;  %v5992_v19 = vrot.slane %v5946_v49, %v8712_v5  ;;  %v5996_v54 = vrot.slane %v5946_v49, %v8806_v61 }
0x1773   :  { %v6029_v44 = vsub.f32 %v9512_v62, %v5952_v22  ;;  %v6000_v25 = vrot.slane %v5946_v49, %v8919_v48  ;;  %v5964_v6 = vrot.slane %v5944_v60, %v8806_v61  ;;  %v6004_v59 = vrot.slane %v5946_v49, %v9013_v56 }
0x1774   :  { %v6038_v51 = vsub.f32 %v9467_v45, %v5988_v8  ;;  %v6037_v57 = vsub.f32 %v9464_v4, %v5984_v17  ;;  %v6039_v38 = vsub.f32 %v9478_v29, %v5992_v19  ;;  %v6040_v45 = vsub.f32 %v9487_v35, %v5996_v54 }
0x1775   :  { %v6031_v4 = vsub.f32 %v9518_v37, %v5960_v7  ;;  %v6041_v29 = vsub.f32 %v9494_v31, %v6000_v25  ;;  %v6032_v62 = vsub.f32 %v9524_v10, %v5964_v6  ;;  %v5968_v5 = vrot.slane %v5944_v60, %v8919_v48 }
0x1776   :  { %6089 = vperm.xlu1 %7503, %v6038_v51   ;;  %6086 = vperm.xlu0 %7504, %v6037_v57   ;;  %v6042_v35 = vsub.f32 %v9500_v33, %v6004_v59  ;;  %v5972_v61 = vrot.slane %v5944_v60, %v9013_v56  ;;  %v6030_v31 = vsub.f32 %v9448_v23, %v5956_v47 }
0x1777   :  { %v6033_v37 = vsub.f32 %v9528_v52, %v5968_v5  ;;  %v6008_v53 = vrot.slane %v5946_v49, %v9107_v28  ;;  %v5976_v48 = vrot.slane %v5944_v60, %v9107_v28  ;;  %v6012_v15 = vrot.slane %v5946_v49, %v9206_v11 }
0x1778   :  { %v6034_v10 = vsub.f32 %v9458_v9, %v5972_v61  ;;  %v5980_v56 = vrot.slane %v5944_v60, %v9206_v11 }
0x1779   :  { %v6043_v33 = vsub.f32 %v9506_v39, %v6008_v53  ;;  %v6035_v52 = vsub.f32 %v9471_v30, %v5976_v48  ;;  %v6044_v23 = vsub.f32 %v9535_v14, %v6012_v15 }
0x177a   :  { %6092 = vperm.xlu1 %7503, %v6039_v38   ;;  %6062 = vperm.xlu0 %7504, %v6029_v44   ;;  %v6036_v9 = vsub.f32 %v9481_v63, %v5980_v56 }
0x177e   :  { %6095 = vperm.xlu1 %7503, %v6040_v45   ;;  %6068 = vperm.xlu0 %7504, %v6031_v4  }
0x1782   :  { %6098 = vperm.xlu1 %7503, %v6041_v29   ;;  %6071 = vperm.xlu0 %7504, %v6032_v62  }
0x1786   :  { %6101 = vperm.xlu1 %7503, %v6042_v35   ;;  %6074 = vperm.xlu0 %7504, %v6033_v37  }
0x178a   :  { %6065 = vperm.xlu1 %7503, %v6030_v31   ;;  %6077 = vperm.xlu0 %7504, %v6034_v10  }
0x178e   :  { %6104 = vperm.xlu1 %7503, %v6043_v33   ;;  %6080 = vperm.xlu0 %7504, %v6035_v52  }
0x1792   :  { %6107 = vperm.xlu1 %7503, %v6044_v23   ;;  %6083 = vperm.xlu0 %7504, %v6036_v9  }
0x17f5   :  { %v6090_v12 = vpop.permute.xlu1 %6089  ;;  %v6087_v28 = vpop.permute.xlu0 %6086 }
0x17f6   :  { %v6148_v50 = vrot.slane %v6090_v12, %v9386_v26  ;;  %v6144_v14 = vrot.slane %v6087_v28, %v9386_v26 }
0x17f8   :  { %v6180_v27 = vsel %vm923_vm2, %v6148_v50, %v6144_v14 }
0x17f9   :  { %v6093_v42 = vpop.permute.xlu1 %6092  ;;  %v6063_v2 = vpop.permute.xlu0 %6062 }
0x17fa   :  { %v6112_v63 = vrot.slane %v6063_v2, %v9386_v26  ;;  %v6152_v16 = vrot.slane %v6093_v42, %v9386_v26 }
0x17fc   :  { %v6181_v49 = vsel %vm5635_vm12, %v6152_v16, %v6180_v27 }
0x17fd   :  { %v6096_v40 = vpop.permute.xlu1 %6095  ;;  %v6069_v39 = vpop.permute.xlu0 %6068 }
0x17fe   :  { %v6120_v36 = vrot.slane %v6069_v39, %v9386_v26  ;;  %v6156_v18 = vrot.slane %v6096_v40, %v9386_v26 }
0x1800   :  { %v6182_v57 = vsel %vm5637_vm13, %v6156_v18, %v6181_v49 }
0x1801   :  { %v6099_v3 = vpop.permute.xlu1 %6098  ;;  %v6072_v30 = vpop.permute.xlu0 %6071 }
0x1802   :  { %v6124_v21 = vrot.slane %v6072_v30, %v9386_v26  ;;  %v6160_v32 = vrot.slane %v6099_v3, %v9386_v26 }
0x1804   :  { %v6183_v22 = vsel %vm5639_vm14, %v6160_v32, %v6182_v57 }
0x1805   :  { %v6102_v41 = vpop.permute.xlu1 %6101  ;;  %v6075_v58 = vpop.permute.xlu0 %6074 }
0x1806   :  { %v6128_v1 = vrot.slane %v6075_v58, %v9386_v26  ;;  %v6164_v0 = vrot.slane %v6102_v41, %v9386_v26 }
0x1808   :  { %v6184_v54 = vsel %vm5641_vm15, %v6164_v0, %v6183_v22 }
0x1809   :  { %v6066_v20 = vpop.permute.xlu1 %6065  ;;  %v6078_v11 = vpop.permute.xlu0 %6077 }
0x180a   :  { %v6116_v24 = vrot.slane %v6066_v20, %v9386_v26  ;;  %v6132_v60 = vrot.slane %v6078_v11, %v9386_v26 }
0x180c   :  { %v6173_v13 = vsel %vm923_vm2, %v6116_v24, %v6112_v63 }
0x180d   :  { %v6174_v55 = vsel %vm5635_vm12, %v6120_v36, %v6173_v13  ;;  %v6105_v34 = vpop.permute.xlu1 %6104  ;;  %v6081_v43 = vpop.permute.xlu0 %6080 }
0x180e   :  { %v6175_v46 = vsel %vm5637_vm13, %v6124_v21, %v6174_v55  ;;  %v6168_v17 = vrot.slane %v6105_v34, %v9386_v26  ;;  %v6136_v51 = vrot.slane %v6081_v43, %v9386_v26 }
0x180f   :  { %v6176_v8 = vsel %vm5639_vm14, %v6128_v1, %v6175_v46 }
0x1810   :  { %v6177_v19 = vsel %vm5641_vm15, %v6132_v60, %v6176_v8  ;;  %v6185_v4 = vsel %vm5643_vm0, %v6168_v17, %v6184_v54 }
0x1811   :  { %v6108_v38 = vpop.permute.xlu1 %6107  ;;  %v6084_v44 = vpop.permute.xlu0 %6083  ;;  %v6178_v25 = vsel %vm5643_vm0, %v6136_v51, %v6177_v19 }
0x1812   :  { %v6172_v7 = vrot.slane %v6108_v38, %v9386_v26  ;;  %v6140_v45 = vrot.slane %v6084_v44, %v9386_v26 }
0x1814   :  { %v6186_v6 = vsel %vm5645_vm1, %v6172_v7, %v6185_v4  ;;  %v6179_v29 = vsel %vm5645_vm1, %v6140_v45, %v6178_v25 }
0x1815   :  { %6190 = vst.msk [vmem:[#allocation19 + $0x8] sm:$0xff] %vm5656_vm3, %v6186_v6  ;;  %6189 = vst.msk [vmem:[#allocation19] sm:$0xff] %vm5656_vm3, %v6179_v29 }
0x1816   :  { %8049 = shalt.err (!%p8046_p0)
}
0x1817   :  { %s8050_s5 = scalar_lea.hbm %s9667_s18, 256 }
0x1818   :  { %p8051_p1 = scmp.ne.s32.totalorder %s9667_s18, %s8050_s5  ;;  %p8054_p2 = scmp.lt.u32.totalorder %s8050_s5, %s9667_s18 }
0x181a   :  { %p8056_p3 = pnand %p8054_p2, %p8051_p1 }
0x181c   :  { %8059 = shalt.err (!%p8056_p3)
}
0x181d   :  { %6202 = dma.vmem_to_hbm [thread:$0]  %s6197_s3, 256, %s9667_s18, [#allocation4], %s8076_s27, %s8076_s27, %s8077_s28  }
0x181e   :  { %8072 = dma.done.wait [#allocation4], 256  }
0x181f   :  { %8073 = vsyncadd [#allocation4], 4294967040 }
0x1820   :  { %6210 = vsyncpa [#allocation3], 1 }
0x1821   :  { %6211 = vsyncpa [#allocation6], 1 }
0x1822   :  { %6212 = vsyncpa [#allocation9], 1 }
0x1823   :  { %6213 = vsyncpa [#allocation12], 1 }
0x1824   :  { %6214 = vsyncpa [#allocation15], 1 }
0x1825   :  { %6215 = vsyncpa [#allocation18], 1 }
0x1826   :  { %6216 = vsyncpa [#allocation4], 1 }

</bundles_post_ra>
